<compile_context>
chip_gen: v7x
topology: tpu7x:2x2x1
jax: 0.10.0
libtpu: 0.0.40
codegen_flags: <defaults>
</compile_context>

<pallas_src>
import math
import functools

import jax
import jax.numpy as jnp
import numpy as np
from jax.experimental import pallas as pl
from jax.experimental.pallas import tpu as pltpu

EPS = 1e-5  # torch LayerNorm default eps
_INV_SQRT2 = 1.0 / math.sqrt(2.0)


# ---------------------------------------------------------------------------
# Fused whole-stack kernel (one grid step == one block of Bb batch samples)
# ---------------------------------------------------------------------------
def _decoder_stack_kernel(tgt_ref, mem_ref, gam_ref, bet_ref,
                          wqkv_sa_ref, bqkv_sa_ref, wo_sa_ref, bo_sa_ref,
                          wq_ca_ref, bq_ca_ref, wkv_ca_ref, bkv_ca_ref,
                          wo_ca_ref, bo_ca_ref,
                          w1_ref, b1_ref, w2_ref, b2_ref,
                          nw_ref, nb_ref, o_ref, *, num_layers, nhead):
    x = tgt_ref[...]                       # [Bb, T, D] f32
    mem = mem_ref[...]                     # [Bb, S, D] f32
    gam = gam_ref[...]                     # [Bb, 3L, D] f32 (LN affine already folded)
    bet = bet_ref[...]                     # [Bb, 3L, D] f32

    Bb, T, D = x.shape
    S = mem.shape[1]
    dh = D // nhead
    scale = 1.0 / math.sqrt(dh)

    def adaln(y, idx):
        g = gam[:, idx, :][:, None, :]     # [Bb, 1, D]
        b = bet[:, idx, :][:, None, :]
        mean = jnp.mean(y, axis=-1, keepdims=True)
        var = jnp.mean(jnp.square(y - mean), axis=-1, keepdims=True)
        return g * ((y - mean) * jax.lax.rsqrt(var + EPS)) + b

    def mha(q, k, v, wo_bf16):
        # q [Bb,T,D] f32 (pre-scaled), k/v [Bb,S_,D] f32, wo [D,D] bf16.
        # Per-head accumulation through sublane-sliced wo rows -> no lane concat.
        outs = []
        for b in range(Bb):
            acc = jnp.zeros((T, D), jnp.float32)
            for h in range(nhead):
                lo = h * dh
                qh = q[b, :, lo:lo + dh]                              # [T, dh]
                kh = k[b, :, lo:lo + dh]                              # [S_, dh]
                vh = v[b, :, lo:lo + dh]                              # [S_, dh]
                s = jax.lax.dot_general(qh, kh, (((1,), (1,)), ((), ())),
                                        preferred_element_type=jnp.float32)  # [T, S_]
                m = jnp.max(s, axis=-1, keepdims=True)
                p = jnp.exp(s - m)
                p = p / jnp.sum(p, axis=-1, keepdims=True)            # exact softmax
                head = jnp.dot(p, vh, preferred_element_type=jnp.float32)    # [T, dh]
                acc = acc + jnp.dot(head.astype(jnp.bfloat16),
                                    wo_bf16[lo:lo + dh, :],
                                    preferred_element_type=jnp.float32)      # [T, D]
            outs.append(acc)
        return jnp.stack(outs, axis=0)                                # [Bb, T, D]

    for l in range(num_layers):
        # ---------------- self-attention + residual + AdaLN1 ----------------
        xf = x.reshape(Bb * T, D).astype(jnp.bfloat16)
        qkv = (jnp.dot(xf, wqkv_sa_ref[l], preferred_element_type=jnp.float32)
               + bqkv_sa_ref[l])                                      # [Bb*T, 3D] f32
        q = (qkv[:, :D] * scale).reshape(Bb, T, D)
        k = qkv[:, D:2 * D].reshape(Bb, T, D)
        v = qkv[:, 2 * D:].reshape(Bb, T, D)
        y = x + mha(q, k, v, wo_sa_ref[l]) + bo_sa_ref[l]             # dropout1 == id
        x = adaln(y, 3 * l + 0)

        # ---------------- cross-attention + residual + AdaLN2 ---------------
        mf = mem.reshape(Bb * S, D).astype(jnp.bfloat16)
        kv = (jnp.dot(mf, wkv_ca_ref[l], preferred_element_type=jnp.float32)
              + bkv_ca_ref[l])                                        # [Bb*S, 2D] f32
        xf = x.reshape(Bb * T, D).astype(jnp.bfloat16)
        q = ((jnp.dot(xf, wq_ca_ref[l], preferred_element_type=jnp.float32)
              + bq_ca_ref[l]) * scale).reshape(Bb, T, D)
        k = kv[:, :D].reshape(Bb, S, D)
        v = kv[:, D:].reshape(Bb, S, D)
        y = x + mha(q, k, v, wo_ca_ref[l]) + bo_ca_ref[l]             # dropout2 == id
        x = adaln(y, 3 * l + 1)

        # ---------------- FFN + residual + AdaLN3 ----------------------------
        xf = x.reshape(Bb * T, D).astype(jnp.bfloat16)
        h = jnp.dot(xf, w1_ref[l], preferred_element_type=jnp.float32) + b1_ref[l]
        h = 0.5 * h * (1.0 + jax.lax.erf(h * _INV_SQRT2))             # exact GELU (F.gelu)
        ff = (jnp.dot(h.astype(jnp.bfloat16), w2_ref[l],
                      preferred_element_type=jnp.float32) + b2_ref[l])
        y = x + ff.reshape(Bb, T, D)                                  # dropout3 == id
        x = adaln(y, 3 * l + 2)

    # ---------------- final LayerNorm ----------------------------------------
    mean = jnp.mean(x, axis=-1, keepdims=True)
    var = jnp.mean(jnp.square(x - mean), axis=-1, keepdims=True)
    o_ref[...] = (x - mean) * jax.lax.rsqrt(var + EPS) * nw_ref[...] + nb_ref[...]


# ---------------------------------------------------------------------------
# pallas_call wrapper
# ---------------------------------------------------------------------------
def _choose_batch_block(B, T, rows_target=128):
    """How many batch samples each grid step processes.

    Larger blocks raise MXU M-occupancy (rows = Bb*T); keep >=2 grid steps when
    possible so both v7x TensorCores get work on the "parallel" axis.
    """
    divisors = [d for d in range(1, B + 1) if B % d == 0]
    pool = [d for d in divisors if B // d >= 2] or divisors
    for d in pool:
        if d * T >= rows_target:
            return d
    return pool[-1]


def fasttalk_decoder(tgt, memory, style, prep, nhead, block_b=None):
    B, T, D = tgt.shape
    S = memory.shape[1]
    L = prep["w1"].shape[0]
    H = prep["w1"].shape[2]
    Bb = block_b if block_b is not None else _choose_batch_block(B, T)

    # style2scale projections stay in plain JAX (tiny), with the inner LayerNorm
    # affine folded in:  gamma_eff = gamma*ln_w ; beta_eff = gamma*ln_b + beta.
    gb = jnp.einsum("bs,lcsd->blcd", style, prep["ada_w"]) + prep["ada_b"][None]
    gamma, beta = gb[..., :D], gb[..., D:]
    gamma_eff = (gamma * prep["ada_ln_w"][None]).reshape(B, 3 * L, D)
    beta_eff = (gamma * prep["ada_ln_b"][None] + beta).reshape(B, 3 * L, D)

    def _const(shape):
        n = len(shape)
        return pl.BlockSpec(shape, lambda i, n=n: (0,) * n)

    kernel = functools.partial(_decoder_stack_kernel, num_layers=L, nhead=nhead)

    return pl.pallas_call(
        kernel,
        out_shape=jax.ShapeDtypeStruct((B, T, D), jnp.float32),
        grid=(B // Bb,),
        in_specs=[
            pl.BlockSpec((Bb, T, D), lambda i: (i, 0, 0)),          # tgt
            pl.BlockSpec((Bb, S, D), lambda i: (i, 0, 0)),          # memory
            pl.BlockSpec((Bb, 3 * L, D), lambda i: (i, 0, 0)),      # gamma (per sample)
            pl.BlockSpec((Bb, 3 * L, D), lambda i: (i, 0, 0)),      # beta  (per sample)
            _const((L, D, 3 * D)),                                  # wqkv self-attn (bf16)
            _const((L, 1, 3 * D)),                                  # bqkv self-attn
            _const((L, D, D)),                                      # wo   self-attn (bf16)
            _const((L, 1, D)),                                      # bo   self-attn
            _const((L, D, D)),                                      # wq   cross-attn (bf16)
            _const((L, 1, D)),                                      # bq   cross-attn
            _const((L, D, 2 * D)),                                  # wkv  cross-attn (bf16)
            _const((L, 1, 2 * D)),                                  # bkv  cross-attn
            _const((L, D, D)),                                      # wo   cross-attn (bf16)
            _const((L, 1, D)),                                      # bo   cross-attn
            _const((L, D, H)),                                      # w1 (bf16)
            _const((L, 1, H)),                                      # b1
            _const((L, H, D)),                                      # w2 (bf16)
            _const((L, 1, D)),                                      # b2
            _const((1, D)),                                         # final norm w
            _const((1, D)),                                         # final norm b
        ],
        out_specs=pl.BlockSpec((Bb, T, D), lambda i: (i, 0, 0)),
        compiler_params=pltpu.CompilerParams(
            dimension_semantics=("parallel",),
            vmem_limit_bytes=64 * 1024 * 1024,
        ),
    )(tgt, memory, gamma_eff, beta_eff,
      prep["wqkv_sa"], prep["bqkv_sa"], prep["wo_sa"], prep["bo_sa"],
      prep["wq_ca"], prep["bq_ca"], prep["wkv_ca"], prep["bkv_ca"],
      prep["wo_ca"], prep["bo_ca"],
      prep["w1"], prep["b1"], prep["w2"], prep["b2"],
      prep["norm_w"], prep["norm_b"])


# ---------------------------------------------------------------------------
# Parameter prep (done ONCE, outside the jitted forward): stack layer weights,
# pre-fuse QKV / KV projections, cast MXU operands to bf16.
# ---------------------------------------------------------------------------
def prepare_params(params):
    layers = params["layers"]
    D = params["norm_w"].shape[0]

    def stack(fn, dtype=None):
        a = jnp.stack([fn(p) for p in layers], axis=0)
        return a.astype(dtype) if dtype is not None else a

    bf16 = jnp.bfloat16
    prep = dict(
        wqkv_sa=stack(lambda p: jnp.concatenate(
            [p["self_attn"]["wq"], p["self_attn"]["wk"], p["self_attn"]["wv"]], axis=1), bf16),
        bqkv_sa=stack(lambda p: jnp.concatenate(
            [p["self_attn"]["bq"], p["self_attn"]["bk"], p["self_attn"]["bv"]])[None, :]),
        wo_sa=stack(lambda p: p["self_attn"]["wo"], bf16),
        bo_sa=stack(lambda p: p["self_attn"]["bo"][None, :]),
        wq_ca=stack(lambda p: p["cross_attn"]["wq"], bf16),
        bq_ca=stack(lambda p: p["cross_attn"]["bq"][None, :]),
        wkv_ca=stack(lambda p: jnp.concatenate(
            [p["cross_attn"]["wk"], p["cross_attn"]["wv"]], axis=1), bf16),
        bkv_ca=stack(lambda p: jnp.concatenate(
            [p["cross_attn"]["bk"], p["cross_attn"]["bv"]])[None, :]),
        wo_ca=stack(lambda p: p["cross_attn"]["wo"], bf16),
        bo_ca=stack(lambda p: p["cross_attn"]["bo"][None, :]),
        w1=stack(lambda p: p["w1"], bf16),
        b1=stack(lambda p: p["b1"][None, :]),
        w2=stack(lambda p: p["w2"], bf16),
        b2=stack(lambda p: p["b2"][None, :]),
        ada_w=stack(lambda p: jnp.stack([p["ada1"]["w_s"], p["ada2"]["w_s"], p["ada3"]["w_s"]], 0)),
        ada_b=stack(lambda p: jnp.stack([p["ada1"]["b_s"], p["ada2"]["b_s"], p["ada3"]["b_s"]], 0)),
        ada_ln_w=stack(lambda p: jnp.stack([p["ada1"]["ln_w"], p["ada2"]["ln_w"], p["ada3"]["ln_w"]], 0)),
        ada_ln_b=stack(lambda p: jnp.stack([p["ada1"]["ln_b"], p["ada2"]["ln_b"], p["ada3"]["ln_b"]], 0)),
        norm_w=params["norm_w"].reshape(1, D),
        norm_b=params["norm_b"].reshape(1, D),
    )
    return prep


# ---------------------------------------------------------------------------
# Deterministic parameter init (shapes from the module's __init__)
# ---------------------------------------------------------------------------
def _init_linear(key, fan_in, fan_out):
    kw, kb = jax.random.split(key)
    lim = 1.0 / math.sqrt(fan_in)
    w = jax.random.uniform(kw, (fan_in, fan_out), jnp.float32, -lim, lim)
    b = jax.random.uniform(kb, (fan_out,), jnp.float32, -lim, lim)
    return w, b


def _init_mha(key, d_model):
    ks = jax.random.split(key, 4)
    wq, bq = _init_linear(ks[0], d_model, d_model)
    wk, bk = _init_linear(ks[1], d_model, d_model)
    wv, bv = _init_linear(ks[2], d_model, d_model)
    wo, bo = _init_linear(ks[3], d_model, d_model)
    return dict(wq=wq, bq=bq, wk=wk, bk=bk, wv=wv, bv=bv, wo=wo, bo=bo)


def _init_adaln(key, d_model, style_dim):
    # NOTE: the PyTorch init zeros style2scale.weight (-> gamma==1, beta==0).  Here we
    # use small deterministic random values so the style path is actually exercised.
    w_s, b_s = _init_linear(key, style_dim, 2 * d_model)
    w_s = 0.1 * w_s
    b_s = b_s.at[:d_model].set(1.0 + 0.1 * b_s[:d_model])
    b_s = b_s.at[d_model:].set(0.1 * b_s[d_model:])
    return dict(w_s=w_s, b_s=b_s,
                ln_w=jnp.ones((d_model,), jnp.float32),
                ln_b=jnp.zeros((d_model,), jnp.float32))


def _init_layer(key, d_model, style_dim, dim_ff):
    ks = jax.random.split(key, 7)
    w1, b1 = _init_linear(ks[2], d_model, dim_ff)
    w2, b2 = _init_linear(ks[3], dim_ff, d_model)
    return dict(self_attn=_init_mha(ks[0], d_model),
                cross_attn=_init_mha(ks[1], d_model),
                w1=w1, b1=b1, w2=w2, b2=b2,
                ada1=_init_adaln(ks[4], d_model, style_dim),
                ada2=_init_adaln(ks[5], d_model, style_dim),
                ada3=_init_adaln(ks[6], d_model, style_dim))


def init_params(key, d_model, style_dim, dim_ff, num_layers):
    klayer, _ = jax.random.split(key)
    layer = _init_layer(klayer, d_model, style_dim, dim_ff)
    # FastTalkTransformerDecoder deep-copies a single layer -> identical initial params.
    return dict(layers=[layer for _ in range(num_layers)],
                norm_w=jnp.ones((d_model,), jnp.float32),
                norm_b=jnp.zeros((d_model,), jnp.float32))


# ---------------------------------------------------------------------------
# Pure-JAX f32 reference (exact module semantics, for correctness check)
# ---------------------------------------------------------------------------
def _ref_linear(x, w, b):
    return jnp.dot(x, w) + b


def _ref_mha(x, kv, p, nhead):
    B, T, D = x.shape
    S = kv.shape[1]
    dh = D // nhead
    q = _ref_linear(x.reshape(B * T, D), p["wq"], p["bq"]).reshape(B, T, nhead, dh).transpose(0, 2, 1, 3)
    k = _ref_linear(kv.reshape(B * S, D), p["wk"], p["bk"]).reshape(B, S, nhead, dh).transpose(0, 2, 1, 3)
    v = _ref_linear(kv.reshape(B * S, D), p["wv"], p["bv"]).reshape(B, S, nhead, dh).transpose(0, 2, 1, 3)
    s = jnp.einsum("bhtd,bhsd->bhts", q, k) / math.sqrt(dh)
    a = jax.nn.softmax(s, axis=-1)
    o = jnp.einsum("bhts,bhsd->bhtd", a, v).transpose(0, 2, 1, 3).reshape(B * T, D)
    return _ref_linear(o, p["wo"], p["bo"]).reshape(B, T, D)


def _ref_adaln(x, style, p):
    mean = jnp.mean(x, axis=-1, keepdims=True)
    var = jnp.mean(jnp.square(x - mean), axis=-1, keepdims=True)
    h = (x - mean) / jnp.sqrt(var + EPS)
    h = h * p["ln_w"] + p["ln_b"]
    gb = _ref_linear(style, p["w_s"], p["b_s"])
    D = x.shape[-1]
    gamma, beta = gb[:, :D], gb[:, D:]
    return gamma[:, None, :] * h + beta[:, None, :]


def _ref_layer(tgt, memory, style, p, nhead):
    tgt = tgt + _ref_mha(tgt, tgt, p["self_attn"], nhead)
    tgt = _ref_adaln(tgt, style, p["ada1"])
    tgt = tgt + _ref_mha(tgt, memory, p["cross_attn"], nhead)
    tgt = _ref_adaln(tgt, style, p["ada2"])
    B, T, D = tgt.shape
    h = jax.nn.gelu(_ref_linear(tgt.reshape(B * T, D), p["w1"], p["b1"]), approximate=False)
    ff = _ref_linear(h, p["w2"], p["b2"]).reshape(B, T, D)
    tgt = tgt + ff
    tgt = _ref_adaln(tgt, style, p["ada3"])
    return tgt


def _ref_decoder(tgt, memory, style, params, nhead):
    out = tgt
    for p in params["layers"]:
        out = _ref_layer(out, memory, style, p, nhead)
    mean = jnp.mean(out, axis=-1, keepdims=True)
    var = jnp.mean(jnp.square(out - mean), axis=-1, keepdims=True)
    out = (out - mean) / jnp.sqrt(var + EPS)
    return out * params["norm_w"] + params["norm_b"]


# ---------------------------------------------------------------------------
if __name__ == "__main__":
    B, T, S = 2, 8, 12                 # batch, tgt seq, memory seq
    D_MODEL, NHEAD, STYLE_DIM, DIM_FF = 32, 4, 16, 64
    NUM_LAYERS = 2

    root = jax.random.PRNGKey(0)
    kp, kt, km, ks = jax.random.split(root, 4)
    params = init_params(kp, D_MODEL, STYLE_DIM, DIM_FF, NUM_LAYERS)
    prepped = prepare_params(params)   # stacking / QKV fusion / bf16 cast, outside jit
    tgt = jax.random.normal(kt, (B, T, D_MODEL), jnp.float32)
    memory = jax.random.normal(km, (B, S, D_MODEL), jnp.float32)
    style = jax.random.normal(ks, (B, STYLE_DIM), jnp.float32)

    fwd = jax.jit(functools.partial(fasttalk_decoder, nhead=NHEAD))
    out = jax.block_until_ready(fwd(tgt, memory, style, prepped))
    assert out.shape == (B, T, D_MODEL)

    # bf16 MXU operands introduce ~1e-2 relative error vs the exact-f32 reference,
    # hence the slightly loosened absolute tolerance.
    ref = _ref_decoder(tgt, memory, style, params, NHEAD)
    np.testing.assert_allclose(np.asarray(out), np.asarray(ref), rtol=2e-2, atol=5e-2)
    print("KERNEL_OK")
</pallas_src>

<mosaic_0001>
module attributes {stable_mosaic.version = 11 : i64} {
  func.func @_decoder_stack_kernel(%arg0: i32, %arg1: memref<1x8x32xf32, #tpu.memory_space<vmem>>, %arg2: memref<1x12x32xf32, #tpu.memory_space<vmem>>, %arg3: memref<1x6x32xf32, #tpu.memory_space<vmem>>, %arg4: memref<1x6x32xf32, #tpu.memory_space<vmem>>, %arg5: memref<2x32x96xbf16, #tpu.memory_space<vmem>>, %arg6: memref<2x1x96xf32, #tpu.memory_space<vmem>>, %arg7: memref<2x32x32xbf16, #tpu.memory_space<vmem>>, %arg8: memref<2x1x32xf32, #tpu.memory_space<vmem>>, %arg9: memref<2x32x32xbf16, #tpu.memory_space<vmem>>, %arg10: memref<2x1x32xf32, #tpu.memory_space<vmem>>, %arg11: memref<2x32x64xbf16, #tpu.memory_space<vmem>>, %arg12: memref<2x1x64xf32, #tpu.memory_space<vmem>>, %arg13: memref<2x32x32xbf16, #tpu.memory_space<vmem>>, %arg14: memref<2x1x32xf32, #tpu.memory_space<vmem>>, %arg15: memref<2x32x64xbf16, #tpu.memory_space<vmem>>, %arg16: memref<2x1x64xf32, #tpu.memory_space<vmem>>, %arg17: memref<2x64x32xbf16, #tpu.memory_space<vmem>>, %arg18: memref<2x1x32xf32, #tpu.memory_space<vmem>>, %arg19: memref<1x32xf32, #tpu.memory_space<vmem>>, %arg20: memref<1x32xf32, #tpu.memory_space<vmem>>, %arg21: memref<1x8x32xf32, #tpu.memory_space<vmem>>) attributes {dimension_semantics = [#tpu.dimension_semantics<parallel>], iteration_bounds = array<i64: 2>, scalar_prefetch = 0 : i64, scratch_operands = 0 : i64, tpu.core_type = #tpu.core_type<tc>, window_params = [{transform_indices = @transform_0, window_bounds = array<i64: 1, 8, 32>}, {transform_indices = @transform_1, window_bounds = array<i64: 1, 12, 32>}, {transform_indices = @transform_2, window_bounds = array<i64: 1, 6, 32>}, {transform_indices = @transform_3, window_bounds = array<i64: 1, 6, 32>}, {pipeline_mode = #tpu.pipeline_mode<synchronous>, transform_indices = @transform_4, window_bounds = array<i64: 2, 32, 96>}, {pipeline_mode = #tpu.pipeline_mode<synchronous>, transform_indices = @transform_5, window_bounds = array<i64: 2, 1, 96>}, {pipeline_mode = #tpu.pipeline_mode<synchronous>, transform_indices = @transform_6, window_bounds = array<i64: 2, 32, 32>}, {pipeline_mode = #tpu.pipeline_mode<synchronous>, transform_indices = @transform_7, window_bounds = array<i64: 2, 1, 32>}, {pipeline_mode = #tpu.pipeline_mode<synchronous>, transform_indices = @transform_8, window_bounds = array<i64: 2, 32, 32>}, {pipeline_mode = #tpu.pipeline_mode<synchronous>, transform_indices = @transform_9, window_bounds = array<i64: 2, 1, 32>}, {pipeline_mode = #tpu.pipeline_mode<synchronous>, transform_indices = @transform_10, window_bounds = array<i64: 2, 32, 64>}, {pipeline_mode = #tpu.pipeline_mode<synchronous>, transform_indices = @transform_11, window_bounds = array<i64: 2, 1, 64>}, {pipeline_mode = #tpu.pipeline_mode<synchronous>, transform_indices = @transform_12, window_bounds = array<i64: 2, 32, 32>}, {pipeline_mode = #tpu.pipeline_mode<synchronous>, transform_indices = @transform_13, window_bounds = array<i64: 2, 1, 32>}, {pipeline_mode = #tpu.pipeline_mode<synchronous>, transform_indices = @transform_14, window_bounds = array<i64: 2, 32, 64>}, {pipeline_mode = #tpu.pipeline_mode<synchronous>, transform_indices = @transform_15, window_bounds = array<i64: 2, 1, 64>}, {pipeline_mode = #tpu.pipeline_mode<synchronous>, transform_indices = @transform_16, window_bounds = array<i64: 2, 64, 32>}, {pipeline_mode = #tpu.pipeline_mode<synchronous>, transform_indices = @transform_17, window_bounds = array<i64: 2, 1, 32>}, {pipeline_mode = #tpu.pipeline_mode<synchronous>, transform_indices = @transform_18, window_bounds = array<i64: 1, 32>}, {pipeline_mode = #tpu.pipeline_mode<synchronous>, transform_indices = @transform_19, window_bounds = array<i64: 1, 32>}, {transform_indices = @transform_20, window_bounds = array<i64: 1, 8, 32>}]} {
    %c0 = arith.constant 0 : index
    %c0_0 = arith.constant 0 : index
    %c0_1 = arith.constant 0 : index
    %0 = vector.load %arg1[%c0, %c0_0, %c0_1] : memref<1x8x32xf32, #tpu.memory_space<vmem>>, vector<1x8x32xf32>
    %c0_2 = arith.constant 0 : index
    %c0_3 = arith.constant 0 : index
    %c0_4 = arith.constant 0 : index
    %1 = vector.load %arg2[%c0_2, %c0_3, %c0_4] : memref<1x12x32xf32, #tpu.memory_space<vmem>>, vector<1x12x32xf32>
    %c0_5 = arith.constant 0 : index
    %c0_6 = arith.constant 0 : index
    %c0_7 = arith.constant 0 : index
    %2 = vector.load %arg3[%c0_5, %c0_6, %c0_7] : memref<1x6x32xf32, #tpu.memory_space<vmem>>, vector<1x6x32xf32>
    %c0_8 = arith.constant 0 : index
    %c0_9 = arith.constant 0 : index
    %c0_10 = arith.constant 0 : index
    %3 = vector.load %arg4[%c0_8, %c0_9, %c0_10] : memref<1x6x32xf32, #tpu.memory_space<vmem>>, vector<1x6x32xf32>
    %4 = vector.shape_cast %0 : vector<1x8x32xf32> to vector<8x32xf32>
    %5 = arith.truncf %4 : vector<8x32xf32> to vector<8x32xbf16>
    %c0_11 = arith.constant 0 : index
    %c0_12 = arith.constant 0 : index
    %c0_13 = arith.constant 0 : index
    %6 = vector.load %arg5[%c0_11, %c0_12, %c0_13] : memref<2x32x96xbf16, #tpu.memory_space<vmem>>, vector<1x32x96xbf16>
    %7 = vector.shape_cast %6 : vector<1x32x96xbf16> to vector<32x96xbf16>
    %cst = arith.constant dense<0.000000e+00> : vector<8x96xf32>
    %8 = tpu.matmul %5, %7, %cst {dimension_numbers = #tpu.dot_dimension_numbers<[1], [0], [0], [1], [0, 0, 1, 1], [], []>} : vector<8x32xbf16>, vector<32x96xbf16>, vector<8x96xf32> -> vector<8x96xf32>
    %c0_14 = arith.constant 0 : index
    %c0_15 = arith.constant 0 : index
    %c0_16 = arith.constant 0 : index
    %9 = vector.load %arg6[%c0_14, %c0_15, %c0_16] : memref<2x1x96xf32, #tpu.memory_space<vmem>>, vector<1x1x96xf32>
    %10 = vector.shape_cast %9 : vector<1x1x96xf32> to vector<1x96xf32>
    %11 = vector.broadcast %10 : vector<1x96xf32> to vector<8x96xf32>
    %12 = arith.addf %8, %11 : vector<8x96xf32>
    %13 = vector.extract_strided_slice %12 {offsets = [0, 0], sizes = [8, 32], strides = [1, 1]} : vector<8x96xf32> to vector<8x32xf32>
    %cst_17 = arith.constant 0.353553385 : f32
    %14 = vector.broadcast %cst_17 : f32 to vector<8x32xf32>
    %15 = arith.mulf %13, %14 : vector<8x32xf32>
    %16 = vector.shape_cast %15 : vector<8x32xf32> to vector<1x8x32xf32>
    %17 = vector.extract_strided_slice %12 {offsets = [0, 32], sizes = [8, 32], strides = [1, 1]} : vector<8x96xf32> to vector<8x32xf32>
    %18 = vector.shape_cast %17 : vector<8x32xf32> to vector<1x8x32xf32>
    %19 = vector.extract_strided_slice %12 {offsets = [0, 64], sizes = [8, 32], strides = [1, 1]} : vector<8x96xf32> to vector<8x32xf32>
    %20 = vector.shape_cast %19 : vector<8x32xf32> to vector<1x8x32xf32>
    %c0_18 = arith.constant 0 : index
    %c0_19 = arith.constant 0 : index
    %c0_20 = arith.constant 0 : index
    %21 = vector.load %arg7[%c0_18, %c0_19, %c0_20] : memref<2x32x32xbf16, #tpu.memory_space<vmem>>, vector<1x32x32xbf16>
    %22 = vector.shape_cast %21 : vector<1x32x32xbf16> to vector<32x32xbf16>
    %cst_21 = arith.constant 0.000000e+00 : f32
    %23 = vector.broadcast %cst_21 : f32 to vector<8x32xf32>
    %24 = vector.extract_strided_slice %16 {offsets = [0, 0, 0], sizes = [1, 8, 8], strides = [1, 1, 1]} : vector<1x8x32xf32> to vector<1x8x8xf32>
    %25 = vector.shape_cast %24 : vector<1x8x8xf32> to vector<8x8xf32>
    %26 = vector.extract_strided_slice %18 {offsets = [0, 0, 0], sizes = [1, 8, 8], strides = [1, 1, 1]} : vector<1x8x32xf32> to vector<1x8x8xf32>
    %27 = vector.shape_cast %26 : vector<1x8x8xf32> to vector<8x8xf32>
    %28 = vector.extract_strided_slice %20 {offsets = [0, 0, 0], sizes = [1, 8, 8], strides = [1, 1, 1]} : vector<1x8x32xf32> to vector<1x8x8xf32>
    %29 = vector.shape_cast %28 : vector<1x8x8xf32> to vector<8x8xf32>
    %cst_22 = arith.constant dense<0.000000e+00> : vector<8x8xf32>
    %30 = tpu.matmul %25, %27, %cst_22 {dimension_numbers = #tpu.dot_dimension_numbers<[1], [1], [0], [0], [0, 0, 1, 0], [], []>} : vector<8x8xf32>, vector<8x8xf32>, vector<8x8xf32> -> vector<8x8xf32>
    %cst_23 = arith.constant dense<0xFF800000> : vector<8xf32>
    %31 = vector.multi_reduction <maximumf>, %30, %cst_23 [1] : vector<8x8xf32> to vector<8xf32>
    %32 = vector.shape_cast %31 : vector<8xf32> to vector<8x1xf32>
    %33 = vector.broadcast %32 : vector<8x1xf32> to vector<8x8xf32>
    %34 = arith.subf %30, %33 : vector<8x8xf32>
    %35 = math.exp %34 : vector<8x8xf32>
    %cst_24 = arith.constant dense<0.000000e+00> : vector<8xf32>
    %36 = vector.multi_reduction <add>, %35, %cst_24 [1] : vector<8x8xf32> to vector<8xf32>
    %37 = vector.shape_cast %36 : vector<8xf32> to vector<8x1xf32>
    %38 = vector.broadcast %37 : vector<8x1xf32> to vector<8x8xf32>
    %39 = arith.divf %35, %38 : vector<8x8xf32>
    %cst_25 = arith.constant dense<0.000000e+00> : vector<8x8xf32>
    %40 = tpu.matmul %39, %29, %cst_25 {dimension_numbers = #tpu.dot_dimension_numbers<[1], [0], [0], [1], [0, 0, 1, 1], [], []>} : vector<8x8xf32>, vector<8x8xf32>, vector<8x8xf32> -> vector<8x8xf32>
    %41 = arith.truncf %40 : vector<8x8xf32> to vector<8x8xbf16>
    %42 = vector.extract_strided_slice %22 {offsets = [0, 0], sizes = [8, 32], strides = [1, 1]} : vector<32x32xbf16> to vector<8x32xbf16>
    %cst_26 = arith.constant dense<0.000000e+00> : vector<8x32xf32>
    %43 = tpu.matmul %41, %42, %cst_26 {dimension_numbers = #tpu.dot_dimension_numbers<[1], [0], [0], [1], [0, 0, 1, 1], [], []>} : vector<8x8xbf16>, vector<8x32xbf16>, vector<8x32xf32> -> vector<8x32xf32>
    %44 = arith.addf %23, %43 : vector<8x32xf32>
    %45 = vector.extract_strided_slice %16 {offsets = [0, 0, 8], sizes = [1, 8, 8], strides = [1, 1, 1]} : vector<1x8x32xf32> to vector<1x8x8xf32>
    %46 = vector.shape_cast %45 : vector<1x8x8xf32> to vector<8x8xf32>
    %47 = vector.extract_strided_slice %18 {offsets = [0, 0, 8], sizes = [1, 8, 8], strides = [1, 1, 1]} : vector<1x8x32xf32> to vector<1x8x8xf32>
    %48 = vector.shape_cast %47 : vector<1x8x8xf32> to vector<8x8xf32>
    %49 = vector.extract_strided_slice %20 {offsets = [0, 0, 8], sizes = [1, 8, 8], strides = [1, 1, 1]} : vector<1x8x32xf32> to vector<1x8x8xf32>
    %50 = vector.shape_cast %49 : vector<1x8x8xf32> to vector<8x8xf32>
    %cst_27 = arith.constant dense<0.000000e+00> : vector<8x8xf32>
    %51 = tpu.matmul %46, %48, %cst_27 {dimension_numbers = #tpu.dot_dimension_numbers<[1], [1], [0], [0], [0, 0, 1, 0], [], []>} : vector<8x8xf32>, vector<8x8xf32>, vector<8x8xf32> -> vector<8x8xf32>
    %cst_28 = arith.constant dense<0xFF800000> : vector<8xf32>
    %52 = vector.multi_reduction <maximumf>, %51, %cst_28 [1] : vector<8x8xf32> to vector<8xf32>
    %53 = vector.shape_cast %52 : vector<8xf32> to vector<8x1xf32>
    %54 = vector.broadcast %53 : vector<8x1xf32> to vector<8x8xf32>
    %55 = arith.subf %51, %54 : vector<8x8xf32>
    %56 = math.exp %55 : vector<8x8xf32>
    %cst_29 = arith.constant dense<0.000000e+00> : vector<8xf32>
    %57 = vector.multi_reduction <add>, %56, %cst_29 [1] : vector<8x8xf32> to vector<8xf32>
    %58 = vector.shape_cast %57 : vector<8xf32> to vector<8x1xf32>
    %59 = vector.broadcast %58 : vector<8x1xf32> to vector<8x8xf32>
    %60 = arith.divf %56, %59 : vector<8x8xf32>
    %cst_30 = arith.constant dense<0.000000e+00> : vector<8x8xf32>
    %61 = tpu.matmul %60, %50, %cst_30 {dimension_numbers = #tpu.dot_dimension_numbers<[1], [0], [0], [1], [0, 0, 1, 1], [], []>} : vector<8x8xf32>, vector<8x8xf32>, vector<8x8xf32> -> vector<8x8xf32>
    %62 = arith.truncf %61 : vector<8x8xf32> to vector<8x8xbf16>
    %63 = vector.extract_strided_slice %22 {offsets = [8, 0], sizes = [8, 32], strides = [1, 1]} : vector<32x32xbf16> to vector<8x32xbf16>
    %cst_31 = arith.constant dense<0.000000e+00> : vector<8x32xf32>
    %64 = tpu.matmul %62, %63, %cst_31 {dimension_numbers = #tpu.dot_dimension_numbers<[1], [0], [0], [1], [0, 0, 1, 1], [], []>} : vector<8x8xbf16>, vector<8x32xbf16>, vector<8x32xf32> -> vector<8x32xf32>
    %65 = arith.addf %44, %64 : vector<8x32xf32>
    %66 = vector.extract_strided_slice %16 {offsets = [0, 0, 16], sizes = [1, 8, 8], strides = [1, 1, 1]} : vector<1x8x32xf32> to vector<1x8x8xf32>
    %67 = vector.shape_cast %66 : vector<1x8x8xf32> to vector<8x8xf32>
    %68 = vector.extract_strided_slice %18 {offsets = [0, 0, 16], sizes = [1, 8, 8], strides = [1, 1, 1]} : vector<1x8x32xf32> to vector<1x8x8xf32>
    %69 = vector.shape_cast %68 : vector<1x8x8xf32> to vector<8x8xf32>
    %70 = vector.extract_strided_slice %20 {offsets = [0, 0, 16], sizes = [1, 8, 8], strides = [1, 1, 1]} : vector<1x8x32xf32> to vector<1x8x8xf32>
    %71 = vector.shape_cast %70 : vector<1x8x8xf32> to vector<8x8xf32>
    %cst_32 = arith.constant dense<0.000000e+00> : vector<8x8xf32>
    %72 = tpu.matmul %67, %69, %cst_32 {dimension_numbers = #tpu.dot_dimension_numbers<[1], [1], [0], [0], [0, 0, 1, 0], [], []>} : vector<8x8xf32>, vector<8x8xf32>, vector<8x8xf32> -> vector<8x8xf32>
    %cst_33 = arith.constant dense<0xFF800000> : vector<8xf32>
    %73 = vector.multi_reduction <maximumf>, %72, %cst_33 [1] : vector<8x8xf32> to vector<8xf32>
    %74 = vector.shape_cast %73 : vector<8xf32> to vector<8x1xf32>
    %75 = vector.broadcast %74 : vector<8x1xf32> to vector<8x8xf32>
    %76 = arith.subf %72, %75 : vector<8x8xf32>
    %77 = math.exp %76 : vector<8x8xf32>
    %cst_34 = arith.constant dense<0.000000e+00> : vector<8xf32>
    %78 = vector.multi_reduction <add>, %77, %cst_34 [1] : vector<8x8xf32> to vector<8xf32>
    %79 = vector.shape_cast %78 : vector<8xf32> to vector<8x1xf32>
    %80 = vector.broadcast %79 : vector<8x1xf32> to vector<8x8xf32>
    %81 = arith.divf %77, %80 : vector<8x8xf32>
    %cst_35 = arith.constant dense<0.000000e+00> : vector<8x8xf32>
    %82 = tpu.matmul %81, %71, %cst_35 {dimension_numbers = #tpu.dot_dimension_numbers<[1], [0], [0], [1], [0, 0, 1, 1], [], []>} : vector<8x8xf32>, vector<8x8xf32>, vector<8x8xf32> -> vector<8x8xf32>
    %83 = arith.truncf %82 : vector<8x8xf32> to vector<8x8xbf16>
    %84 = vector.extract_strided_slice %22 {offsets = [16, 0], sizes = [8, 32], strides = [1, 1]} : vector<32x32xbf16> to vector<8x32xbf16>
    %cst_36 = arith.constant dense<0.000000e+00> : vector<8x32xf32>
    %85 = tpu.matmul %83, %84, %cst_36 {dimension_numbers = #tpu.dot_dimension_numbers<[1], [0], [0], [1], [0, 0, 1, 1], [], []>} : vector<8x8xbf16>, vector<8x32xbf16>, vector<8x32xf32> -> vector<8x32xf32>
    %86 = arith.addf %65, %85 : vector<8x32xf32>
    %87 = vector.extract_strided_slice %16 {offsets = [0, 0, 24], sizes = [1, 8, 8], strides = [1, 1, 1]} : vector<1x8x32xf32> to vector<1x8x8xf32>
    %88 = vector.shape_cast %87 : vector<1x8x8xf32> to vector<8x8xf32>
    %89 = vector.extract_strided_slice %18 {offsets = [0, 0, 24], sizes = [1, 8, 8], strides = [1, 1, 1]} : vector<1x8x32xf32> to vector<1x8x8xf32>
    %90 = vector.shape_cast %89 : vector<1x8x8xf32> to vector<8x8xf32>
    %91 = vector.extract_strided_slice %20 {offsets = [0, 0, 24], sizes = [1, 8, 8], strides = [1, 1, 1]} : vector<1x8x32xf32> to vector<1x8x8xf32>
    %92 = vector.shape_cast %91 : vector<1x8x8xf32> to vector<8x8xf32>
    %cst_37 = arith.constant dense<0.000000e+00> : vector<8x8xf32>
    %93 = tpu.matmul %88, %90, %cst_37 {dimension_numbers = #tpu.dot_dimension_numbers<[1], [1], [0], [0], [0, 0, 1, 0], [], []>} : vector<8x8xf32>, vector<8x8xf32>, vector<8x8xf32> -> vector<8x8xf32>
    %cst_38 = arith.constant dense<0xFF800000> : vector<8xf32>
    %94 = vector.multi_reduction <maximumf>, %93, %cst_38 [1] : vector<8x8xf32> to vector<8xf32>
    %95 = vector.shape_cast %94 : vector<8xf32> to vector<8x1xf32>
    %96 = vector.broadcast %95 : vector<8x1xf32> to vector<8x8xf32>
    %97 = arith.subf %93, %96 : vector<8x8xf32>
    %98 = math.exp %97 : vector<8x8xf32>
    %cst_39 = arith.constant dense<0.000000e+00> : vector<8xf32>
    %99 = vector.multi_reduction <add>, %98, %cst_39 [1] : vector<8x8xf32> to vector<8xf32>
    %100 = vector.shape_cast %99 : vector<8xf32> to vector<8x1xf32>
    %101 = vector.broadcast %100 : vector<8x1xf32> to vector<8x8xf32>
    %102 = arith.divf %98, %101 : vector<8x8xf32>
    %cst_40 = arith.constant dense<0.000000e+00> : vector<8x8xf32>
    %103 = tpu.matmul %102, %92, %cst_40 {dimension_numbers = #tpu.dot_dimension_numbers<[1], [0], [0], [1], [0, 0, 1, 1], [], []>} : vector<8x8xf32>, vector<8x8xf32>, vector<8x8xf32> -> vector<8x8xf32>
    %104 = arith.truncf %103 : vector<8x8xf32> to vector<8x8xbf16>
    %105 = vector.extract_strided_slice %22 {offsets = [24, 0], sizes = [8, 32], strides = [1, 1]} : vector<32x32xbf16> to vector<8x32xbf16>
    %cst_41 = arith.constant dense<0.000000e+00> : vector<8x32xf32>
    %106 = tpu.matmul %104, %105, %cst_41 {dimension_numbers = #tpu.dot_dimension_numbers<[1], [0], [0], [1], [0, 0, 1, 1], [], []>} : vector<8x8xbf16>, vector<8x32xbf16>, vector<8x32xf32> -> vector<8x32xf32>
    %107 = arith.addf %86, %106 : vector<8x32xf32>
    %108 = vector.shape_cast %107 : vector<8x32xf32> to vector<1x8x32xf32>
    %109 = arith.addf %0, %108 : vector<1x8x32xf32>
    %c0_42 = arith.constant 0 : index
    %c0_43 = arith.constant 0 : index
    %c0_44 = arith.constant 0 : index
    %110 = vector.load %arg8[%c0_42, %c0_43, %c0_44] : memref<2x1x32xf32, #tpu.memory_space<vmem>>, vector<1x1x32xf32>
    %111 = vector.shape_cast %110 : vector<1x1x32xf32> to vector<1x32xf32>
    %112 = vector.shape_cast %111 : vector<1x32xf32> to vector<1x1x32xf32>
    %113 = vector.broadcast %112 : vector<1x1x32xf32> to vector<1x8x32xf32>
    %114 = arith.addf %109, %113 : vector<1x8x32xf32>
    %115 = vector.extract_strided_slice %2 {offsets = [0, 0, 0], sizes = [1, 1, 32], strides = [1, 1, 1]} : vector<1x6x32xf32> to vector<1x1x32xf32>
    %116 = vector.shape_cast %115 : vector<1x1x32xf32> to vector<1x32xf32>
    %117 = vector.shape_cast %116 : vector<1x32xf32> to vector<1x1x32xf32>
    %118 = vector.extract_strided_slice %3 {offsets = [0, 0, 0], sizes = [1, 1, 32], strides = [1, 1, 1]} : vector<1x6x32xf32> to vector<1x1x32xf32>
    %119 = vector.shape_cast %118 : vector<1x1x32xf32> to vector<1x32xf32>
    %120 = vector.shape_cast %119 : vector<1x32xf32> to vector<1x1x32xf32>
    %cst_45 = arith.constant dense<0.000000e+00> : vector<1x8xf32>
    %121 = vector.multi_reduction <add>, %114, %cst_45 [2] : vector<1x8x32xf32> to vector<1x8xf32>
    %122 = vector.shape_cast %121 : vector<1x8xf32> to vector<1x8x1xf32>
    %cst_46 = arith.constant 3.200000e+01 : f32
    %123 = vector.broadcast %cst_46 : f32 to vector<1x8x1xf32>
    %124 = arith.divf %122, %123 : vector<1x8x1xf32>
    %125 = vector.broadcast %124 : vector<1x8x1xf32> to vector<1x8x32xf32>
    %126 = arith.subf %114, %125 : vector<1x8x32xf32>
    %127 = arith.mulf %126, %126 : vector<1x8x32xf32>
    %cst_47 = arith.constant dense<0.000000e+00> : vector<1x8xf32>
    %128 = vector.multi_reduction <add>, %127, %cst_47 [2] : vector<1x8x32xf32> to vector<1x8xf32>
    %129 = vector.shape_cast %128 : vector<1x8xf32> to vector<1x8x1xf32>
    %cst_48 = arith.constant 3.200000e+01 : f32
    %130 = vector.broadcast %cst_48 : f32 to vector<1x8x1xf32>
    %131 = arith.divf %129, %130 : vector<1x8x1xf32>
    %132 = vector.broadcast %124 : vector<1x8x1xf32> to vector<1x8x32xf32>
    %133 = arith.subf %114, %132 : vector<1x8x32xf32>
    %cst_49 = arith.constant 9.99999974E-6 : f32
    %134 = vector.broadcast %cst_49 : f32 to vector<1x8x1xf32>
    %135 = arith.addf %131, %134 : vector<1x8x1xf32>
    %136 = math.rsqrt %135 : vector<1x8x1xf32>
    %137 = vector.broadcast %136 : vector<1x8x1xf32> to vector<1x8x32xf32>
    %138 = arith.mulf %133, %137 : vector<1x8x32xf32>
    %139 = vector.broadcast %117 : vector<1x1x32xf32> to vector<1x8x32xf32>
    %140 = arith.mulf %139, %138 : vector<1x8x32xf32>
    %141 = vector.broadcast %120 : vector<1x1x32xf32> to vector<1x8x32xf32>
    %142 = arith.addf %140, %141 : vector<1x8x32xf32>
    %143 = vector.shape_cast %1 : vector<1x12x32xf32> to vector<12x32xf32>
    %144 = arith.truncf %143 : vector<12x32xf32> to vector<12x32xbf16>
    %c0_50 = arith.constant 0 : index
    %c0_51 = arith.constant 0 : index
    %c0_52 = arith.constant 0 : index
    %145 = vector.load %arg11[%c0_50, %c0_51, %c0_52] : memref<2x32x64xbf16, #tpu.memory_space<vmem>>, vector<1x32x64xbf16>
    %146 = vector.shape_cast %145 : vector<1x32x64xbf16> to vector<32x64xbf16>
    %cst_53 = arith.constant dense<0.000000e+00> : vector<12x64xf32>
    %147 = tpu.matmul %144, %146, %cst_53 {dimension_numbers = #tpu.dot_dimension_numbers<[1], [0], [0], [1], [0, 0, 1, 1], [], []>} : vector<12x32xbf16>, vector<32x64xbf16>, vector<12x64xf32> -> vector<12x64xf32>
    %c0_54 = arith.constant 0 : index
    %c0_55 = arith.constant 0 : index
    %c0_56 = arith.constant 0 : index
    %148 = vector.load %arg12[%c0_54, %c0_55, %c0_56] : memref<2x1x64xf32, #tpu.memory_space<vmem>>, vector<1x1x64xf32>
    %149 = vector.shape_cast %148 : vector<1x1x64xf32> to vector<1x64xf32>
    %150 = vector.broadcast %149 : vector<1x64xf32> to vector<12x64xf32>
    %151 = arith.addf %147, %150 : vector<12x64xf32>
    %152 = vector.shape_cast %142 : vector<1x8x32xf32> to vector<8x32xf32>
    %153 = arith.truncf %152 : vector<8x32xf32> to vector<8x32xbf16>
    %c0_57 = arith.constant 0 : index
    %c0_58 = arith.constant 0 : index
    %c0_59 = arith.constant 0 : index
    %154 = vector.load %arg9[%c0_57, %c0_58, %c0_59] : memref<2x32x32xbf16, #tpu.memory_space<vmem>>, vector<1x32x32xbf16>
    %155 = vector.shape_cast %154 : vector<1x32x32xbf16> to vector<32x32xbf16>
    %cst_60 = arith.constant dense<0.000000e+00> : vector<8x32xf32>
    %156 = tpu.matmul %153, %155, %cst_60 {dimension_numbers = #tpu.dot_dimension_numbers<[1], [0], [0], [1], [0, 0, 1, 1], [], []>} : vector<8x32xbf16>, vector<32x32xbf16>, vector<8x32xf32> -> vector<8x32xf32>
    %c0_61 = arith.constant 0 : index
    %c0_62 = arith.constant 0 : index
    %c0_63 = arith.constant 0 : index
    %157 = vector.load %arg10[%c0_61, %c0_62, %c0_63] : memref<2x1x32xf32, #tpu.memory_space<vmem>>, vector<1x1x32xf32>
    %158 = vector.shape_cast %157 : vector<1x1x32xf32> to vector<1x32xf32>
    %159 = vector.broadcast %158 : vector<1x32xf32> to vector<8x32xf32>
    %160 = arith.addf %156, %159 : vector<8x32xf32>
    %cst_64 = arith.constant 0.353553385 : f32
    %161 = vector.broadcast %cst_64 : f32 to vector<8x32xf32>
    %162 = arith.mulf %160, %161 : vector<8x32xf32>
    %163 = vector.shape_cast %162 : vector<8x32xf32> to vector<1x8x32xf32>
    %164 = vector.extract_strided_slice %151 {offsets = [0, 0], sizes = [12, 32], strides = [1, 1]} : vector<12x64xf32> to vector<12x32xf32>
    %165 = vector.shape_cast %164 : vector<12x32xf32> to vector<1x12x32xf32>
    %166 = vector.extract_strided_slice %151 {offsets = [0, 32], sizes = [12, 32], strides = [1, 1]} : vector<12x64xf32> to vector<12x32xf32>
    %167 = vector.shape_cast %166 : vector<12x32xf32> to vector<1x12x32xf32>
    %c0_65 = arith.constant 0 : index
    %c0_66 = arith.constant 0 : index
    %c0_67 = arith.constant 0 : index
    %168 = vector.load %arg13[%c0_65, %c0_66, %c0_67] : memref<2x32x32xbf16, #tpu.memory_space<vmem>>, vector<1x32x32xbf16>
    %169 = vector.shape_cast %168 : vector<1x32x32xbf16> to vector<32x32xbf16>
    %cst_68 = arith.constant 0.000000e+00 : f32
    %170 = vector.broadcast %cst_68 : f32 to vector<8x32xf32>
    %171 = vector.extract_strided_slice %163 {offsets = [0, 0, 0], sizes = [1, 8, 8], strides = [1, 1, 1]} : vector<1x8x32xf32> to vector<1x8x8xf32>
    %172 = vector.shape_cast %171 : vector<1x8x8xf32> to vector<8x8xf32>
    %173 = vector.extract_strided_slice %165 {offsets = [0, 0, 0], sizes = [1, 12, 8], strides = [1, 1, 1]} : vector<1x12x32xf32> to vector<1x12x8xf32>
    %174 = vector.shape_cast %173 : vector<1x12x8xf32> to vector<12x8xf32>
    %175 = vector.extract_strided_slice %167 {offsets = [0, 0, 0], sizes = [1, 12, 8], strides = [1, 1, 1]} : vector<1x12x32xf32> to vector<1x12x8xf32>
    %176 = vector.shape_cast %175 : vector<1x12x8xf32> to vector<12x8xf32>
    %cst_69 = arith.constant dense<0.000000e+00> : vector<8x12xf32>
    %177 = tpu.matmul %172, %174, %cst_69 {dimension_numbers = #tpu.dot_dimension_numbers<[1], [1], [0], [0], [0, 0, 1, 0], [], []>} : vector<8x8xf32>, vector<12x8xf32>, vector<8x12xf32> -> vector<8x12xf32>
    %cst_70 = arith.constant dense<0xFF800000> : vector<8xf32>
    %178 = vector.multi_reduction <maximumf>, %177, %cst_70 [1] : vector<8x12xf32> to vector<8xf32>
    %179 = vector.shape_cast %178 : vector<8xf32> to vector<8x1xf32>
    %180 = vector.broadcast %179 : vector<8x1xf32> to vector<8x12xf32>
    %181 = arith.subf %177, %180 : vector<8x12xf32>
    %182 = math.exp %181 : vector<8x12xf32>
    %cst_71 = arith.constant dense<0.000000e+00> : vector<8xf32>
    %183 = vector.multi_reduction <add>, %182, %cst_71 [1] : vector<8x12xf32> to vector<8xf32>
    %184 = vector.shape_cast %183 : vector<8xf32> to vector<8x1xf32>
    %185 = vector.broadcast %184 : vector<8x1xf32> to vector<8x12xf32>
    %186 = arith.divf %182, %185 : vector<8x12xf32>
    %cst_72 = arith.constant dense<0.000000e+00> : vector<8x8xf32>
    %187 = tpu.matmul %186, %176, %cst_72 {dimension_numbers = #tpu.dot_dimension_numbers<[1], [0], [0], [1], [0, 0, 1, 1], [], []>} : vector<8x12xf32>, vector<12x8xf32>, vector<8x8xf32> -> vector<8x8xf32>
    %188 = arith.truncf %187 : vector<8x8xf32> to vector<8x8xbf16>
    %189 = vector.extract_strided_slice %169 {offsets = [0, 0], sizes = [8, 32], strides = [1, 1]} : vector<32x32xbf16> to vector<8x32xbf16>
    %cst_73 = arith.constant dense<0.000000e+00> : vector<8x32xf32>
    %190 = tpu.matmul %188, %189, %cst_73 {dimension_numbers = #tpu.dot_dimension_numbers<[1], [0], [0], [1], [0, 0, 1, 1], [], []>} : vector<8x8xbf16>, vector<8x32xbf16>, vector<8x32xf32> -> vector<8x32xf32>
    %191 = arith.addf %170, %190 : vector<8x32xf32>
    %192 = vector.extract_strided_slice %163 {offsets = [0, 0, 8], sizes = [1, 8, 8], strides = [1, 1, 1]} : vector<1x8x32xf32> to vector<1x8x8xf32>
    %193 = vector.shape_cast %192 : vector<1x8x8xf32> to vector<8x8xf32>
    %194 = vector.extract_strided_slice %165 {offsets = [0, 0, 8], sizes = [1, 12, 8], strides = [1, 1, 1]} : vector<1x12x32xf32> to vector<1x12x8xf32>
    %195 = vector.shape_cast %194 : vector<1x12x8xf32> to vector<12x8xf32>
    %196 = vector.extract_strided_slice %167 {offsets = [0, 0, 8], sizes = [1, 12, 8], strides = [1, 1, 1]} : vector<1x12x32xf32> to vector<1x12x8xf32>
    %197 = vector.shape_cast %196 : vector<1x12x8xf32> to vector<12x8xf32>
    %cst_74 = arith.constant dense<0.000000e+00> : vector<8x12xf32>
    %198 = tpu.matmul %193, %195, %cst_74 {dimension_numbers = #tpu.dot_dimension_numbers<[1], [1], [0], [0], [0, 0, 1, 0], [], []>} : vector<8x8xf32>, vector<12x8xf32>, vector<8x12xf32> -> vector<8x12xf32>
    %cst_75 = arith.constant dense<0xFF800000> : vector<8xf32>
    %199 = vector.multi_reduction <maximumf>, %198, %cst_75 [1] : vector<8x12xf32> to vector<8xf32>
    %200 = vector.shape_cast %199 : vector<8xf32> to vector<8x1xf32>
    %201 = vector.broadcast %200 : vector<8x1xf32> to vector<8x12xf32>
    %202 = arith.subf %198, %201 : vector<8x12xf32>
    %203 = math.exp %202 : vector<8x12xf32>
    %cst_76 = arith.constant dense<0.000000e+00> : vector<8xf32>
    %204 = vector.multi_reduction <add>, %203, %cst_76 [1] : vector<8x12xf32> to vector<8xf32>
    %205 = vector.shape_cast %204 : vector<8xf32> to vector<8x1xf32>
    %206 = vector.broadcast %205 : vector<8x1xf32> to vector<8x12xf32>
    %207 = arith.divf %203, %206 : vector<8x12xf32>
    %cst_77 = arith.constant dense<0.000000e+00> : vector<8x8xf32>
    %208 = tpu.matmul %207, %197, %cst_77 {dimension_numbers = #tpu.dot_dimension_numbers<[1], [0], [0], [1], [0, 0, 1, 1], [], []>} : vector<8x12xf32>, vector<12x8xf32>, vector<8x8xf32> -> vector<8x8xf32>
    %209 = arith.truncf %208 : vector<8x8xf32> to vector<8x8xbf16>
    %210 = vector.extract_strided_slice %169 {offsets = [8, 0], sizes = [8, 32], strides = [1, 1]} : vector<32x32xbf16> to vector<8x32xbf16>
    %cst_78 = arith.constant dense<0.000000e+00> : vector<8x32xf32>
    %211 = tpu.matmul %209, %210, %cst_78 {dimension_numbers = #tpu.dot_dimension_numbers<[1], [0], [0], [1], [0, 0, 1, 1], [], []>} : vector<8x8xbf16>, vector<8x32xbf16>, vector<8x32xf32> -> vector<8x32xf32>
    %212 = arith.addf %191, %211 : vector<8x32xf32>
    %213 = vector.extract_strided_slice %163 {offsets = [0, 0, 16], sizes = [1, 8, 8], strides = [1, 1, 1]} : vector<1x8x32xf32> to vector<1x8x8xf32>
    %214 = vector.shape_cast %213 : vector<1x8x8xf32> to vector<8x8xf32>
    %215 = vector.extract_strided_slice %165 {offsets = [0, 0, 16], sizes = [1, 12, 8], strides = [1, 1, 1]} : vector<1x12x32xf32> to vector<1x12x8xf32>
    %216 = vector.shape_cast %215 : vector<1x12x8xf32> to vector<12x8xf32>
    %217 = vector.extract_strided_slice %167 {offsets = [0, 0, 16], sizes = [1, 12, 8], strides = [1, 1, 1]} : vector<1x12x32xf32> to vector<1x12x8xf32>
    %218 = vector.shape_cast %217 : vector<1x12x8xf32> to vector<12x8xf32>
    %cst_79 = arith.constant dense<0.000000e+00> : vector<8x12xf32>
    %219 = tpu.matmul %214, %216, %cst_79 {dimension_numbers = #tpu.dot_dimension_numbers<[1], [1], [0], [0], [0, 0, 1, 0], [], []>} : vector<8x8xf32>, vector<12x8xf32>, vector<8x12xf32> -> vector<8x12xf32>
    %cst_80 = arith.constant dense<0xFF800000> : vector<8xf32>
    %220 = vector.multi_reduction <maximumf>, %219, %cst_80 [1] : vector<8x12xf32> to vector<8xf32>
    %221 = vector.shape_cast %220 : vector<8xf32> to vector<8x1xf32>
    %222 = vector.broadcast %221 : vector<8x1xf32> to vector<8x12xf32>
    %223 = arith.subf %219, %222 : vector<8x12xf32>
    %224 = math.exp %223 : vector<8x12xf32>
    %cst_81 = arith.constant dense<0.000000e+00> : vector<8xf32>
    %225 = vector.multi_reduction <add>, %224, %cst_81 [1] : vector<8x12xf32> to vector<8xf32>
    %226 = vector.shape_cast %225 : vector<8xf32> to vector<8x1xf32>
    %227 = vector.broadcast %226 : vector<8x1xf32> to vector<8x12xf32>
    %228 = arith.divf %224, %227 : vector<8x12xf32>
    %cst_82 = arith.constant dense<0.000000e+00> : vector<8x8xf32>
    %229 = tpu.matmul %228, %218, %cst_82 {dimension_numbers = #tpu.dot_dimension_numbers<[1], [0], [0], [1], [0, 0, 1, 1], [], []>} : vector<8x12xf32>, vector<12x8xf32>, vector<8x8xf32> -> vector<8x8xf32>
    %230 = arith.truncf %229 : vector<8x8xf32> to vector<8x8xbf16>
    %231 = vector.extract_strided_slice %169 {offsets = [16, 0], sizes = [8, 32], strides = [1, 1]} : vector<32x32xbf16> to vector<8x32xbf16>
    %cst_83 = arith.constant dense<0.000000e+00> : vector<8x32xf32>
    %232 = tpu.matmul %230, %231, %cst_83 {dimension_numbers = #tpu.dot_dimension_numbers<[1], [0], [0], [1], [0, 0, 1, 1], [], []>} : vector<8x8xbf16>, vector<8x32xbf16>, vector<8x32xf32> -> vector<8x32xf32>
    %233 = arith.addf %212, %232 : vector<8x32xf32>
    %234 = vector.extract_strided_slice %163 {offsets = [0, 0, 24], sizes = [1, 8, 8], strides = [1, 1, 1]} : vector<1x8x32xf32> to vector<1x8x8xf32>
    %235 = vector.shape_cast %234 : vector<1x8x8xf32> to vector<8x8xf32>
    %236 = vector.extract_strided_slice %165 {offsets = [0, 0, 24], sizes = [1, 12, 8], strides = [1, 1, 1]} : vector<1x12x32xf32> to vector<1x12x8xf32>
    %237 = vector.shape_cast %236 : vector<1x12x8xf32> to vector<12x8xf32>
    %238 = vector.extract_strided_slice %167 {offsets = [0, 0, 24], sizes = [1, 12, 8], strides = [1, 1, 1]} : vector<1x12x32xf32> to vector<1x12x8xf32>
    %239 = vector.shape_cast %238 : vector<1x12x8xf32> to vector<12x8xf32>
    %cst_84 = arith.constant dense<0.000000e+00> : vector<8x12xf32>
    %240 = tpu.matmul %235, %237, %cst_84 {dimension_numbers = #tpu.dot_dimension_numbers<[1], [1], [0], [0], [0, 0, 1, 0], [], []>} : vector<8x8xf32>, vector<12x8xf32>, vector<8x12xf32> -> vector<8x12xf32>
    %cst_85 = arith.constant dense<0xFF800000> : vector<8xf32>
    %241 = vector.multi_reduction <maximumf>, %240, %cst_85 [1] : vector<8x12xf32> to vector<8xf32>
    %242 = vector.shape_cast %241 : vector<8xf32> to vector<8x1xf32>
    %243 = vector.broadcast %242 : vector<8x1xf32> to vector<8x12xf32>
    %244 = arith.subf %240, %243 : vector<8x12xf32>
    %245 = math.exp %244 : vector<8x12xf32>
    %cst_86 = arith.constant dense<0.000000e+00> : vector<8xf32>
    %246 = vector.multi_reduction <add>, %245, %cst_86 [1] : vector<8x12xf32> to vector<8xf32>
    %247 = vector.shape_cast %246 : vector<8xf32> to vector<8x1xf32>
    %248 = vector.broadcast %247 : vector<8x1xf32> to vector<8x12xf32>
    %249 = arith.divf %245, %248 : vector<8x12xf32>
    %cst_87 = arith.constant dense<0.000000e+00> : vector<8x8xf32>
    %250 = tpu.matmul %249, %239, %cst_87 {dimension_numbers = #tpu.dot_dimension_numbers<[1], [0], [0], [1], [0, 0, 1, 1], [], []>} : vector<8x12xf32>, vector<12x8xf32>, vector<8x8xf32> -> vector<8x8xf32>
    %251 = arith.truncf %250 : vector<8x8xf32> to vector<8x8xbf16>
    %252 = vector.extract_strided_slice %169 {offsets = [24, 0], sizes = [8, 32], strides = [1, 1]} : vector<32x32xbf16> to vector<8x32xbf16>
    %cst_88 = arith.constant dense<0.000000e+00> : vector<8x32xf32>
    %253 = tpu.matmul %251, %252, %cst_88 {dimension_numbers = #tpu.dot_dimension_numbers<[1], [0], [0], [1], [0, 0, 1, 1], [], []>} : vector<8x8xbf16>, vector<8x32xbf16>, vector<8x32xf32> -> vector<8x32xf32>
    %254 = arith.addf %233, %253 : vector<8x32xf32>
    %255 = vector.shape_cast %254 : vector<8x32xf32> to vector<1x8x32xf32>
    %256 = arith.addf %142, %255 : vector<1x8x32xf32>
    %c0_89 = arith.constant 0 : index
    %c0_90 = arith.constant 0 : index
    %c0_91 = arith.constant 0 : index
    %257 = vector.load %arg14[%c0_89, %c0_90, %c0_91] : memref<2x1x32xf32, #tpu.memory_space<vmem>>, vector<1x1x32xf32>
    %258 = vector.shape_cast %257 : vector<1x1x32xf32> to vector<1x32xf32>
    %259 = vector.shape_cast %258 : vector<1x32xf32> to vector<1x1x32xf32>
    %260 = vector.broadcast %259 : vector<1x1x32xf32> to vector<1x8x32xf32>
    %261 = arith.addf %256, %260 : vector<1x8x32xf32>
    %262 = vector.extract_strided_slice %2 {offsets = [0, 1, 0], sizes = [1, 1, 32], strides = [1, 1, 1]} : vector<1x6x32xf32> to vector<1x1x32xf32>
    %263 = vector.shape_cast %262 : vector<1x1x32xf32> to vector<1x32xf32>
    %264 = vector.shape_cast %263 : vector<1x32xf32> to vector<1x1x32xf32>
    %265 = vector.extract_strided_slice %3 {offsets = [0, 1, 0], sizes = [1, 1, 32], strides = [1, 1, 1]} : vector<1x6x32xf32> to vector<1x1x32xf32>
    %266 = vector.shape_cast %265 : vector<1x1x32xf32> to vector<1x32xf32>
    %267 = vector.shape_cast %266 : vector<1x32xf32> to vector<1x1x32xf32>
    %cst_92 = arith.constant dense<0.000000e+00> : vector<1x8xf32>
    %268 = vector.multi_reduction <add>, %261, %cst_92 [2] : vector<1x8x32xf32> to vector<1x8xf32>
    %269 = vector.shape_cast %268 : vector<1x8xf32> to vector<1x8x1xf32>
    %cst_93 = arith.constant 3.200000e+01 : f32
    %270 = vector.broadcast %cst_93 : f32 to vector<1x8x1xf32>
    %271 = arith.divf %269, %270 : vector<1x8x1xf32>
    %272 = vector.broadcast %271 : vector<1x8x1xf32> to vector<1x8x32xf32>
    %273 = arith.subf %261, %272 : vector<1x8x32xf32>
    %274 = arith.mulf %273, %273 : vector<1x8x32xf32>
    %cst_94 = arith.constant dense<0.000000e+00> : vector<1x8xf32>
    %275 = vector.multi_reduction <add>, %274, %cst_94 [2] : vector<1x8x32xf32> to vector<1x8xf32>
    %276 = vector.shape_cast %275 : vector<1x8xf32> to vector<1x8x1xf32>
    %cst_95 = arith.constant 3.200000e+01 : f32
    %277 = vector.broadcast %cst_95 : f32 to vector<1x8x1xf32>
    %278 = arith.divf %276, %277 : vector<1x8x1xf32>
    %279 = vector.broadcast %271 : vector<1x8x1xf32> to vector<1x8x32xf32>
    %280 = arith.subf %261, %279 : vector<1x8x32xf32>
    %cst_96 = arith.constant 9.99999974E-6 : f32
    %281 = vector.broadcast %cst_96 : f32 to vector<1x8x1xf32>
    %282 = arith.addf %278, %281 : vector<1x8x1xf32>
    %283 = math.rsqrt %282 : vector<1x8x1xf32>
    %284 = vector.broadcast %283 : vector<1x8x1xf32> to vector<1x8x32xf32>
    %285 = arith.mulf %280, %284 : vector<1x8x32xf32>
    %286 = vector.broadcast %264 : vector<1x1x32xf32> to vector<1x8x32xf32>
    %287 = arith.mulf %286, %285 : vector<1x8x32xf32>
    %288 = vector.broadcast %267 : vector<1x1x32xf32> to vector<1x8x32xf32>
    %289 = arith.addf %287, %288 : vector<1x8x32xf32>
    %290 = vector.shape_cast %289 : vector<1x8x32xf32> to vector<8x32xf32>
    %291 = arith.truncf %290 : vector<8x32xf32> to vector<8x32xbf16>
    %c0_97 = arith.constant 0 : index
    %c0_98 = arith.constant 0 : index
    %c0_99 = arith.constant 0 : index
    %292 = vector.load %arg15[%c0_97, %c0_98, %c0_99] : memref<2x32x64xbf16, #tpu.memory_space<vmem>>, vector<1x32x64xbf16>
    %293 = vector.shape_cast %292 : vector<1x32x64xbf16> to vector<32x64xbf16>
    %cst_100 = arith.constant dense<0.000000e+00> : vector<8x64xf32>
    %294 = tpu.matmul %291, %293, %cst_100 {dimension_numbers = #tpu.dot_dimension_numbers<[1], [0], [0], [1], [0, 0, 1, 1], [], []>} : vector<8x32xbf16>, vector<32x64xbf16>, vector<8x64xf32> -> vector<8x64xf32>
    %c0_101 = arith.constant 0 : index
    %c0_102 = arith.constant 0 : index
    %c0_103 = arith.constant 0 : index
    %295 = vector.load %arg16[%c0_101, %c0_102, %c0_103] : memref<2x1x64xf32, #tpu.memory_space<vmem>>, vector<1x1x64xf32>
    %296 = vector.shape_cast %295 : vector<1x1x64xf32> to vector<1x64xf32>
    %297 = vector.broadcast %296 : vector<1x64xf32> to vector<8x64xf32>
    %298 = arith.addf %294, %297 : vector<8x64xf32>
    %cst_104 = arith.constant 5.000000e-01 : f32
    %299 = vector.broadcast %cst_104 : f32 to vector<8x64xf32>
    %300 = arith.mulf %299, %298 : vector<8x64xf32>
    %cst_105 = arith.constant 0.707106769 : f32
    %301 = vector.broadcast %cst_105 : f32 to vector<8x64xf32>
    %302 = arith.mulf %298, %301 : vector<8x64xf32>
    %303 = math.erf %302 : vector<8x64xf32>
    %cst_106 = arith.constant 1.000000e+00 : f32
    %304 = vector.broadcast %cst_106 : f32 to vector<8x64xf32>
    %305 = arith.addf %304, %303 : vector<8x64xf32>
    %306 = arith.mulf %300, %305 : vector<8x64xf32>
    %307 = arith.truncf %306 : vector<8x64xf32> to vector<8x64xbf16>
    %c0_107 = arith.constant 0 : index
    %c0_108 = arith.constant 0 : index
    %c0_109 = arith.constant 0 : index
    %308 = vector.load %arg17[%c0_107, %c0_108, %c0_109] : memref<2x64x32xbf16, #tpu.memory_space<vmem>>, vector<1x64x32xbf16>
    %309 = vector.shape_cast %308 : vector<1x64x32xbf16> to vector<64x32xbf16>
    %cst_110 = arith.constant dense<0.000000e+00> : vector<8x32xf32>
    %310 = tpu.matmul %307, %309, %cst_110 {dimension_numbers = #tpu.dot_dimension_numbers<[1], [0], [0], [1], [0, 0, 1, 1], [], []>} : vector<8x64xbf16>, vector<64x32xbf16>, vector<8x32xf32> -> vector<8x32xf32>
    %c0_111 = arith.constant 0 : index
    %c0_112 = arith.constant 0 : index
    %c0_113 = arith.constant 0 : index
    %311 = vector.load %arg18[%c0_111, %c0_112, %c0_113] : memref<2x1x32xf32, #tpu.memory_space<vmem>>, vector<1x1x32xf32>
    %312 = vector.shape_cast %311 : vector<1x1x32xf32> to vector<1x32xf32>
    %313 = vector.broadcast %312 : vector<1x32xf32> to vector<8x32xf32>
    %314 = arith.addf %310, %313 : vector<8x32xf32>
    %315 = vector.shape_cast %314 : vector<8x32xf32> to vector<1x8x32xf32>
    %316 = arith.addf %289, %315 : vector<1x8x32xf32>
    %317 = vector.extract_strided_slice %2 {offsets = [0, 2, 0], sizes = [1, 1, 32], strides = [1, 1, 1]} : vector<1x6x32xf32> to vector<1x1x32xf32>
    %318 = vector.shape_cast %317 : vector<1x1x32xf32> to vector<1x32xf32>
    %319 = vector.shape_cast %318 : vector<1x32xf32> to vector<1x1x32xf32>
    %320 = vector.extract_strided_slice %3 {offsets = [0, 2, 0], sizes = [1, 1, 32], strides = [1, 1, 1]} : vector<1x6x32xf32> to vector<1x1x32xf32>
    %321 = vector.shape_cast %320 : vector<1x1x32xf32> to vector<1x32xf32>
    %322 = vector.shape_cast %321 : vector<1x32xf32> to vector<1x1x32xf32>
    %cst_114 = arith.constant dense<0.000000e+00> : vector<1x8xf32>
    %323 = vector.multi_reduction <add>, %316, %cst_114 [2] : vector<1x8x32xf32> to vector<1x8xf32>
    %324 = vector.shape_cast %323 : vector<1x8xf32> to vector<1x8x1xf32>
    %cst_115 = arith.constant 3.200000e+01 : f32
    %325 = vector.broadcast %cst_115 : f32 to vector<1x8x1xf32>
    %326 = arith.divf %324, %325 : vector<1x8x1xf32>
    %327 = vector.broadcast %326 : vector<1x8x1xf32> to vector<1x8x32xf32>
    %328 = arith.subf %316, %327 : vector<1x8x32xf32>
    %329 = arith.mulf %328, %328 : vector<1x8x32xf32>
    %cst_116 = arith.constant dense<0.000000e+00> : vector<1x8xf32>
    %330 = vector.multi_reduction <add>, %329, %cst_116 [2] : vector<1x8x32xf32> to vector<1x8xf32>
    %331 = vector.shape_cast %330 : vector<1x8xf32> to vector<1x8x1xf32>
    %cst_117 = arith.constant 3.200000e+01 : f32
    %332 = vector.broadcast %cst_117 : f32 to vector<1x8x1xf32>
    %333 = arith.divf %331, %332 : vector<1x8x1xf32>
    %334 = vector.broadcast %326 : vector<1x8x1xf32> to vector<1x8x32xf32>
    %335 = arith.subf %316, %334 : vector<1x8x32xf32>
    %cst_118 = arith.constant 9.99999974E-6 : f32
    %336 = vector.broadcast %cst_118 : f32 to vector<1x8x1xf32>
    %337 = arith.addf %333, %336 : vector<1x8x1xf32>
    %338 = math.rsqrt %337 : vector<1x8x1xf32>
    %339 = vector.broadcast %338 : vector<1x8x1xf32> to vector<1x8x32xf32>
    %340 = arith.mulf %335, %339 : vector<1x8x32xf32>
    %341 = vector.broadcast %319 : vector<1x1x32xf32> to vector<1x8x32xf32>
    %342 = arith.mulf %341, %340 : vector<1x8x32xf32>
    %343 = vector.broadcast %322 : vector<1x1x32xf32> to vector<1x8x32xf32>
    %344 = arith.addf %342, %343 : vector<1x8x32xf32>
    %345 = vector.shape_cast %344 : vector<1x8x32xf32> to vector<8x32xf32>
    %346 = arith.truncf %345 : vector<8x32xf32> to vector<8x32xbf16>
    %c1 = arith.constant 1 : index
    %c0_119 = arith.constant 0 : index
    %c0_120 = arith.constant 0 : index
    %347 = vector.load %arg5[%c1, %c0_119, %c0_120] : memref<2x32x96xbf16, #tpu.memory_space<vmem>>, vector<1x32x96xbf16>
    %348 = vector.shape_cast %347 : vector<1x32x96xbf16> to vector<32x96xbf16>
    %cst_121 = arith.constant dense<0.000000e+00> : vector<8x96xf32>
    %349 = tpu.matmul %346, %348, %cst_121 {dimension_numbers = #tpu.dot_dimension_numbers<[1], [0], [0], [1], [0, 0, 1, 1], [], []>} : vector<8x32xbf16>, vector<32x96xbf16>, vector<8x96xf32> -> vector<8x96xf32>
    %c1_122 = arith.constant 1 : index
    %c0_123 = arith.constant 0 : index
    %c0_124 = arith.constant 0 : index
    %350 = vector.load %arg6[%c1_122, %c0_123, %c0_124] : memref<2x1x96xf32, #tpu.memory_space<vmem>>, vector<1x1x96xf32>
    %351 = vector.shape_cast %350 : vector<1x1x96xf32> to vector<1x96xf32>
    %352 = vector.broadcast %351 : vector<1x96xf32> to vector<8x96xf32>
    %353 = arith.addf %349, %352 : vector<8x96xf32>
    %354 = vector.extract_strided_slice %353 {offsets = [0, 0], sizes = [8, 32], strides = [1, 1]} : vector<8x96xf32> to vector<8x32xf32>
    %cst_125 = arith.constant 0.353553385 : f32
    %355 = vector.broadcast %cst_125 : f32 to vector<8x32xf32>
    %356 = arith.mulf %354, %355 : vector<8x32xf32>
    %357 = vector.shape_cast %356 : vector<8x32xf32> to vector<1x8x32xf32>
    %358 = vector.extract_strided_slice %353 {offsets = [0, 32], sizes = [8, 32], strides = [1, 1]} : vector<8x96xf32> to vector<8x32xf32>
    %359 = vector.shape_cast %358 : vector<8x32xf32> to vector<1x8x32xf32>
    %360 = vector.extract_strided_slice %353 {offsets = [0, 64], sizes = [8, 32], strides = [1, 1]} : vector<8x96xf32> to vector<8x32xf32>
    %361 = vector.shape_cast %360 : vector<8x32xf32> to vector<1x8x32xf32>
    %c1_126 = arith.constant 1 : index
    %c0_127 = arith.constant 0 : index
    %c0_128 = arith.constant 0 : index
    %362 = vector.load %arg7[%c1_126, %c0_127, %c0_128] : memref<2x32x32xbf16, #tpu.memory_space<vmem>>, vector<1x32x32xbf16>
    %363 = vector.shape_cast %362 : vector<1x32x32xbf16> to vector<32x32xbf16>
    %cst_129 = arith.constant 0.000000e+00 : f32
    %364 = vector.broadcast %cst_129 : f32 to vector<8x32xf32>
    %365 = vector.extract_strided_slice %357 {offsets = [0, 0, 0], sizes = [1, 8, 8], strides = [1, 1, 1]} : vector<1x8x32xf32> to vector<1x8x8xf32>
    %366 = vector.shape_cast %365 : vector<1x8x8xf32> to vector<8x8xf32>
    %367 = vector.extract_strided_slice %359 {offsets = [0, 0, 0], sizes = [1, 8, 8], strides = [1, 1, 1]} : vector<1x8x32xf32> to vector<1x8x8xf32>
    %368 = vector.shape_cast %367 : vector<1x8x8xf32> to vector<8x8xf32>
    %369 = vector.extract_strided_slice %361 {offsets = [0, 0, 0], sizes = [1, 8, 8], strides = [1, 1, 1]} : vector<1x8x32xf32> to vector<1x8x8xf32>
    %370 = vector.shape_cast %369 : vector<1x8x8xf32> to vector<8x8xf32>
    %cst_130 = arith.constant dense<0.000000e+00> : vector<8x8xf32>
    %371 = tpu.matmul %366, %368, %cst_130 {dimension_numbers = #tpu.dot_dimension_numbers<[1], [1], [0], [0], [0, 0, 1, 0], [], []>} : vector<8x8xf32>, vector<8x8xf32>, vector<8x8xf32> -> vector<8x8xf32>
    %cst_131 = arith.constant dense<0xFF800000> : vector<8xf32>
    %372 = vector.multi_reduction <maximumf>, %371, %cst_131 [1] : vector<8x8xf32> to vector<8xf32>
    %373 = vector.shape_cast %372 : vector<8xf32> to vector<8x1xf32>
    %374 = vector.broadcast %373 : vector<8x1xf32> to vector<8x8xf32>
    %375 = arith.subf %371, %374 : vector<8x8xf32>
    %376 = math.exp %375 : vector<8x8xf32>
    %cst_132 = arith.constant dense<0.000000e+00> : vector<8xf32>
    %377 = vector.multi_reduction <add>, %376, %cst_132 [1] : vector<8x8xf32> to vector<8xf32>
    %378 = vector.shape_cast %377 : vector<8xf32> to vector<8x1xf32>
    %379 = vector.broadcast %378 : vector<8x1xf32> to vector<8x8xf32>
    %380 = arith.divf %376, %379 : vector<8x8xf32>
    %cst_133 = arith.constant dense<0.000000e+00> : vector<8x8xf32>
    %381 = tpu.matmul %380, %370, %cst_133 {dimension_numbers = #tpu.dot_dimension_numbers<[1], [0], [0], [1], [0, 0, 1, 1], [], []>} : vector<8x8xf32>, vector<8x8xf32>, vector<8x8xf32> -> vector<8x8xf32>
    %382 = arith.truncf %381 : vector<8x8xf32> to vector<8x8xbf16>
    %383 = vector.extract_strided_slice %363 {offsets = [0, 0], sizes = [8, 32], strides = [1, 1]} : vector<32x32xbf16> to vector<8x32xbf16>
    %cst_134 = arith.constant dense<0.000000e+00> : vector<8x32xf32>
    %384 = tpu.matmul %382, %383, %cst_134 {dimension_numbers = #tpu.dot_dimension_numbers<[1], [0], [0], [1], [0, 0, 1, 1], [], []>} : vector<8x8xbf16>, vector<8x32xbf16>, vector<8x32xf32> -> vector<8x32xf32>
    %385 = arith.addf %364, %384 : vector<8x32xf32>
    %386 = vector.extract_strided_slice %357 {offsets = [0, 0, 8], sizes = [1, 8, 8], strides = [1, 1, 1]} : vector<1x8x32xf32> to vector<1x8x8xf32>
    %387 = vector.shape_cast %386 : vector<1x8x8xf32> to vector<8x8xf32>
    %388 = vector.extract_strided_slice %359 {offsets = [0, 0, 8], sizes = [1, 8, 8], strides = [1, 1, 1]} : vector<1x8x32xf32> to vector<1x8x8xf32>
    %389 = vector.shape_cast %388 : vector<1x8x8xf32> to vector<8x8xf32>
    %390 = vector.extract_strided_slice %361 {offsets = [0, 0, 8], sizes = [1, 8, 8], strides = [1, 1, 1]} : vector<1x8x32xf32> to vector<1x8x8xf32>
    %391 = vector.shape_cast %390 : vector<1x8x8xf32> to vector<8x8xf32>
    %cst_135 = arith.constant dense<0.000000e+00> : vector<8x8xf32>
    %392 = tpu.matmul %387, %389, %cst_135 {dimension_numbers = #tpu.dot_dimension_numbers<[1], [1], [0], [0], [0, 0, 1, 0], [], []>} : vector<8x8xf32>, vector<8x8xf32>, vector<8x8xf32> -> vector<8x8xf32>
    %cst_136 = arith.constant dense<0xFF800000> : vector<8xf32>
    %393 = vector.multi_reduction <maximumf>, %392, %cst_136 [1] : vector<8x8xf32> to vector<8xf32>
    %394 = vector.shape_cast %393 : vector<8xf32> to vector<8x1xf32>
    %395 = vector.broadcast %394 : vector<8x1xf32> to vector<8x8xf32>
    %396 = arith.subf %392, %395 : vector<8x8xf32>
    %397 = math.exp %396 : vector<8x8xf32>
    %cst_137 = arith.constant dense<0.000000e+00> : vector<8xf32>
    %398 = vector.multi_reduction <add>, %397, %cst_137 [1] : vector<8x8xf32> to vector<8xf32>
    %399 = vector.shape_cast %398 : vector<8xf32> to vector<8x1xf32>
    %400 = vector.broadcast %399 : vector<8x1xf32> to vector<8x8xf32>
    %401 = arith.divf %397, %400 : vector<8x8xf32>
    %cst_138 = arith.constant dense<0.000000e+00> : vector<8x8xf32>
    %402 = tpu.matmul %401, %391, %cst_138 {dimension_numbers = #tpu.dot_dimension_numbers<[1], [0], [0], [1], [0, 0, 1, 1], [], []>} : vector<8x8xf32>, vector<8x8xf32>, vector<8x8xf32> -> vector<8x8xf32>
    %403 = arith.truncf %402 : vector<8x8xf32> to vector<8x8xbf16>
    %404 = vector.extract_strided_slice %363 {offsets = [8, 0], sizes = [8, 32], strides = [1, 1]} : vector<32x32xbf16> to vector<8x32xbf16>
    %cst_139 = arith.constant dense<0.000000e+00> : vector<8x32xf32>
    %405 = tpu.matmul %403, %404, %cst_139 {dimension_numbers = #tpu.dot_dimension_numbers<[1], [0], [0], [1], [0, 0, 1, 1], [], []>} : vector<8x8xbf16>, vector<8x32xbf16>, vector<8x32xf32> -> vector<8x32xf32>
    %406 = arith.addf %385, %405 : vector<8x32xf32>
    %407 = vector.extract_strided_slice %357 {offsets = [0, 0, 16], sizes = [1, 8, 8], strides = [1, 1, 1]} : vector<1x8x32xf32> to vector<1x8x8xf32>
    %408 = vector.shape_cast %407 : vector<1x8x8xf32> to vector<8x8xf32>
    %409 = vector.extract_strided_slice %359 {offsets = [0, 0, 16], sizes = [1, 8, 8], strides = [1, 1, 1]} : vector<1x8x32xf32> to vector<1x8x8xf32>
    %410 = vector.shape_cast %409 : vector<1x8x8xf32> to vector<8x8xf32>
    %411 = vector.extract_strided_slice %361 {offsets = [0, 0, 16], sizes = [1, 8, 8], strides = [1, 1, 1]} : vector<1x8x32xf32> to vector<1x8x8xf32>
    %412 = vector.shape_cast %411 : vector<1x8x8xf32> to vector<8x8xf32>
    %cst_140 = arith.constant dense<0.000000e+00> : vector<8x8xf32>
    %413 = tpu.matmul %408, %410, %cst_140 {dimension_numbers = #tpu.dot_dimension_numbers<[1], [1], [0], [0], [0, 0, 1, 0], [], []>} : vector<8x8xf32>, vector<8x8xf32>, vector<8x8xf32> -> vector<8x8xf32>
    %cst_141 = arith.constant dense<0xFF800000> : vector<8xf32>
    %414 = vector.multi_reduction <maximumf>, %413, %cst_141 [1] : vector<8x8xf32> to vector<8xf32>
    %415 = vector.shape_cast %414 : vector<8xf32> to vector<8x1xf32>
    %416 = vector.broadcast %415 : vector<8x1xf32> to vector<8x8xf32>
    %417 = arith.subf %413, %416 : vector<8x8xf32>
    %418 = math.exp %417 : vector<8x8xf32>
    %cst_142 = arith.constant dense<0.000000e+00> : vector<8xf32>
    %419 = vector.multi_reduction <add>, %418, %cst_142 [1] : vector<8x8xf32> to vector<8xf32>
    %420 = vector.shape_cast %419 : vector<8xf32> to vector<8x1xf32>
    %421 = vector.broadcast %420 : vector<8x1xf32> to vector<8x8xf32>
    %422 = arith.divf %418, %421 : vector<8x8xf32>
    %cst_143 = arith.constant dense<0.000000e+00> : vector<8x8xf32>
    %423 = tpu.matmul %422, %412, %cst_143 {dimension_numbers = #tpu.dot_dimension_numbers<[1], [0], [0], [1], [0, 0, 1, 1], [], []>} : vector<8x8xf32>, vector<8x8xf32>, vector<8x8xf32> -> vector<8x8xf32>
    %424 = arith.truncf %423 : vector<8x8xf32> to vector<8x8xbf16>
    %425 = vector.extract_strided_slice %363 {offsets = [16, 0], sizes = [8, 32], strides = [1, 1]} : vector<32x32xbf16> to vector<8x32xbf16>
    %cst_144 = arith.constant dense<0.000000e+00> : vector<8x32xf32>
    %426 = tpu.matmul %424, %425, %cst_144 {dimension_numbers = #tpu.dot_dimension_numbers<[1], [0], [0], [1], [0, 0, 1, 1], [], []>} : vector<8x8xbf16>, vector<8x32xbf16>, vector<8x32xf32> -> vector<8x32xf32>
    %427 = arith.addf %406, %426 : vector<8x32xf32>
    %428 = vector.extract_strided_slice %357 {offsets = [0, 0, 24], sizes = [1, 8, 8], strides = [1, 1, 1]} : vector<1x8x32xf32> to vector<1x8x8xf32>
    %429 = vector.shape_cast %428 : vector<1x8x8xf32> to vector<8x8xf32>
    %430 = vector.extract_strided_slice %359 {offsets = [0, 0, 24], sizes = [1, 8, 8], strides = [1, 1, 1]} : vector<1x8x32xf32> to vector<1x8x8xf32>
    %431 = vector.shape_cast %430 : vector<1x8x8xf32> to vector<8x8xf32>
    %432 = vector.extract_strided_slice %361 {offsets = [0, 0, 24], sizes = [1, 8, 8], strides = [1, 1, 1]} : vector<1x8x32xf32> to vector<1x8x8xf32>
    %433 = vector.shape_cast %432 : vector<1x8x8xf32> to vector<8x8xf32>
    %cst_145 = arith.constant dense<0.000000e+00> : vector<8x8xf32>
    %434 = tpu.matmul %429, %431, %cst_145 {dimension_numbers = #tpu.dot_dimension_numbers<[1], [1], [0], [0], [0, 0, 1, 0], [], []>} : vector<8x8xf32>, vector<8x8xf32>, vector<8x8xf32> -> vector<8x8xf32>
    %cst_146 = arith.constant dense<0xFF800000> : vector<8xf32>
    %435 = vector.multi_reduction <maximumf>, %434, %cst_146 [1] : vector<8x8xf32> to vector<8xf32>
    %436 = vector.shape_cast %435 : vector<8xf32> to vector<8x1xf32>
    %437 = vector.broadcast %436 : vector<8x1xf32> to vector<8x8xf32>
    %438 = arith.subf %434, %437 : vector<8x8xf32>
    %439 = math.exp %438 : vector<8x8xf32>
    %cst_147 = arith.constant dense<0.000000e+00> : vector<8xf32>
    %440 = vector.multi_reduction <add>, %439, %cst_147 [1] : vector<8x8xf32> to vector<8xf32>
    %441 = vector.shape_cast %440 : vector<8xf32> to vector<8x1xf32>
    %442 = vector.broadcast %441 : vector<8x1xf32> to vector<8x8xf32>
    %443 = arith.divf %439, %442 : vector<8x8xf32>
    %cst_148 = arith.constant dense<0.000000e+00> : vector<8x8xf32>
    %444 = tpu.matmul %443, %433, %cst_148 {dimension_numbers = #tpu.dot_dimension_numbers<[1], [0], [0], [1], [0, 0, 1, 1], [], []>} : vector<8x8xf32>, vector<8x8xf32>, vector<8x8xf32> -> vector<8x8xf32>
    %445 = arith.truncf %444 : vector<8x8xf32> to vector<8x8xbf16>
    %446 = vector.extract_strided_slice %363 {offsets = [24, 0], sizes = [8, 32], strides = [1, 1]} : vector<32x32xbf16> to vector<8x32xbf16>
    %cst_149 = arith.constant dense<0.000000e+00> : vector<8x32xf32>
    %447 = tpu.matmul %445, %446, %cst_149 {dimension_numbers = #tpu.dot_dimension_numbers<[1], [0], [0], [1], [0, 0, 1, 1], [], []>} : vector<8x8xbf16>, vector<8x32xbf16>, vector<8x32xf32> -> vector<8x32xf32>
    %448 = arith.addf %427, %447 : vector<8x32xf32>
    %449 = vector.shape_cast %448 : vector<8x32xf32> to vector<1x8x32xf32>
    %450 = arith.addf %344, %449 : vector<1x8x32xf32>
    %c1_150 = arith.constant 1 : index
    %c0_151 = arith.constant 0 : index
    %c0_152 = arith.constant 0 : index
    %451 = vector.load %arg8[%c1_150, %c0_151, %c0_152] : memref<2x1x32xf32, #tpu.memory_space<vmem>>, vector<1x1x32xf32>
    %452 = vector.shape_cast %451 : vector<1x1x32xf32> to vector<1x32xf32>
    %453 = vector.shape_cast %452 : vector<1x32xf32> to vector<1x1x32xf32>
    %454 = vector.broadcast %453 : vector<1x1x32xf32> to vector<1x8x32xf32>
    %455 = arith.addf %450, %454 : vector<1x8x32xf32>
    %456 = vector.extract_strided_slice %2 {offsets = [0, 3, 0], sizes = [1, 1, 32], strides = [1, 1, 1]} : vector<1x6x32xf32> to vector<1x1x32xf32>
    %457 = vector.shape_cast %456 : vector<1x1x32xf32> to vector<1x32xf32>
    %458 = vector.shape_cast %457 : vector<1x32xf32> to vector<1x1x32xf32>
    %459 = vector.extract_strided_slice %3 {offsets = [0, 3, 0], sizes = [1, 1, 32], strides = [1, 1, 1]} : vector<1x6x32xf32> to vector<1x1x32xf32>
    %460 = vector.shape_cast %459 : vector<1x1x32xf32> to vector<1x32xf32>
    %461 = vector.shape_cast %460 : vector<1x32xf32> to vector<1x1x32xf32>
    %cst_153 = arith.constant dense<0.000000e+00> : vector<1x8xf32>
    %462 = vector.multi_reduction <add>, %455, %cst_153 [2] : vector<1x8x32xf32> to vector<1x8xf32>
    %463 = vector.shape_cast %462 : vector<1x8xf32> to vector<1x8x1xf32>
    %cst_154 = arith.constant 3.200000e+01 : f32
    %464 = vector.broadcast %cst_154 : f32 to vector<1x8x1xf32>
    %465 = arith.divf %463, %464 : vector<1x8x1xf32>
    %466 = vector.broadcast %465 : vector<1x8x1xf32> to vector<1x8x32xf32>
    %467 = arith.subf %455, %466 : vector<1x8x32xf32>
    %468 = arith.mulf %467, %467 : vector<1x8x32xf32>
    %cst_155 = arith.constant dense<0.000000e+00> : vector<1x8xf32>
    %469 = vector.multi_reduction <add>, %468, %cst_155 [2] : vector<1x8x32xf32> to vector<1x8xf32>
    %470 = vector.shape_cast %469 : vector<1x8xf32> to vector<1x8x1xf32>
    %cst_156 = arith.constant 3.200000e+01 : f32
    %471 = vector.broadcast %cst_156 : f32 to vector<1x8x1xf32>
    %472 = arith.divf %470, %471 : vector<1x8x1xf32>
    %473 = vector.broadcast %465 : vector<1x8x1xf32> to vector<1x8x32xf32>
    %474 = arith.subf %455, %473 : vector<1x8x32xf32>
    %cst_157 = arith.constant 9.99999974E-6 : f32
    %475 = vector.broadcast %cst_157 : f32 to vector<1x8x1xf32>
    %476 = arith.addf %472, %475 : vector<1x8x1xf32>
    %477 = math.rsqrt %476 : vector<1x8x1xf32>
    %478 = vector.broadcast %477 : vector<1x8x1xf32> to vector<1x8x32xf32>
    %479 = arith.mulf %474, %478 : vector<1x8x32xf32>
    %480 = vector.broadcast %458 : vector<1x1x32xf32> to vector<1x8x32xf32>
    %481 = arith.mulf %480, %479 : vector<1x8x32xf32>
    %482 = vector.broadcast %461 : vector<1x1x32xf32> to vector<1x8x32xf32>
    %483 = arith.addf %481, %482 : vector<1x8x32xf32>
    %484 = vector.shape_cast %1 : vector<1x12x32xf32> to vector<12x32xf32>
    %485 = arith.truncf %484 : vector<12x32xf32> to vector<12x32xbf16>
    %c1_158 = arith.constant 1 : index
    %c0_159 = arith.constant 0 : index
    %c0_160 = arith.constant 0 : index
    %486 = vector.load %arg11[%c1_158, %c0_159, %c0_160] : memref<2x32x64xbf16, #tpu.memory_space<vmem>>, vector<1x32x64xbf16>
    %487 = vector.shape_cast %486 : vector<1x32x64xbf16> to vector<32x64xbf16>
    %cst_161 = arith.constant dense<0.000000e+00> : vector<12x64xf32>
    %488 = tpu.matmul %485, %487, %cst_161 {dimension_numbers = #tpu.dot_dimension_numbers<[1], [0], [0], [1], [0, 0, 1, 1], [], []>} : vector<12x32xbf16>, vector<32x64xbf16>, vector<12x64xf32> -> vector<12x64xf32>
    %c1_162 = arith.constant 1 : index
    %c0_163 = arith.constant 0 : index
    %c0_164 = arith.constant 0 : index
    %489 = vector.load %arg12[%c1_162, %c0_163, %c0_164] : memref<2x1x64xf32, #tpu.memory_space<vmem>>, vector<1x1x64xf32>
    %490 = vector.shape_cast %489 : vector<1x1x64xf32> to vector<1x64xf32>
    %491 = vector.broadcast %490 : vector<1x64xf32> to vector<12x64xf32>
    %492 = arith.addf %488, %491 : vector<12x64xf32>
    %493 = vector.shape_cast %483 : vector<1x8x32xf32> to vector<8x32xf32>
    %494 = arith.truncf %493 : vector<8x32xf32> to vector<8x32xbf16>
    %c1_165 = arith.constant 1 : index
    %c0_166 = arith.constant 0 : index
    %c0_167 = arith.constant 0 : index
    %495 = vector.load %arg9[%c1_165, %c0_166, %c0_167] : memref<2x32x32xbf16, #tpu.memory_space<vmem>>, vector<1x32x32xbf16>
    %496 = vector.shape_cast %495 : vector<1x32x32xbf16> to vector<32x32xbf16>
    %cst_168 = arith.constant dense<0.000000e+00> : vector<8x32xf32>
    %497 = tpu.matmul %494, %496, %cst_168 {dimension_numbers = #tpu.dot_dimension_numbers<[1], [0], [0], [1], [0, 0, 1, 1], [], []>} : vector<8x32xbf16>, vector<32x32xbf16>, vector<8x32xf32> -> vector<8x32xf32>
    %c1_169 = arith.constant 1 : index
    %c0_170 = arith.constant 0 : index
    %c0_171 = arith.constant 0 : index
    %498 = vector.load %arg10[%c1_169, %c0_170, %c0_171] : memref<2x1x32xf32, #tpu.memory_space<vmem>>, vector<1x1x32xf32>
    %499 = vector.shape_cast %498 : vector<1x1x32xf32> to vector<1x32xf32>
    %500 = vector.broadcast %499 : vector<1x32xf32> to vector<8x32xf32>
    %501 = arith.addf %497, %500 : vector<8x32xf32>
    %cst_172 = arith.constant 0.353553385 : f32
    %502 = vector.broadcast %cst_172 : f32 to vector<8x32xf32>
    %503 = arith.mulf %501, %502 : vector<8x32xf32>
    %504 = vector.shape_cast %503 : vector<8x32xf32> to vector<1x8x32xf32>
    %505 = vector.extract_strided_slice %492 {offsets = [0, 0], sizes = [12, 32], strides = [1, 1]} : vector<12x64xf32> to vector<12x32xf32>
    %506 = vector.shape_cast %505 : vector<12x32xf32> to vector<1x12x32xf32>
    %507 = vector.extract_strided_slice %492 {offsets = [0, 32], sizes = [12, 32], strides = [1, 1]} : vector<12x64xf32> to vector<12x32xf32>
    %508 = vector.shape_cast %507 : vector<12x32xf32> to vector<1x12x32xf32>
    %c1_173 = arith.constant 1 : index
    %c0_174 = arith.constant 0 : index
    %c0_175 = arith.constant 0 : index
    %509 = vector.load %arg13[%c1_173, %c0_174, %c0_175] : memref<2x32x32xbf16, #tpu.memory_space<vmem>>, vector<1x32x32xbf16>
    %510 = vector.shape_cast %509 : vector<1x32x32xbf16> to vector<32x32xbf16>
    %cst_176 = arith.constant 0.000000e+00 : f32
    %511 = vector.broadcast %cst_176 : f32 to vector<8x32xf32>
    %512 = vector.extract_strided_slice %504 {offsets = [0, 0, 0], sizes = [1, 8, 8], strides = [1, 1, 1]} : vector<1x8x32xf32> to vector<1x8x8xf32>
    %513 = vector.shape_cast %512 : vector<1x8x8xf32> to vector<8x8xf32>
    %514 = vector.extract_strided_slice %506 {offsets = [0, 0, 0], sizes = [1, 12, 8], strides = [1, 1, 1]} : vector<1x12x32xf32> to vector<1x12x8xf32>
    %515 = vector.shape_cast %514 : vector<1x12x8xf32> to vector<12x8xf32>
    %516 = vector.extract_strided_slice %508 {offsets = [0, 0, 0], sizes = [1, 12, 8], strides = [1, 1, 1]} : vector<1x12x32xf32> to vector<1x12x8xf32>
    %517 = vector.shape_cast %516 : vector<1x12x8xf32> to vector<12x8xf32>
    %cst_177 = arith.constant dense<0.000000e+00> : vector<8x12xf32>
    %518 = tpu.matmul %513, %515, %cst_177 {dimension_numbers = #tpu.dot_dimension_numbers<[1], [1], [0], [0], [0, 0, 1, 0], [], []>} : vector<8x8xf32>, vector<12x8xf32>, vector<8x12xf32> -> vector<8x12xf32>
    %cst_178 = arith.constant dense<0xFF800000> : vector<8xf32>
    %519 = vector.multi_reduction <maximumf>, %518, %cst_178 [1] : vector<8x12xf32> to vector<8xf32>
    %520 = vector.shape_cast %519 : vector<8xf32> to vector<8x1xf32>
    %521 = vector.broadcast %520 : vector<8x1xf32> to vector<8x12xf32>
    %522 = arith.subf %518, %521 : vector<8x12xf32>
    %523 = math.exp %522 : vector<8x12xf32>
    %cst_179 = arith.constant dense<0.000000e+00> : vector<8xf32>
    %524 = vector.multi_reduction <add>, %523, %cst_179 [1] : vector<8x12xf32> to vector<8xf32>
    %525 = vector.shape_cast %524 : vector<8xf32> to vector<8x1xf32>
    %526 = vector.broadcast %525 : vector<8x1xf32> to vector<8x12xf32>
    %527 = arith.divf %523, %526 : vector<8x12xf32>
    %cst_180 = arith.constant dense<0.000000e+00> : vector<8x8xf32>
    %528 = tpu.matmul %527, %517, %cst_180 {dimension_numbers = #tpu.dot_dimension_numbers<[1], [0], [0], [1], [0, 0, 1, 1], [], []>} : vector<8x12xf32>, vector<12x8xf32>, vector<8x8xf32> -> vector<8x8xf32>
    %529 = arith.truncf %528 : vector<8x8xf32> to vector<8x8xbf16>
    %530 = vector.extract_strided_slice %510 {offsets = [0, 0], sizes = [8, 32], strides = [1, 1]} : vector<32x32xbf16> to vector<8x32xbf16>
    %cst_181 = arith.constant dense<0.000000e+00> : vector<8x32xf32>
    %531 = tpu.matmul %529, %530, %cst_181 {dimension_numbers = #tpu.dot_dimension_numbers<[1], [0], [0], [1], [0, 0, 1, 1], [], []>} : vector<8x8xbf16>, vector<8x32xbf16>, vector<8x32xf32> -> vector<8x32xf32>
    %532 = arith.addf %511, %531 : vector<8x32xf32>
    %533 = vector.extract_strided_slice %504 {offsets = [0, 0, 8], sizes = [1, 8, 8], strides = [1, 1, 1]} : vector<1x8x32xf32> to vector<1x8x8xf32>
    %534 = vector.shape_cast %533 : vector<1x8x8xf32> to vector<8x8xf32>
    %535 = vector.extract_strided_slice %506 {offsets = [0, 0, 8], sizes = [1, 12, 8], strides = [1, 1, 1]} : vector<1x12x32xf32> to vector<1x12x8xf32>
    %536 = vector.shape_cast %535 : vector<1x12x8xf32> to vector<12x8xf32>
    %537 = vector.extract_strided_slice %508 {offsets = [0, 0, 8], sizes = [1, 12, 8], strides = [1, 1, 1]} : vector<1x12x32xf32> to vector<1x12x8xf32>
    %538 = vector.shape_cast %537 : vector<1x12x8xf32> to vector<12x8xf32>
    %cst_182 = arith.constant dense<0.000000e+00> : vector<8x12xf32>
    %539 = tpu.matmul %534, %536, %cst_182 {dimension_numbers = #tpu.dot_dimension_numbers<[1], [1], [0], [0], [0, 0, 1, 0], [], []>} : vector<8x8xf32>, vector<12x8xf32>, vector<8x12xf32> -> vector<8x12xf32>
    %cst_183 = arith.constant dense<0xFF800000> : vector<8xf32>
    %540 = vector.multi_reduction <maximumf>, %539, %cst_183 [1] : vector<8x12xf32> to vector<8xf32>
    %541 = vector.shape_cast %540 : vector<8xf32> to vector<8x1xf32>
    %542 = vector.broadcast %541 : vector<8x1xf32> to vector<8x12xf32>
    %543 = arith.subf %539, %542 : vector<8x12xf32>
    %544 = math.exp %543 : vector<8x12xf32>
    %cst_184 = arith.constant dense<0.000000e+00> : vector<8xf32>
    %545 = vector.multi_reduction <add>, %544, %cst_184 [1] : vector<8x12xf32> to vector<8xf32>
    %546 = vector.shape_cast %545 : vector<8xf32> to vector<8x1xf32>
    %547 = vector.broadcast %546 : vector<8x1xf32> to vector<8x12xf32>
    %548 = arith.divf %544, %547 : vector<8x12xf32>
    %cst_185 = arith.constant dense<0.000000e+00> : vector<8x8xf32>
    %549 = tpu.matmul %548, %538, %cst_185 {dimension_numbers = #tpu.dot_dimension_numbers<[1], [0], [0], [1], [0, 0, 1, 1], [], []>} : vector<8x12xf32>, vector<12x8xf32>, vector<8x8xf32> -> vector<8x8xf32>
    %550 = arith.truncf %549 : vector<8x8xf32> to vector<8x8xbf16>
    %551 = vector.extract_strided_slice %510 {offsets = [8, 0], sizes = [8, 32], strides = [1, 1]} : vector<32x32xbf16> to vector<8x32xbf16>
    %cst_186 = arith.constant dense<0.000000e+00> : vector<8x32xf32>
    %552 = tpu.matmul %550, %551, %cst_186 {dimension_numbers = #tpu.dot_dimension_numbers<[1], [0], [0], [1], [0, 0, 1, 1], [], []>} : vector<8x8xbf16>, vector<8x32xbf16>, vector<8x32xf32> -> vector<8x32xf32>
    %553 = arith.addf %532, %552 : vector<8x32xf32>
    %554 = vector.extract_strided_slice %504 {offsets = [0, 0, 16], sizes = [1, 8, 8], strides = [1, 1, 1]} : vector<1x8x32xf32> to vector<1x8x8xf32>
    %555 = vector.shape_cast %554 : vector<1x8x8xf32> to vector<8x8xf32>
    %556 = vector.extract_strided_slice %506 {offsets = [0, 0, 16], sizes = [1, 12, 8], strides = [1, 1, 1]} : vector<1x12x32xf32> to vector<1x12x8xf32>
    %557 = vector.shape_cast %556 : vector<1x12x8xf32> to vector<12x8xf32>
    %558 = vector.extract_strided_slice %508 {offsets = [0, 0, 16], sizes = [1, 12, 8], strides = [1, 1, 1]} : vector<1x12x32xf32> to vector<1x12x8xf32>
    %559 = vector.shape_cast %558 : vector<1x12x8xf32> to vector<12x8xf32>
    %cst_187 = arith.constant dense<0.000000e+00> : vector<8x12xf32>
    %560 = tpu.matmul %555, %557, %cst_187 {dimension_numbers = #tpu.dot_dimension_numbers<[1], [1], [0], [0], [0, 0, 1, 0], [], []>} : vector<8x8xf32>, vector<12x8xf32>, vector<8x12xf32> -> vector<8x12xf32>
    %cst_188 = arith.constant dense<0xFF800000> : vector<8xf32>
    %561 = vector.multi_reduction <maximumf>, %560, %cst_188 [1] : vector<8x12xf32> to vector<8xf32>
    %562 = vector.shape_cast %561 : vector<8xf32> to vector<8x1xf32>
    %563 = vector.broadcast %562 : vector<8x1xf32> to vector<8x12xf32>
    %564 = arith.subf %560, %563 : vector<8x12xf32>
    %565 = math.exp %564 : vector<8x12xf32>
    %cst_189 = arith.constant dense<0.000000e+00> : vector<8xf32>
    %566 = vector.multi_reduction <add>, %565, %cst_189 [1] : vector<8x12xf32> to vector<8xf32>
    %567 = vector.shape_cast %566 : vector<8xf32> to vector<8x1xf32>
    %568 = vector.broadcast %567 : vector<8x1xf32> to vector<8x12xf32>
    %569 = arith.divf %565, %568 : vector<8x12xf32>
    %cst_190 = arith.constant dense<0.000000e+00> : vector<8x8xf32>
    %570 = tpu.matmul %569, %559, %cst_190 {dimension_numbers = #tpu.dot_dimension_numbers<[1], [0], [0], [1], [0, 0, 1, 1], [], []>} : vector<8x12xf32>, vector<12x8xf32>, vector<8x8xf32> -> vector<8x8xf32>
    %571 = arith.truncf %570 : vector<8x8xf32> to vector<8x8xbf16>
    %572 = vector.extract_strided_slice %510 {offsets = [16, 0], sizes = [8, 32], strides = [1, 1]} : vector<32x32xbf16> to vector<8x32xbf16>
    %cst_191 = arith.constant dense<0.000000e+00> : vector<8x32xf32>
    %573 = tpu.matmul %571, %572, %cst_191 {dimension_numbers = #tpu.dot_dimension_numbers<[1], [0], [0], [1], [0, 0, 1, 1], [], []>} : vector<8x8xbf16>, vector<8x32xbf16>, vector<8x32xf32> -> vector<8x32xf32>
    %574 = arith.addf %553, %573 : vector<8x32xf32>
    %575 = vector.extract_strided_slice %504 {offsets = [0, 0, 24], sizes = [1, 8, 8], strides = [1, 1, 1]} : vector<1x8x32xf32> to vector<1x8x8xf32>
    %576 = vector.shape_cast %575 : vector<1x8x8xf32> to vector<8x8xf32>
    %577 = vector.extract_strided_slice %506 {offsets = [0, 0, 24], sizes = [1, 12, 8], strides = [1, 1, 1]} : vector<1x12x32xf32> to vector<1x12x8xf32>
    %578 = vector.shape_cast %577 : vector<1x12x8xf32> to vector<12x8xf32>
    %579 = vector.extract_strided_slice %508 {offsets = [0, 0, 24], sizes = [1, 12, 8], strides = [1, 1, 1]} : vector<1x12x32xf32> to vector<1x12x8xf32>
    %580 = vector.shape_cast %579 : vector<1x12x8xf32> to vector<12x8xf32>
    %cst_192 = arith.constant dense<0.000000e+00> : vector<8x12xf32>
    %581 = tpu.matmul %576, %578, %cst_192 {dimension_numbers = #tpu.dot_dimension_numbers<[1], [1], [0], [0], [0, 0, 1, 0], [], []>} : vector<8x8xf32>, vector<12x8xf32>, vector<8x12xf32> -> vector<8x12xf32>
    %cst_193 = arith.constant dense<0xFF800000> : vector<8xf32>
    %582 = vector.multi_reduction <maximumf>, %581, %cst_193 [1] : vector<8x12xf32> to vector<8xf32>
    %583 = vector.shape_cast %582 : vector<8xf32> to vector<8x1xf32>
    %584 = vector.broadcast %583 : vector<8x1xf32> to vector<8x12xf32>
    %585 = arith.subf %581, %584 : vector<8x12xf32>
    %586 = math.exp %585 : vector<8x12xf32>
    %cst_194 = arith.constant dense<0.000000e+00> : vector<8xf32>
    %587 = vector.multi_reduction <add>, %586, %cst_194 [1] : vector<8x12xf32> to vector<8xf32>
    %588 = vector.shape_cast %587 : vector<8xf32> to vector<8x1xf32>
    %589 = vector.broadcast %588 : vector<8x1xf32> to vector<8x12xf32>
    %590 = arith.divf %586, %589 : vector<8x12xf32>
    %cst_195 = arith.constant dense<0.000000e+00> : vector<8x8xf32>
    %591 = tpu.matmul %590, %580, %cst_195 {dimension_numbers = #tpu.dot_dimension_numbers<[1], [0], [0], [1], [0, 0, 1, 1], [], []>} : vector<8x12xf32>, vector<12x8xf32>, vector<8x8xf32> -> vector<8x8xf32>
    %592 = arith.truncf %591 : vector<8x8xf32> to vector<8x8xbf16>
    %593 = vector.extract_strided_slice %510 {offsets = [24, 0], sizes = [8, 32], strides = [1, 1]} : vector<32x32xbf16> to vector<8x32xbf16>
    %cst_196 = arith.constant dense<0.000000e+00> : vector<8x32xf32>
    %594 = tpu.matmul %592, %593, %cst_196 {dimension_numbers = #tpu.dot_dimension_numbers<[1], [0], [0], [1], [0, 0, 1, 1], [], []>} : vector<8x8xbf16>, vector<8x32xbf16>, vector<8x32xf32> -> vector<8x32xf32>
    %595 = arith.addf %574, %594 : vector<8x32xf32>
    %596 = vector.shape_cast %595 : vector<8x32xf32> to vector<1x8x32xf32>
    %597 = arith.addf %483, %596 : vector<1x8x32xf32>
    %c1_197 = arith.constant 1 : index
    %c0_198 = arith.constant 0 : index
    %c0_199 = arith.constant 0 : index
    %598 = vector.load %arg14[%c1_197, %c0_198, %c0_199] : memref<2x1x32xf32, #tpu.memory_space<vmem>>, vector<1x1x32xf32>
    %599 = vector.shape_cast %598 : vector<1x1x32xf32> to vector<1x32xf32>
    %600 = vector.shape_cast %599 : vector<1x32xf32> to vector<1x1x32xf32>
    %601 = vector.broadcast %600 : vector<1x1x32xf32> to vector<1x8x32xf32>
    %602 = arith.addf %597, %601 : vector<1x8x32xf32>
    %603 = vector.extract_strided_slice %2 {offsets = [0, 4, 0], sizes = [1, 1, 32], strides = [1, 1, 1]} : vector<1x6x32xf32> to vector<1x1x32xf32>
    %604 = vector.shape_cast %603 : vector<1x1x32xf32> to vector<1x32xf32>
    %605 = vector.shape_cast %604 : vector<1x32xf32> to vector<1x1x32xf32>
    %606 = vector.extract_strided_slice %3 {offsets = [0, 4, 0], sizes = [1, 1, 32], strides = [1, 1, 1]} : vector<1x6x32xf32> to vector<1x1x32xf32>
    %607 = vector.shape_cast %606 : vector<1x1x32xf32> to vector<1x32xf32>
    %608 = vector.shape_cast %607 : vector<1x32xf32> to vector<1x1x32xf32>
    %cst_200 = arith.constant dense<0.000000e+00> : vector<1x8xf32>
    %609 = vector.multi_reduction <add>, %602, %cst_200 [2] : vector<1x8x32xf32> to vector<1x8xf32>
    %610 = vector.shape_cast %609 : vector<1x8xf32> to vector<1x8x1xf32>
    %cst_201 = arith.constant 3.200000e+01 : f32
    %611 = vector.broadcast %cst_201 : f32 to vector<1x8x1xf32>
    %612 = arith.divf %610, %611 : vector<1x8x1xf32>
    %613 = vector.broadcast %612 : vector<1x8x1xf32> to vector<1x8x32xf32>
    %614 = arith.subf %602, %613 : vector<1x8x32xf32>
    %615 = arith.mulf %614, %614 : vector<1x8x32xf32>
    %cst_202 = arith.constant dense<0.000000e+00> : vector<1x8xf32>
    %616 = vector.multi_reduction <add>, %615, %cst_202 [2] : vector<1x8x32xf32> to vector<1x8xf32>
    %617 = vector.shape_cast %616 : vector<1x8xf32> to vector<1x8x1xf32>
    %cst_203 = arith.constant 3.200000e+01 : f32
    %618 = vector.broadcast %cst_203 : f32 to vector<1x8x1xf32>
    %619 = arith.divf %617, %618 : vector<1x8x1xf32>
    %620 = vector.broadcast %612 : vector<1x8x1xf32> to vector<1x8x32xf32>
    %621 = arith.subf %602, %620 : vector<1x8x32xf32>
    %cst_204 = arith.constant 9.99999974E-6 : f32
    %622 = vector.broadcast %cst_204 : f32 to vector<1x8x1xf32>
    %623 = arith.addf %619, %622 : vector<1x8x1xf32>
    %624 = math.rsqrt %623 : vector<1x8x1xf32>
    %625 = vector.broadcast %624 : vector<1x8x1xf32> to vector<1x8x32xf32>
    %626 = arith.mulf %621, %625 : vector<1x8x32xf32>
    %627 = vector.broadcast %605 : vector<1x1x32xf32> to vector<1x8x32xf32>
    %628 = arith.mulf %627, %626 : vector<1x8x32xf32>
    %629 = vector.broadcast %608 : vector<1x1x32xf32> to vector<1x8x32xf32>
    %630 = arith.addf %628, %629 : vector<1x8x32xf32>
    %631 = vector.shape_cast %630 : vector<1x8x32xf32> to vector<8x32xf32>
    %632 = arith.truncf %631 : vector<8x32xf32> to vector<8x32xbf16>
    %c1_205 = arith.constant 1 : index
    %c0_206 = arith.constant 0 : index
    %c0_207 = arith.constant 0 : index
    %633 = vector.load %arg15[%c1_205, %c0_206, %c0_207] : memref<2x32x64xbf16, #tpu.memory_space<vmem>>, vector<1x32x64xbf16>
    %634 = vector.shape_cast %633 : vector<1x32x64xbf16> to vector<32x64xbf16>
    %cst_208 = arith.constant dense<0.000000e+00> : vector<8x64xf32>
    %635 = tpu.matmul %632, %634, %cst_208 {dimension_numbers = #tpu.dot_dimension_numbers<[1], [0], [0], [1], [0, 0, 1, 1], [], []>} : vector<8x32xbf16>, vector<32x64xbf16>, vector<8x64xf32> -> vector<8x64xf32>
    %c1_209 = arith.constant 1 : index
    %c0_210 = arith.constant 0 : index
    %c0_211 = arith.constant 0 : index
    %636 = vector.load %arg16[%c1_209, %c0_210, %c0_211] : memref<2x1x64xf32, #tpu.memory_space<vmem>>, vector<1x1x64xf32>
    %637 = vector.shape_cast %636 : vector<1x1x64xf32> to vector<1x64xf32>
    %638 = vector.broadcast %637 : vector<1x64xf32> to vector<8x64xf32>
    %639 = arith.addf %635, %638 : vector<8x64xf32>
    %cst_212 = arith.constant 5.000000e-01 : f32
    %640 = vector.broadcast %cst_212 : f32 to vector<8x64xf32>
    %641 = arith.mulf %640, %639 : vector<8x64xf32>
    %cst_213 = arith.constant 0.707106769 : f32
    %642 = vector.broadcast %cst_213 : f32 to vector<8x64xf32>
    %643 = arith.mulf %639, %642 : vector<8x64xf32>
    %644 = math.erf %643 : vector<8x64xf32>
    %cst_214 = arith.constant 1.000000e+00 : f32
    %645 = vector.broadcast %cst_214 : f32 to vector<8x64xf32>
    %646 = arith.addf %645, %644 : vector<8x64xf32>
    %647 = arith.mulf %641, %646 : vector<8x64xf32>
    %648 = arith.truncf %647 : vector<8x64xf32> to vector<8x64xbf16>
    %c1_215 = arith.constant 1 : index
    %c0_216 = arith.constant 0 : index
    %c0_217 = arith.constant 0 : index
    %649 = vector.load %arg17[%c1_215, %c0_216, %c0_217] : memref<2x64x32xbf16, #tpu.memory_space<vmem>>, vector<1x64x32xbf16>
    %650 = vector.shape_cast %649 : vector<1x64x32xbf16> to vector<64x32xbf16>
    %cst_218 = arith.constant dense<0.000000e+00> : vector<8x32xf32>
    %651 = tpu.matmul %648, %650, %cst_218 {dimension_numbers = #tpu.dot_dimension_numbers<[1], [0], [0], [1], [0, 0, 1, 1], [], []>} : vector<8x64xbf16>, vector<64x32xbf16>, vector<8x32xf32> -> vector<8x32xf32>
    %c1_219 = arith.constant 1 : index
    %c0_220 = arith.constant 0 : index
    %c0_221 = arith.constant 0 : index
    %652 = vector.load %arg18[%c1_219, %c0_220, %c0_221] : memref<2x1x32xf32, #tpu.memory_space<vmem>>, vector<1x1x32xf32>
    %653 = vector.shape_cast %652 : vector<1x1x32xf32> to vector<1x32xf32>
    %654 = vector.broadcast %653 : vector<1x32xf32> to vector<8x32xf32>
    %655 = arith.addf %651, %654 : vector<8x32xf32>
    %656 = vector.shape_cast %655 : vector<8x32xf32> to vector<1x8x32xf32>
    %657 = arith.addf %630, %656 : vector<1x8x32xf32>
    %658 = vector.extract_strided_slice %2 {offsets = [0, 5, 0], sizes = [1, 1, 32], strides = [1, 1, 1]} : vector<1x6x32xf32> to vector<1x1x32xf32>
    %659 = vector.shape_cast %658 : vector<1x1x32xf32> to vector<1x32xf32>
    %660 = vector.shape_cast %659 : vector<1x32xf32> to vector<1x1x32xf32>
    %661 = vector.extract_strided_slice %3 {offsets = [0, 5, 0], sizes = [1, 1, 32], strides = [1, 1, 1]} : vector<1x6x32xf32> to vector<1x1x32xf32>
    %662 = vector.shape_cast %661 : vector<1x1x32xf32> to vector<1x32xf32>
    %663 = vector.shape_cast %662 : vector<1x32xf32> to vector<1x1x32xf32>
    %cst_222 = arith.constant dense<0.000000e+00> : vector<1x8xf32>
    %664 = vector.multi_reduction <add>, %657, %cst_222 [2] : vector<1x8x32xf32> to vector<1x8xf32>
    %665 = vector.shape_cast %664 : vector<1x8xf32> to vector<1x8x1xf32>
    %cst_223 = arith.constant 3.200000e+01 : f32
    %666 = vector.broadcast %cst_223 : f32 to vector<1x8x1xf32>
    %667 = arith.divf %665, %666 : vector<1x8x1xf32>
    %668 = vector.broadcast %667 : vector<1x8x1xf32> to vector<1x8x32xf32>
    %669 = arith.subf %657, %668 : vector<1x8x32xf32>
    %670 = arith.mulf %669, %669 : vector<1x8x32xf32>
    %cst_224 = arith.constant dense<0.000000e+00> : vector<1x8xf32>
    %671 = vector.multi_reduction <add>, %670, %cst_224 [2] : vector<1x8x32xf32> to vector<1x8xf32>
    %672 = vector.shape_cast %671 : vector<1x8xf32> to vector<1x8x1xf32>
    %cst_225 = arith.constant 3.200000e+01 : f32
    %673 = vector.broadcast %cst_225 : f32 to vector<1x8x1xf32>
    %674 = arith.divf %672, %673 : vector<1x8x1xf32>
    %675 = vector.broadcast %667 : vector<1x8x1xf32> to vector<1x8x32xf32>
    %676 = arith.subf %657, %675 : vector<1x8x32xf32>
    %cst_226 = arith.constant 9.99999974E-6 : f32
    %677 = vector.broadcast %cst_226 : f32 to vector<1x8x1xf32>
    %678 = arith.addf %674, %677 : vector<1x8x1xf32>
    %679 = math.rsqrt %678 : vector<1x8x1xf32>
    %680 = vector.broadcast %679 : vector<1x8x1xf32> to vector<1x8x32xf32>
    %681 = arith.mulf %676, %680 : vector<1x8x32xf32>
    %682 = vector.broadcast %660 : vector<1x1x32xf32> to vector<1x8x32xf32>
    %683 = arith.mulf %682, %681 : vector<1x8x32xf32>
    %684 = vector.broadcast %663 : vector<1x1x32xf32> to vector<1x8x32xf32>
    %685 = arith.addf %683, %684 : vector<1x8x32xf32>
    %cst_227 = arith.constant dense<0.000000e+00> : vector<1x8xf32>
    %686 = vector.multi_reduction <add>, %685, %cst_227 [2] : vector<1x8x32xf32> to vector<1x8xf32>
    %687 = vector.shape_cast %686 : vector<1x8xf32> to vector<1x8x1xf32>
    %cst_228 = arith.constant 3.200000e+01 : f32
    %688 = vector.broadcast %cst_228 : f32 to vector<1x8x1xf32>
    %689 = arith.divf %687, %688 : vector<1x8x1xf32>
    %690 = vector.broadcast %689 : vector<1x8x1xf32> to vector<1x8x32xf32>
    %691 = arith.subf %685, %690 : vector<1x8x32xf32>
    %692 = arith.mulf %691, %691 : vector<1x8x32xf32>
    %cst_229 = arith.constant dense<0.000000e+00> : vector<1x8xf32>
    %693 = vector.multi_reduction <add>, %692, %cst_229 [2] : vector<1x8x32xf32> to vector<1x8xf32>
    %694 = vector.shape_cast %693 : vector<1x8xf32> to vector<1x8x1xf32>
    %cst_230 = arith.constant 3.200000e+01 : f32
    %695 = vector.broadcast %cst_230 : f32 to vector<1x8x1xf32>
    %696 = arith.divf %694, %695 : vector<1x8x1xf32>
    %697 = vector.broadcast %689 : vector<1x8x1xf32> to vector<1x8x32xf32>
    %698 = arith.subf %685, %697 : vector<1x8x32xf32>
    %cst_231 = arith.constant 9.99999974E-6 : f32
    %699 = vector.broadcast %cst_231 : f32 to vector<1x8x1xf32>
    %700 = arith.addf %696, %699 : vector<1x8x1xf32>
    %701 = math.rsqrt %700 : vector<1x8x1xf32>
    %702 = vector.broadcast %701 : vector<1x8x1xf32> to vector<1x8x32xf32>
    %703 = arith.mulf %698, %702 : vector<1x8x32xf32>
    %c0_232 = arith.constant 0 : index
    %c0_233 = arith.constant 0 : index
    %704 = vector.load %arg19[%c0_232, %c0_233] : memref<1x32xf32, #tpu.memory_space<vmem>>, vector<1x32xf32>
    %705 = vector.shape_cast %704 : vector<1x32xf32> to vector<1x1x32xf32>
    %706 = vector.broadcast %705 : vector<1x1x32xf32> to vector<1x8x32xf32>
    %707 = arith.mulf %703, %706 : vector<1x8x32xf32>
    %c0_234 = arith.constant 0 : index
    %c0_235 = arith.constant 0 : index
    %708 = vector.load %arg20[%c0_234, %c0_235] : memref<1x32xf32, #tpu.memory_space<vmem>>, vector<1x32xf32>
    %709 = vector.shape_cast %708 : vector<1x32xf32> to vector<1x1x32xf32>
    %710 = vector.broadcast %709 : vector<1x1x32xf32> to vector<1x8x32xf32>
    %711 = arith.addf %707, %710 : vector<1x8x32xf32>
    %c0_236 = arith.constant 0 : index
    %c0_237 = arith.constant 0 : index
    %c0_238 = arith.constant 0 : index
    %712 = vector.load %arg21[%c0_236, %c0_237, %c0_238] : memref<1x8x32xf32, #tpu.memory_space<vmem>>, vector<1x8x32xf32>
    tpu.vector_store %arg21[%c0_236, %c0_237, %c0_238], %711 {strides = array<i32>} : memref<1x8x32xf32, #tpu.memory_space<vmem>>, vector<1x8x32xf32>,
    return
  }
  func.func @transform_0(%arg0: i32) -> (i32, i32, i32) {
    %c0_i32 = arith.constant 0 : i32
    %c0_i32_0 = arith.constant 0 : i32
    %c0_i32_1 = arith.constant 0 : i32
    return %arg0, %c0_i32, %c0_i32_0 : i32, i32, i32
  }
  func.func @transform_1(%arg0: i32) -> (i32, i32, i32) {
    %c0_i32 = arith.constant 0 : i32
    %c0_i32_0 = arith.constant 0 : i32
    %c0_i32_1 = arith.constant 0 : i32
    return %arg0, %c0_i32, %c0_i32_0 : i32, i32, i32
  }
  func.func @transform_2(%arg0: i32) -> (i32, i32, i32) {
    %c0_i32 = arith.constant 0 : i32
    %c0_i32_0 = arith.constant 0 : i32
    %c0_i32_1 = arith.constant 0 : i32
    return %arg0, %c0_i32, %c0_i32_0 : i32, i32, i32
  }
  func.func @transform_3(%arg0: i32) -> (i32, i32, i32) {
    %c0_i32 = arith.constant 0 : i32
    %c0_i32_0 = arith.constant 0 : i32
    %c0_i32_1 = arith.constant 0 : i32
    return %arg0, %c0_i32, %c0_i32_0 : i32, i32, i32
  }
  func.func @transform_4(%arg0: i32) -> (i32, i32, i32) {
    %c0_i32 = arith.constant 0 : i32
    %c0_i32_0 = arith.constant 0 : i32
    %c0_i32_1 = arith.constant 0 : i32
    %c0_i32_2 = arith.constant 0 : i32
    return %c0_i32, %c0_i32_0, %c0_i32_1 : i32, i32, i32
  }
  func.func @transform_5(%arg0: i32) -> (i32, i32, i32) {
    %c0_i32 = arith.constant 0 : i32
    %c0_i32_0 = arith.constant 0 : i32
    %c0_i32_1 = arith.constant 0 : i32
    %c0_i32_2 = arith.constant 0 : i32
    return %c0_i32, %c0_i32_0, %c0_i32_1 : i32, i32, i32
  }
  func.func @transform_6(%arg0: i32) -> (i32, i32, i32) {
    %c0_i32 = arith.constant 0 : i32
    %c0_i32_0 = arith.constant 0 : i32
    %c0_i32_1 = arith.constant 0 : i32
    %c0_i32_2 = arith.constant 0 : i32
    return %c0_i32, %c0_i32_0, %c0_i32_1 : i32, i32, i32
  }
  func.func @transform_7(%arg0: i32) -> (i32, i32, i32) {
    %c0_i32 = arith.constant 0 : i32
    %c0_i32_0 = arith.constant 0 : i32
    %c0_i32_1 = arith.constant 0 : i32
    %c0_i32_2 = arith.constant 0 : i32
    return %c0_i32, %c0_i32_0, %c0_i32_1 : i32, i32, i32
  }
  func.func @transform_8(%arg0: i32) -> (i32, i32, i32) {
    %c0_i32 = arith.constant 0 : i32
    %c0_i32_0 = arith.constant 0 : i32
    %c0_i32_1 = arith.constant 0 : i32
    %c0_i32_2 = arith.constant 0 : i32
    return %c0_i32, %c0_i32_0, %c0_i32_1 : i32, i32, i32
  }
  func.func @transform_9(%arg0: i32) -> (i32, i32, i32) {
    %c0_i32 = arith.constant 0 : i32
    %c0_i32_0 = arith.constant 0 : i32
    %c0_i32_1 = arith.constant 0 : i32
    %c0_i32_2 = arith.constant 0 : i32
    return %c0_i32, %c0_i32_0, %c0_i32_1 : i32, i32, i32
  }
  func.func @transform_10(%arg0: i32) -> (i32, i32, i32) {
    %c0_i32 = arith.constant 0 : i32
    %c0_i32_0 = arith.constant 0 : i32
    %c0_i32_1 = arith.constant 0 : i32
    %c0_i32_2 = arith.constant 0 : i32
    return %c0_i32, %c0_i32_0, %c0_i32_1 : i32, i32, i32
  }
  func.func @transform_11(%arg0: i32) -> (i32, i32, i32) {
    %c0_i32 = arith.constant 0 : i32
    %c0_i32_0 = arith.constant 0 : i32
    %c0_i32_1 = arith.constant 0 : i32
    %c0_i32_2 = arith.constant 0 : i32
    return %c0_i32, %c0_i32_0, %c0_i32_1 : i32, i32, i32
  }
  func.func @transform_12(%arg0: i32) -> (i32, i32, i32) {
    %c0_i32 = arith.constant 0 : i32
    %c0_i32_0 = arith.constant 0 : i32
    %c0_i32_1 = arith.constant 0 : i32
    %c0_i32_2 = arith.constant 0 : i32
    return %c0_i32, %c0_i32_0, %c0_i32_1 : i32, i32, i32
  }
  func.func @transform_13(%arg0: i32) -> (i32, i32, i32) {
    %c0_i32 = arith.constant 0 : i32
    %c0_i32_0 = arith.constant 0 : i32
    %c0_i32_1 = arith.constant 0 : i32
    %c0_i32_2 = arith.constant 0 : i32
    return %c0_i32, %c0_i32_0, %c0_i32_1 : i32, i32, i32
  }
  func.func @transform_14(%arg0: i32) -> (i32, i32, i32) {
    %c0_i32 = arith.constant 0 : i32
    %c0_i32_0 = arith.constant 0 : i32
    %c0_i32_1 = arith.constant 0 : i32
    %c0_i32_2 = arith.constant 0 : i32
    return %c0_i32, %c0_i32_0, %c0_i32_1 : i32, i32, i32
  }
  func.func @transform_15(%arg0: i32) -> (i32, i32, i32) {
    %c0_i32 = arith.constant 0 : i32
    %c0_i32_0 = arith.constant 0 : i32
    %c0_i32_1 = arith.constant 0 : i32
    %c0_i32_2 = arith.constant 0 : i32
    return %c0_i32, %c0_i32_0, %c0_i32_1 : i32, i32, i32
  }
  func.func @transform_16(%arg0: i32) -> (i32, i32, i32) {
    %c0_i32 = arith.constant 0 : i32
    %c0_i32_0 = arith.constant 0 : i32
    %c0_i32_1 = arith.constant 0 : i32
    %c0_i32_2 = arith.constant 0 : i32
    return %c0_i32, %c0_i32_0, %c0_i32_1 : i32, i32, i32
  }
  func.func @transform_17(%arg0: i32) -> (i32, i32, i32) {
    %c0_i32 = arith.constant 0 : i32
    %c0_i32_0 = arith.constant 0 : i32
    %c0_i32_1 = arith.constant 0 : i32
    %c0_i32_2 = arith.constant 0 : i32
    return %c0_i32, %c0_i32_0, %c0_i32_1 : i32, i32, i32
  }
  func.func @transform_18(%arg0: i32) -> (i32, i32) {
    %c0_i32 = arith.constant 0 : i32
    %c0_i32_0 = arith.constant 0 : i32
    %c0_i32_1 = arith.constant 0 : i32
    return %c0_i32, %c0_i32_0 : i32, i32
  }
  func.func @transform_19(%arg0: i32) -> (i32, i32) {
    %c0_i32 = arith.constant 0 : i32
    %c0_i32_0 = arith.constant 0 : i32
    %c0_i32_1 = arith.constant 0 : i32
    return %c0_i32, %c0_i32_0 : i32, i32
  }
  func.func @transform_20(%arg0: i32) -> (i32, i32, i32) {
    %c0_i32 = arith.constant 0 : i32
    %c0_i32_0 = arith.constant 0 : i32
    %c0_i32_1 = arith.constant 0 : i32
    return %arg0, %c0_i32, %c0_i32_0 : i32, i32, i32
  }
}

</mosaic_0001>

<bundles_post_ra>
// kernel: fasttalk_decoder.1
= control target key start
LH: loop header
LB: loop body
LE: loop exit
PB: predicated region body
PF: predicated region fallthrough
CT: control target
= control target key end

     0   :  { %s8957_s0 = inlined_call_operand.hbm [shape: f32[2,8,32], index: 0, kind: input, shape index: {}]   ;;  %s8958_s1 = inlined_call_operand.hbm [shape: f32[2,12,32], index: 1, kind: input, shape index: {}]   ;;  %s8959_s2 = inlined_call_operand.hbm [shape: f32[2,6,32], index: 2, kind: input, shape index: {}]   ;;  %s8960_s3 = inlined_call_operand.hbm [shape: f32[2,6,32], index: 3, kind: input, shape index: {}]   ;;  %s8961_s4 = inlined_call_operand.hbm [shape: bf16[2,32,96], index: 4, kind: input, shape index: {}]   ;;  %s8962_s5 = inlined_call_operand.hbm [shape: f32[2,1,96], index: 5, kind: input, shape index: {}]   ;;  %s8963_s6 = inlined_call_operand.hbm [shape: bf16[2,32,32], index: 6, kind: input, shape index: {}]   ;;  %s8964_s7 = inlined_call_operand.hbm [shape: f32[2,1,32], index: 7, kind: input, shape index: {}]   ;;  %s8965_s8 = inlined_call_operand.hbm [shape: bf16[2,32,32], index: 8, kind: input, shape index: {}]   ;;  %s8966_s9 = inlined_call_operand.hbm [shape: f32[2,1,32], index: 9, kind: input, shape index: {}]   ;;  %s8967_s10 = inlined_call_operand.hbm [shape: bf16[2,32,64], index: 10, kind: input, shape index: {}]   ;;  %s8968_s11 = inlined_call_operand.hbm [shape: f32[2,1,64], index: 11, kind: input, shape index: {}]   ;;  %s8969_s12 = inlined_call_operand.hbm [shape: bf16[2,32,32], index: 12, kind: input, shape index: {}]   ;;  %s8970_s13 = inlined_call_operand.hbm [shape: f32[2,1,32], index: 13, kind: input, shape index: {}]   ;;  %s8971_s14 = inlined_call_operand.hbm [shape: bf16[2,32,64], index: 14, kind: input, shape index: {}]   ;;  %s8972_s15 = inlined_call_operand.hbm [shape: f32[2,1,64], index: 15, kind: input, shape index: {}]   ;;  %s8973_s16 = inlined_call_operand.hbm [shape: bf16[2,64,32], index: 16, kind: input, shape index: {}]   ;;  %s8974_s17 = inlined_call_operand.hbm [shape: f32[2,1,32], index: 17, kind: input, shape index: {}]   ;;  %s8975_s18 = inlined_call_operand.hbm [shape: f32[1,32], index: 18, kind: input, shape index: {}]   ;;  %s8976_s19 = inlined_call_operand.hbm [shape: f32[1,32], index: 19, kind: input, shape index: {}]   ;;  %s8977_s20 = inlined_call_operand.hbm [shape: f32[2,8,32], index: 20, kind: output, shape index: {}]  }
   0x1   :  { %9013 = sst [smem:[#allocation50_spill]] %s8957_s0 }
   0x2   :  { %9014 = sst [smem:[#allocation51_spill]] %s8958_s1 }
   0x3   :  { %9015 = sst [smem:[#allocation52_spill]] %s8959_s2 }
   0x4   :  { %9016 = sst [smem:[#allocation53_spill]] %s8960_s3 }
   0x5   :  { %9017 = sst [smem:[#allocation54_spill]] %s8961_s4 }
   0x6   :  { %9018 = sst [smem:[#allocation55_spill]] %s8962_s5 }
   0x7   :  { %9019 = sst [smem:[#allocation56_spill]] %s8963_s6 }
   0x8   :  { %9020 = sst [smem:[#allocation57_spill]] %s8964_s7 }
   0x9   :  { %9021 = sst [smem:[#allocation58_spill]] %s8965_s8 }
   0xa   :  { %9022 = sst [smem:[#allocation59_spill]] %s8966_s9 }
   0xb   :  { %9023 = sst [smem:[#allocation60_spill]] %s8967_s10 }
   0xc   :  { %9024 = sst [smem:[#allocation61_spill]] %s8968_s11 }
   0xd   :  { %9025 = sst [smem:[#allocation62_spill]] %s8969_s12 }
   0xe   :  { %9026 = sst [smem:[#allocation63_spill]] %s8970_s13 }
   0xf   :  { %9027 = sst [smem:[#allocation64_spill]] %s8971_s14 }
  0x10   :  { %9028 = sst [smem:[#allocation65_spill]] %s8972_s15 }
  0x11   :  { %9029 = sst [smem:[#allocation66_spill]] %s8973_s16 }
  0x12   :  { %9030 = sst [smem:[#allocation67_spill]] %s8974_s17 }
  0x13   :  { %9031 = sst [smem:[#allocation68_spill]] %s8975_s18 }
  0x14   :  { %9032 = sst [smem:[#allocation69_spill]] %s8976_s19 }
  0x15   :  { %9033 = sst [smem:[#allocation70_spill]] %s8977_s20 }
  0x16   :  { %25 = vsyncpa [#allocation3], 0 }
  0x17   :  { %27 = vsyncpa [#allocation3 + $0x1], 0 }
  0x18   :  { %28 = vsyncpa [#allocation6], 0 }
  0x19   :  { %30 = vsyncpa [#allocation6 + $0x1], 0 }
  0x1a   :  { %31 = vsyncpa [#allocation9], 0 }
  0x1b   :  { %33 = vsyncpa [#allocation9 + $0x1], 0 }
  0x1c   :  { %34 = vsyncpa [#allocation12], 0 }
  0x1d   :  { %35 = vsyncpa [#allocation15], 0 }
  0x1e   :  { %36 = vsyncpa [#allocation18], 0 }
  0x1f   :  { %37 = vsyncpa [#allocation21], 0 }
  0x20   :  { %38 = vsyncpa [#allocation24], 0 }
  0x21   :  { %39 = vsyncpa [#allocation27], 0 }
  0x22   :  { %40 = vsyncpa [#allocation30], 0 }
  0x23   :  { %41 = vsyncpa [#allocation33], 0 }
  0x24   :  { %42 = vsyncpa [#allocation4], 0 }
  0x25   :  { %44 = vsyncpa [#allocation4 + $0x1], 0  ;;  %s7725_s1 = smov 0   ;;  %s7727_s22 = smov 0  }
  0x26   :  { %s7729_s23 = smov 0   ;;  %s7731_s24 = smov 0  }
  0x27 LB: > { %s7578_s2 = smov [#allocation10]   ;;  %s7746_s3 = sadd.s32 4294967295, %s7576_s24   ;;  %s7576_s24 = sphi %s7731_s24, %s9107_s24   ;;  %s7572_s23 = sphi %s7729_s23, %s9106_s23   ;;  %s7568_s22 = sphi %s7727_s22, %s9105_s22   ;;  %s7564_s1 = sphi %s7725_s1, %s9104_s1  }
  0x28   : > { %s533_s25 = sshll.u32 %s7578_s2, 4  ;;  %p5707_p0 = scmp.ge.s32.totalorder %s7576_s24, 1  ;;  %s7751_s25 = int_to_ptr.vmem [resolvable:$true] %s533_s25 }
  0x29   : > { %p8993_p1 = scmp.eq.s32.totalorder %s7746_s3, 0  ;;  %p521_p2 = scmp.lt.s32.totalorder %s7576_s24, 3 }
  0x2a   : > { %s7579_s27 = smov [#allocation11]   ;;  %s7580_s29 = smov [#allocation14]  }
  0x2b   : > { %p7753_p3 = pnand %p5707_p0, %p521_p2  ;;  %s546_s28 = sshll.u32 %s7579_s27, 4  ;;  %s7766_s28 = int_to_ptr.vmem [resolvable:$true] %s546_s28 }
  0x2c   : > { %s7768_s30 = sshll.u32 %s7580_s29, 4  ;;  %s9037_s2 = sld [smem:[#allocation54_spill]]  ;;  %s573_s30 = int_to_ptr.vmem [resolvable:$true] %s7768_s30 }
  0x2d   : > { %s9034_s26 = scalar_select %p7753_p3, 1, 0 }
  0x2e   : > { %p6551_p5 = pneg %p7753_p3 }
  0x2f   : > { %9035 = sst [smem:[#allocation48_spill]] %s9034_s26 }
  0x30   : > { %p7762_p6 = pnand %p6551_p5, %p8993_p1 }
  0x32   : > { %s9036_s4 = scalar_select %p7762_p6, 1, 0 }
  0x33   : > { %s6898_s20 = scalar_lea.hbm %s9037_s2, 512  ;;  %p7778_p8 = pneg %p7762_p6 }
  0x34   : > { %p6899_p7 = scmp.ne.s32.totalorder %s9037_s2, %s6898_s20  ;;  %p6905_p11 = scmp.lt.u32.totalorder %s6898_s20, %s9037_s2 }
  0x35   : > { %s9038_s27 = scalar_select %p7778_p8, 1, 0 }
  0x36   : > { %p6901_p9 = pnand %p7778_p8, %p6899_p7 }
  0x38   : > { %p6902_p10 = pneg %p6901_p9 }
  0x3a   : > { %p6907_p12 = pnand %p6905_p11, %p6902_p10 }
  0x3c   : > { %6910 = shalt.err (!%p6907_p12)
}
  0x3d   : > { %s6911_s19 = scalar_lea.vmem %s7751_s25, 512  ;;  %p6919_p5 = scmp.lt.s32.totalorder %s7751_s25, %s7751_s25 }
  0x3e   : > { %p6912_p13 = scmp.ne.s32.totalorder %s7751_s25, %s6911_s19  ;;  %p6920_p4 = scmp.lt.s32.totalorder %s6911_s19, %s6911_s19 }
  0x40   : > { %p6914_p0 = pnand %p6912_p13, %p7778_p8  ;;  %p6921_p7 = por %p6920_p4, %p6919_p5 }
  0x42   : > { %p6915_p2 = pneg %p6914_p0 }
  0x44   : > { %p6922_p9 = pnand %p6921_p7, %p6915_p2 }
  0x46   : > { %6925 = shalt.err (!%p6922_p9)
}
  0x47   : > { %s8991_s26 = smov 64   ;;  %s8995_s18 = smov 4  }
  0x48   : > { %6554 = dma.hbm_to_vmem [thread:$0]  (!%p7762_p6), %s9037_s2, 512, %s7751_s25, [#allocation9], %s8991_s26, %s8991_s26, %s8995_s18  }
  0x49   : > { %s9039_s5 = sld [smem:[#allocation55_spill]] }
  0x4f   : > { %s6926_s19 = scalar_lea.hbm %s9039_s5, 32 }
  0x50   : > { %p6927_p4 = scmp.ne.s32.totalorder %s9039_s5, %s6926_s19  ;;  %p6933_p12 = scmp.lt.u32.totalorder %s6926_s19, %s9039_s5 }
  0x52   : > { %p6929_p10 = pnand %p6927_p4, %p7778_p8 }
  0x54   : > { %p6930_p11 = pneg %p6929_p10 }
  0x56   : > { %p6935_p13 = pnand %p6933_p12, %p6930_p11 }
  0x58   : > { %6938 = shalt.err (!%p6935_p13)
}
  0x59   : > { %s6939_s25 = scalar_lea.vmem %s7766_s28, 32  ;;  %p6947_p7 = scmp.lt.s32.totalorder %s7766_s28, %s7766_s28 }
  0x5a   : > { %p6940_p0 = scmp.ne.s32.totalorder %s7766_s28, %s6939_s25  ;;  %p6948_p9 = scmp.lt.s32.totalorder %s6939_s25, %s6939_s25 }
  0x5c   : > { %p6942_p2 = pnand %p6940_p0, %p7778_p8  ;;  %p6949_p4 = por %p6948_p9, %p6947_p7 }
  0x5e   : > { %p6943_p5 = pneg %p6942_p2 }
  0x60   : > { %p6950_p10 = pnand %p6949_p4, %p6943_p5 }
  0x62   : > { %6953 = shalt.err (!%p6950_p10)
}
  0x63   : > { %s7583_s14 = smov 16   ;;  %s7584_s10 = smov 1  }
  0x64   : > { %6557 = dma.hbm_to_vmem [thread:$0]  (!%p7762_p6), %s9039_s5, 32, %s7766_s28, [#allocation12], %s7583_s14, %s7583_s14, %s7584_s10  }
  0x65   : > { %s9040_s7 = sld [smem:[#allocation57_spill]] }
  0x6b   : > { %s6954_s21 = scalar_lea.hbm %s9040_s7, 32 }
  0x6c   : > { %p6955_p11 = scmp.ne.s32.totalorder %s9040_s7, %s6954_s21  ;;  %p6961_p0 = scmp.lt.u32.totalorder %s6954_s21, %s9040_s7 }
  0x6e   : > { %p6957_p12 = pnand %p6955_p11, %p7778_p8 }
  0x70   : > { %p6958_p13 = pneg %p6957_p12 }
  0x72   : > { %p6963_p2 = pnand %p6961_p0, %p6958_p13 }
  0x74   : > { %6966 = shalt.err (!%p6963_p2)
}
  0x75   : > { %s6967_s12 = scalar_lea.vmem %s573_s30, 32  ;;  %p6975_p4 = scmp.lt.s32.totalorder %s573_s30, %s573_s30 }
  0x76   : > { %p6968_p5 = scmp.ne.s32.totalorder %s573_s30, %s6967_s12  ;;  %p6976_p10 = scmp.lt.s32.totalorder %s6967_s12, %s6967_s12 }
  0x78   : > { %p6970_p7 = pnand %p6968_p5, %p7778_p8  ;;  %p6977_p1 = por %p6976_p10, %p6975_p4 }
  0x7a   : > { %p6971_p9 = pneg %p6970_p7 }
  0x7c   : > { %p6978_p3 = pnand %p6977_p1, %p6971_p9 }
  0x7e   : > { %6981 = shalt.err (!%p6978_p3)
}
  0x7f   : > { %6563 = dma.hbm_to_vmem [thread:$0]  (!%p7762_p6), %s9040_s7, 32, %s573_s30, [#allocation15], %s7583_s14, %s7583_s14, %s7584_s10  }
  0x80   : > { %s7585_s16 = smov [#allocation17]   ;;  %s7586_s0 = smov [#allocation20]  }
  0x81   : > { %s598_s20 = sshll.u32 %s7585_s16, 4  ;;  %s624_s21 = sshll.u32 %s7586_s0, 4  ;;  %s599_s20 = int_to_ptr.vmem [resolvable:$true] %s598_s20  ;;  %s625_s21 = int_to_ptr.vmem [resolvable:$true] %s624_s21 }
  0x82   : > { %s9041_s9 = sld [smem:[#allocation59_spill]] }
  0x88   : > { %s6982_s25 = scalar_lea.hbm %s9041_s9, 32 }
  0x89   : > { %p6983_p1 = scmp.ne.s32.totalorder %s9041_s9, %s6982_s25  ;;  %p6989_p12 = scmp.lt.u32.totalorder %s6982_s25, %s9041_s9 }
  0x8b   : > { %p6985_p3 = pnand %p6983_p1, %p7778_p8 }
  0x8d   : > { %p6986_p11 = pneg %p6985_p3 }
  0x8f   : > { %p6991_p13 = pnand %p6989_p12, %p6986_p11 }
  0x91   : > { %6994 = shalt.err (!%p6991_p13)
}
  0x92   : > { %s6995_s30 = scalar_lea.vmem %s599_s20, 32  ;;  %p7003_p7 = scmp.lt.s32.totalorder %s599_s20, %s599_s20 }
  0x93   : > { %p6996_p0 = scmp.ne.s32.totalorder %s599_s20, %s6995_s30  ;;  %p7004_p9 = scmp.lt.s32.totalorder %s6995_s30, %s6995_s30 }
  0x95   : > { %p6998_p2 = pnand %p6996_p0, %p7778_p8  ;;  %p7005_p4 = por %p7004_p9, %p7003_p7 }
  0x97   : > { %p6999_p5 = pneg %p6998_p2 }
  0x99   : > { %p7006_p10 = pnand %p7005_p4, %p6999_p5 }
  0x9b   : > { %7009 = shalt.err (!%p7006_p10)
}
  0x9c   : > { %6569 = dma.hbm_to_vmem [thread:$0]  (!%p7762_p6), %s9041_s9, 32, %s599_s20, [#allocation18], %s7583_s14, %s7583_s14, %s7584_s10  }
  0x9d   : > { %s9042_s11 = sld [smem:[#allocation61_spill]] }
  0xa3   : > { %s7010_s0 = scalar_lea.hbm %s9042_s11, 32 }
  0xa4   : > { %p7011_p1 = scmp.ne.s32.totalorder %s9042_s11, %s7010_s0  ;;  %p7017_p12 = scmp.lt.u32.totalorder %s7010_s0, %s9042_s11 }
  0xa6   : > { %p7013_p3 = pnand %p7011_p1, %p7778_p8 }
  0xa8   : > { %p7014_p11 = pneg %p7013_p3 }
  0xaa   : > { %p7019_p13 = pnand %p7017_p12, %p7014_p11 }
  0xac   : > { %7022 = shalt.err (!%p7019_p13)
}
  0xad   : > { %s7023_s28 = scalar_lea.vmem %s625_s21, 32  ;;  %p7031_p7 = scmp.lt.s32.totalorder %s625_s21, %s625_s21 }
  0xae   : > { %p7024_p0 = scmp.ne.s32.totalorder %s625_s21, %s7023_s28  ;;  %p7032_p9 = scmp.lt.s32.totalorder %s7023_s28, %s7023_s28 }
  0xb0   : > { %p7026_p2 = pnand %p7024_p0, %p7778_p8  ;;  %p7033_p4 = por %p7032_p9, %p7031_p7 }
  0xb2   : > { %p7027_p5 = pneg %p7026_p2 }
  0xb4   : > { %p7034_p10 = pnand %p7033_p4, %p7027_p5 }
  0xb6   : > { %7037 = shalt.err (!%p7034_p10)
}
  0xb7   : > { %6575 = dma.hbm_to_vmem [thread:$0]  (!%p7762_p6), %s9042_s11, 32, %s625_s21, [#allocation21], %s7583_s14, %s7583_s14, %s7584_s10  }
  0xb8   : > { %s7587_s2 = smov [#allocation23]   ;;  %s7588_s26 = smov [#allocation26]  }
  0xb9   : > { %s650_s18 = sshll.u32 %s7587_s2, 4  ;;  %s676_s16 = sshll.u32 %s7588_s26, 4  ;;  %s651_s18 = int_to_ptr.vmem [resolvable:$true] %s650_s18  ;;  %s677_s16 = int_to_ptr.vmem [resolvable:$true] %s676_s16 }
  0xba   : > { %s9043_s13 = sld [smem:[#allocation63_spill]] }
  0xc0   : > { %s7038_s19 = scalar_lea.hbm %s9043_s13, 32 }
  0xc1   : > { %p7039_p1 = scmp.ne.s32.totalorder %s9043_s13, %s7038_s19  ;;  %p7045_p12 = scmp.lt.u32.totalorder %s7038_s19, %s9043_s13 }
  0xc3   : > { %p7041_p3 = pnand %p7039_p1, %p7778_p8 }
  0xc5   : > { %p7042_p11 = pneg %p7041_p3 }
  0xc7   : > { %p7047_p13 = pnand %p7045_p12, %p7042_p11 }
  0xc9   : > { %7050 = shalt.err (!%p7047_p13)
}
  0xca   : > { %s7051_s21 = scalar_lea.vmem %s651_s18, 32  ;;  %p7059_p7 = scmp.lt.s32.totalorder %s651_s18, %s651_s18 }
  0xcb   : > { %p7052_p0 = scmp.ne.s32.totalorder %s651_s18, %s7051_s21  ;;  %p7060_p9 = scmp.lt.s32.totalorder %s7051_s21, %s7051_s21 }
  0xcd   : > { %p7054_p2 = pnand %p7052_p0, %p7778_p8  ;;  %p7061_p4 = por %p7060_p9, %p7059_p7 }
  0xcf   : > { %p7055_p5 = pneg %p7054_p2 }
  0xd1   : > { %p7062_p10 = pnand %p7061_p4, %p7055_p5 }
  0xd3   : > { %7065 = shalt.err (!%p7062_p10)
}
  0xd4   : > { %6581 = dma.hbm_to_vmem [thread:$0]  (!%p7762_p6), %s9043_s13, 32, %s651_s18, [#allocation24], %s7583_s14, %s7583_s14, %s7584_s10  }
  0xd5   : > { %s9044_s15 = sld [smem:[#allocation65_spill]] }
  0xdb   : > { %s7066_s29 = scalar_lea.hbm %s9044_s15, 32 }
  0xdc   : > { %p7067_p1 = scmp.ne.s32.totalorder %s9044_s15, %s7066_s29  ;;  %p7073_p12 = scmp.lt.u32.totalorder %s7066_s29, %s9044_s15 }
  0xde   : > { %p7069_p3 = pnand %p7067_p1, %p7778_p8 }
  0xe0   : > { %p7070_p11 = pneg %p7069_p3 }
  0xe2   : > { %p7075_p13 = pnand %p7073_p12, %p7070_p11 }
  0xe4   : > { %7078 = shalt.err (!%p7075_p13)
}
  0xe5   : > { %s7079_s20 = scalar_lea.vmem %s677_s16, 32  ;;  %p7087_p7 = scmp.lt.s32.totalorder %s677_s16, %s677_s16 }
  0xe6   : > { %p7080_p0 = scmp.ne.s32.totalorder %s677_s16, %s7079_s20  ;;  %p7088_p9 = scmp.lt.s32.totalorder %s7079_s20, %s7079_s20 }
  0xe8   : > { %p7082_p2 = pnand %p7080_p0, %p7778_p8  ;;  %p7089_p4 = por %p7088_p9, %p7087_p7 }
  0xea   : > { %p7083_p5 = pneg %p7082_p2 }
  0xec   : > { %p7090_p10 = pnand %p7089_p4, %p7083_p5 }
  0xee   : > { %7093 = shalt.err (!%p7090_p10)
}
  0xef   : > { %6587 = dma.hbm_to_vmem [thread:$0]  (!%p7762_p6), %s9044_s15, 32, %s677_s16, [#allocation27], %s7583_s14, %s7583_s14, %s7584_s10  }
  0xf0   : > { %s7589_s30 = smov [#allocation29]   ;;  %s9045_s17 = sld [smem:[#allocation67_spill]] }
  0xf1   : > { %s702_s2 = sshll.u32 %s7589_s30, 4  ;;  %s703_s2 = int_to_ptr.vmem [resolvable:$true] %s702_s2 }
  0xf6   : > { %s7094_s29 = scalar_lea.hbm %s9045_s17, 32 }
  0xf7   : > { %p7095_p1 = scmp.ne.s32.totalorder %s9045_s17, %s7094_s29  ;;  %p7101_p12 = scmp.lt.u32.totalorder %s7094_s29, %s9045_s17 }
  0xf9   : > { %p7097_p3 = pnand %p7095_p1, %p7778_p8 }
  0xfb   : > { %p7098_p11 = pneg %p7097_p3 }
  0xfd   : > { %p7103_p13 = pnand %p7101_p12, %p7098_p11 }
  0xff   : > { %7106 = shalt.err (!%p7103_p13)
}
 0x100   : > { %s7107_s16 = scalar_lea.vmem %s703_s2, 32  ;;  %p7115_p7 = scmp.lt.s32.totalorder %s703_s2, %s703_s2 }
 0x101   : > { %p7108_p0 = scmp.ne.s32.totalorder %s703_s2, %s7107_s16  ;;  %p7116_p9 = scmp.lt.s32.totalorder %s7107_s16, %s7107_s16 }
 0x103   : > { %p7110_p2 = pnand %p7108_p0, %p7778_p8  ;;  %p7117_p4 = por %p7116_p9, %p7115_p7 }
 0x105   : > { %p7111_p5 = pneg %p7110_p2 }
 0x107   : > { %p7118_p10 = pnand %p7117_p4, %p7111_p5 }
 0x109   : > { %7121 = shalt.err (!%p7118_p10)
}
 0x10a   : > { %6593 = dma.hbm_to_vmem [thread:$0]  (!%p7762_p6), %s9045_s17, 32, %s703_s2, [#allocation30], %s7583_s14, %s7583_s14, %s7584_s10  }
 0x10b   : > { %s5706_s21 = sadd.s32 4294967294, %s7576_s24   ;;  %s7957_s30 = sadd.s32 1, %s7576_s24  }
 0x10c   : > { %s54_s26 = ssub.s32 %s7576_s24, %s7957_s30  ;;  %s57_s0 = sadd.s32 1, %s7572_s23 }
 0x10d   : > { %p55_p1 = scmp.eq.s32.totalorder %s54_s26, 0  ;;  %p64_p3 = scmp.ne.s32.totalorder %s7572_s23, %s7568_s22 }
 0x10e   : > { %p65_p11 = scmp.eq.s32.totalorder %s7576_s24, 0  ;;  %p70_p12 = scmp.ne.s32.totalorder %s7568_s22, %s7564_s1 }
 0x10f   : > { %s7968_s29 = scalar_select %p55_p1, %s7572_s23, %s57_s0  }
 0x110   : > { %p66_p13 = por %p65_p11, %p64_p3  ;;  %p9047_p0 = scmp.eq.s32.totalorder %s7746_s3, 0 }
 0x111   : > { %9046 = sst [smem:[#allocation49_spill]] %s7968_s29  ;;  %p508_p5 = scmp.eq.s32.totalorder %s7746_s3, 1 }
 0x112   : > { %p7972_p2 = por %p9047_p0, %p70_p12  ;;  %p514_p7 = scmp.eq.s32.totalorder %s5706_s21, 1 }
 0x113   : > { %p6633_p9 = scmp.lt.s32.totalorder %s7576_s24, 2  ;;  %s7979_s14 = sand.u32 1, %s7572_s23  }
 0x114   : > { %s9048_s19 = scalar_select %p7972_p2, 1, 0 }
 0x115   : > { %p7981_p4 = por %p508_p5, %p64_p3  ;;  %p7985_p10 = por %p514_p7, %p70_p12 }
 0x116   : > { %p7989_p1 = pnand %p6633_p9, %p66_p13  ;;  %s8999_s12 = sand.u32 1, %s7576_s24  }
 0x117   : > { %s9049_s10 = scalar_select %p7981_p4, 1, 0 }
 0x118   : > { %s9050_s2 = scalar_select %p7985_p10, 1, 0 }
 0x119   : > { %s9051_s25 = scalar_select %p7989_p1, 1, 0 }
 0x11a   : > { %s5727_s28 = sshll.u32 %s7979_s14, 4  ;;  %s5890_s16 = sshll.u32 %s7576_s24, 8 }
 0x11b   : > { %s760_s20 = scalar_lea.vmem [#allocation5], %s5727_s28  ;;  %s9052_s0 = sld [smem:[#allocation51_spill]] }
 0x11c   : > { %s767_s18 = sshll.u32 %s760_s20, 4  ;;  %s8005_s7 = scalar_lea.sflag [#allocation6], %s8999_s12  ;;  %s8001_s18 = int_to_ptr.vmem [resolvable:$true] %s767_s18 }
 0x11d   : > { %p8011_p11 = pneg %p7989_p1 }
 0x11f   : > { %s9053_s28 = scalar_select %p8011_p11, 1, 0 }
 0x121   : > { %s7999_s5 = scalar_lea.hbm %s9052_s0, %s5890_s16  ;;  %s7127_s21 = scalar_lea.hbm %s9052_s0, 512 }
 0x122   : > { %s7122_s9 = scalar_lea.hbm %s7999_s5, 256  ;;  %p7128_p0 = scmp.lt.u32.totalorder %s7999_s5, %s9052_s0 }
 0x123   : > { %p7123_p3 = scmp.ne.s32.totalorder %s7999_s5, %s7122_s9  ;;  %p7129_p5 = scmp.lt.u32.totalorder %s7127_s21, %s7122_s9 }
 0x124   : > { %p7131_p9 = scmp.lt.u32.totalorder %s7122_s9, %s7999_s5 }
 0x125   : > { %p7125_p12 = pnand %p8011_p11, %p7123_p3  ;;  %p7130_p7 = por %p7129_p5, %p7128_p0 }
 0x127   : > { %p7126_p13 = pneg %p7125_p12  ;;  %p7132_p10 = por %p7131_p9, %p7130_p7 }
 0x129   : > { %p7133_p4 = pnand %p7132_p10, %p7126_p13 }
 0x12b   : > { %7136 = shalt.err (!%p7133_p4)
}
 0x12c   : > { %s7137_s12 = scalar_lea.vmem %s8001_s18, 256  ;;  %s7590_s16 = smov [#allocation5]  }
 0x12d   : > { %p7138_p3 = scmp.ne.s32.totalorder %s8001_s18, %s7137_s12  ;;  %s7142_s20 = sshll.u32 %s7590_s16, 4  ;;  %s7143_s20 = int_to_ptr.vmem [resolvable:$false] %s7142_s20 }
 0x12e   : > { %s7144_s11 = scalar_lea.vmem %s7143_s20, 512  ;;  %p7145_p6 = scmp.lt.s32.totalorder %s8001_s18, %s7143_s20 }
 0x12f   : > { %p7140_p12 = pnand %p7138_p3, %p8011_p11  ;;  %p7146_p8 = scmp.lt.s32.totalorder %s7144_s11, %s7137_s12 }
 0x131   : > { %p7141_p2 = pneg %p7140_p12  ;;  %p7147_p0 = por %p7146_p8, %p7145_p6 }
 0x133   : > { %p7148_p5 = pnand %p7147_p0, %p7141_p2 }
 0x135   : > { %7151 = shalt.err (!%p7148_p5)
}
 0x136   : > { %s7591_s9 = smov 128   ;;  %s7592_s21 = smov 8  }
 0x137   : > { %6606 = dma.hbm_to_vmem [thread:$0]  (!%p7989_p1), %s7999_s5, 256, %s8001_s18, %s8005_s7, %s7591_s9, %s7591_s9, %s7592_s21  }
 0x138   : > { %s7593_s26 = smov [#allocation13]   ;;  %s7594_s13 = smov [#allocation16]  }
 0x139   : > { %s559_s0 = sshll.u32 %s7593_s26, 4  ;;  %s585_s16 = sshll.u32 %s7594_s13, 4  ;;  %s560_s0 = int_to_ptr.vmem [resolvable:$true] %s559_s0  ;;  %s8035_s16 = int_to_ptr.vmem [resolvable:$true] %s585_s16 }
 0x13a   : > { %s9054_s6 = sld [smem:[#allocation56_spill]]  ;;  %p9055_p8 = scmp.ne.s32.totalorder %s9038_s27, 0 }
 0x140   : > { %s7152_s11 = scalar_lea.hbm %s9054_s6, 512 }
 0x141   : > { %p7153_p6 = scmp.ne.s32.totalorder %s9054_s6, %s7152_s11  ;;  %p7159_p10 = scmp.lt.u32.totalorder %s7152_s11, %s9054_s6 }
 0x143   : > { %p7155_p2 = pnand %p7153_p6, %p9055_p8 }
 0x145   : > { %p7156_p4 = pneg %p7155_p2 }
 0x147   : > { %p7161_p13 = pnand %p7159_p10, %p7156_p4 }
 0x149   : > { %7164 = shalt.err (!%p7161_p13)
}
 0x14a   : > { %s7165_s13 = scalar_lea.vmem %s560_s0, 512  ;;  %p7173_p12 = scmp.lt.s32.totalorder %s560_s0, %s560_s0 }
 0x14b   : > { %p7166_p7 = scmp.ne.s32.totalorder %s560_s0, %s7165_s13  ;;  %p7174_p0 = scmp.lt.s32.totalorder %s7165_s13, %s7165_s13 }
 0x14d   : > { %p7168_p9 = pnand %p7166_p7, %p9055_p8  ;;  %p7175_p5 = por %p7174_p0, %p7173_p12 }
 0x14f   : > { %p7169_p3 = pneg %p7168_p9 }
 0x151   : > { %p7176_p1 = pnand %p7175_p5, %p7169_p3 }
 0x153   : > { %7179 = shalt.err (!%p7176_p1)
}
 0x154   : > { %p9056_p6 = scmp.ne.s32.totalorder %s9036_s4, 0  ;;  %s9057_s15 = smov 4  }
 0x155   : > { %s9058_s17 = smov 64   ;;  %s9059_s8 = sld [smem:[#allocation58_spill]] }
 0x156   : > { %6560 = dma.hbm_to_vmem [thread:$0]  (!%p9056_p6), %s9054_s6, 512, %s560_s0, [#allocation12], %s9058_s17, %s9058_s17, %s9057_s15  }
 0x15b   : > { %s7180_s26 = scalar_lea.hbm %s9059_s8, 512 }
 0x15c   : > { %p7181_p2 = scmp.ne.s32.totalorder %s9059_s8, %s7180_s26  ;;  %p7187_p10 = scmp.lt.u32.totalorder %s7180_s26, %s9059_s8 }
 0x15e   : > { %p7183_p1 = pnand %p7181_p2, %p9055_p8 }
 0x160   : > { %p7184_p4 = pneg %p7183_p1 }
 0x162   : > { %p7189_p13 = pnand %p7187_p10, %p7184_p4 }
 0x164   : > { %7192 = shalt.err (!%p7189_p13)
}
 0x165   : > { %s7193_s0 = scalar_lea.vmem %s8035_s16, 512  ;;  %p7201_p12 = scmp.lt.s32.totalorder %s8035_s16, %s8035_s16 }
 0x166   : > { %p7194_p7 = scmp.ne.s32.totalorder %s8035_s16, %s7193_s0  ;;  %p7202_p0 = scmp.lt.s32.totalorder %s7193_s0, %s7193_s0 }
 0x168   : > { %p7196_p9 = pnand %p7194_p7, %p9055_p8  ;;  %p7203_p5 = por %p7202_p0, %p7201_p12 }
 0x16a   : > { %p7197_p3 = pneg %p7196_p9 }
 0x16c   : > { %p7204_p2 = pnand %p7203_p5, %p7197_p3 }
 0x16e   : > { %7207 = shalt.err (!%p7204_p2)
}
 0x16f   : > { %6566 = dma.hbm_to_vmem [thread:$0]  (!%p9056_p6), %s9059_s8, 512, %s8035_s16, [#allocation15], %s9058_s17, %s9058_s17, %s9057_s15  }
 0x170   : > { %s7595_s18 = smov [#allocation19]   ;;  %s7596_s21 = smov [#allocation22]  }
 0x171   : > { %s611_s9 = sshll.u32 %s7595_s18, 4  ;;  %s637_s26 = sshll.u32 %s7596_s21, 4  ;;  %s612_s9 = int_to_ptr.vmem [resolvable:$true] %s611_s9  ;;  %s8084_s26 = int_to_ptr.vmem [resolvable:$true] %s637_s26 }
 0x172   : > { %s9060_s11 = sld [smem:[#allocation60_spill]] }
 0x178   : > { %s7208_s5 = scalar_lea.hbm %s9060_s11, 512 }
 0x179   : > { %p7209_p1 = scmp.ne.s32.totalorder %s9060_s11, %s7208_s5  ;;  %p7215_p13 = scmp.lt.u32.totalorder %s7208_s5, %s9060_s11 }
 0x17b   : > { %p7211_p4 = pnand %p7209_p1, %p9055_p8 }
 0x17d   : > { %p7212_p10 = pneg %p7211_p4 }
 0x17f   : > { %p7217_p7 = pnand %p7215_p13, %p7212_p10 }
 0x181   : > { %7220 = shalt.err (!%p7217_p7)
}
 0x182   : > { %s7221_s29 = scalar_lea.vmem %s612_s9, 512  ;;  %p7229_p0 = scmp.lt.s32.totalorder %s612_s9, %s612_s9 }
 0x183   : > { %p7222_p9 = scmp.ne.s32.totalorder %s612_s9, %s7221_s29  ;;  %p7230_p5 = scmp.lt.s32.totalorder %s7221_s29, %s7221_s29 }
 0x185   : > { %p7224_p3 = pnand %p7222_p9, %p9055_p8  ;;  %p7231_p2 = por %p7230_p5, %p7229_p0 }
 0x187   : > { %p7225_p12 = pneg %p7224_p3 }
 0x189   : > { %p7232_p11 = pnand %p7231_p2, %p7225_p12 }
 0x18b   : > { %7235 = shalt.err (!%p7232_p11)
}
 0x18c   : > { %6572 = dma.hbm_to_vmem [thread:$0]  (!%p9056_p6), %s9060_s11, 512, %s612_s9, [#allocation18], %s9058_s17, %s9058_s17, %s9057_s15  }
 0x18d   : > { %s9061_s20 = sld [smem:[#allocation62_spill]] }
 0x193   : > { %s7236_s5 = scalar_lea.hbm %s9061_s20, 512 }
 0x194   : > { %p7237_p1 = scmp.ne.s32.totalorder %s9061_s20, %s7236_s5  ;;  %p7243_p10 = scmp.lt.u32.totalorder %s7236_s5, %s9061_s20 }
 0x196   : > { %p7239_p11 = pnand %p7237_p1, %p9055_p8 }
 0x198   : > { %p7240_p4 = pneg %p7239_p11 }
 0x19a   : > { %p7245_p13 = pnand %p7243_p10, %p7240_p4 }
 0x19c   : > { %7248 = shalt.err (!%p7245_p13)
}
 0x19d   : > { %s7249_s9 = scalar_lea.vmem %s8084_s26, 512  ;;  %p7257_p12 = scmp.lt.s32.totalorder %s8084_s26, %s8084_s26 }
 0x19e   : > { %p7250_p7 = scmp.ne.s32.totalorder %s8084_s26, %s7249_s9  ;;  %p7258_p0 = scmp.lt.s32.totalorder %s7249_s9, %s7249_s9 }
 0x1a0   : > { %p7252_p9 = pnand %p7250_p7, %p9055_p8  ;;  %p7259_p5 = por %p7258_p0, %p7257_p12 }
 0x1a2   : > { %p7253_p3 = pneg %p7252_p9 }
 0x1a4   : > { %p7260_p2 = pnand %p7259_p5, %p7253_p3 }
 0x1a6   : > { %7263 = shalt.err (!%p7260_p2)
}
 0x1a7   : > { %6578 = dma.hbm_to_vmem [thread:$0]  (!%p9056_p6), %s9061_s20, 512, %s8084_s26, [#allocation21], %s9058_s17, %s9058_s17, %s9057_s15  }
 0x1a8   : > { %s7597_s21 = smov [#allocation25]   ;;  %s7598_s5 = smov [#allocation28]  }
 0x1a9   : > { %s663_s12 = sshll.u32 %s7597_s21, 4  ;;  %s689_s0 = sshll.u32 %s7598_s5, 4  ;;  %s664_s12 = int_to_ptr.vmem [resolvable:$true] %s663_s12  ;;  %s8133_s0 = int_to_ptr.vmem [resolvable:$true] %s689_s0 }
 0x1aa   : > { %s9062_s29 = sld [smem:[#allocation64_spill]] }
 0x1b0   : > { %s7264_s9 = scalar_lea.hbm %s9062_s29, 512 }
 0x1b1   : > { %p7265_p1 = scmp.ne.s32.totalorder %s9062_s29, %s7264_s9  ;;  %p7271_p10 = scmp.lt.u32.totalorder %s7264_s9, %s9062_s29 }
 0x1b3   : > { %p7267_p11 = pnand %p7265_p1, %p9055_p8 }
 0x1b5   : > { %p7268_p4 = pneg %p7267_p11 }
 0x1b7   : > { %p7273_p13 = pnand %p7271_p10, %p7268_p4 }
 0x1b9   : > { %7276 = shalt.err (!%p7273_p13)
}
 0x1ba   : > { %s7277_s18 = scalar_lea.vmem %s664_s12, 512  ;;  %p7285_p12 = scmp.lt.s32.totalorder %s664_s12, %s664_s12 }
 0x1bb   : > { %p7278_p7 = scmp.ne.s32.totalorder %s664_s12, %s7277_s18  ;;  %p7286_p0 = scmp.lt.s32.totalorder %s7277_s18, %s7277_s18 }
 0x1bd   : > { %p7280_p9 = pnand %p7278_p7, %p9055_p8  ;;  %p7287_p5 = por %p7286_p0, %p7285_p12 }
 0x1bf   : > { %p7281_p3 = pneg %p7280_p9 }
 0x1c1   : > { %p7288_p2 = pnand %p7287_p5, %p7281_p3 }
 0x1c3   : > { %7291 = shalt.err (!%p7288_p2)
}
 0x1c4   : > { %6584 = dma.hbm_to_vmem [thread:$0]  (!%p9056_p6), %s9062_s29, 512, %s664_s12, [#allocation24], %s9058_s17, %s9058_s17, %s9057_s15  }
 0x1c5   : > { %s9063_s13 = sld [smem:[#allocation66_spill]] }
 0x1cb   : > { %s7292_s16 = scalar_lea.hbm %s9063_s13, 1024 }
 0x1cc   : > { %p7293_p1 = scmp.ne.s32.totalorder %s9063_s13, %s7292_s16  ;;  %p7299_p10 = scmp.lt.u32.totalorder %s7292_s16, %s9063_s13 }
 0x1ce   : > { %p7295_p11 = pnand %p7293_p1, %p9055_p8 }
 0x1d0   : > { %p7296_p4 = pneg %p7295_p11 }
 0x1d2   : > { %p7301_p13 = pnand %p7299_p10, %p7296_p4 }
 0x1d4   : > { %7304 = shalt.err (!%p7301_p13)
}
 0x1d5   : > { %s7305_s12 = scalar_lea.vmem %s8133_s0, 1024  ;;  %p7313_p12 = scmp.lt.s32.totalorder %s8133_s0, %s8133_s0 }
 0x1d6   : > { %p7306_p7 = scmp.ne.s32.totalorder %s8133_s0, %s7305_s12  ;;  %p7314_p0 = scmp.lt.s32.totalorder %s7305_s12, %s7305_s12 }
 0x1d8   : > { %p7308_p9 = pnand %p7306_p7, %p9055_p8  ;;  %p7315_p5 = por %p7314_p0, %p7313_p12 }
 0x1da   : > { %p7309_p3 = pneg %p7308_p9 }
 0x1dc   : > { %p7316_p2 = pnand %p7315_p5, %p7309_p3 }
 0x1de   : > { %7319 = shalt.err (!%p7316_p2)
}
 0x1df   : > { %6590 = dma.hbm_to_vmem [thread:$0]  (!%p9056_p6), %s9063_s13, 1024, %s8133_s0, [#allocation27], %s9058_s17, %s9058_s17, %s9057_s15  }
 0x1e0   : > { %s7599_s21 = smov [#allocation31]   ;;  %s7600_s16 = smov [#allocation32]  }
 0x1e1   : > { %s716_s5 = sshll.u32 %s7599_s21, 4  ;;  %s727_s9 = sshll.u32 %s7600_s16, 4  ;;  %s717_s5 = int_to_ptr.vmem [resolvable:$true] %s716_s5  ;;  %s8182_s9 = int_to_ptr.vmem [resolvable:$true] %s727_s9 }
 0x1e2   : > { %s9064_s18 = sld [smem:[#allocation68_spill]] }
 0x1e8   : > { %s7320_s12 = scalar_lea.hbm %s9064_s18, 16 }
 0x1e9   : > { %p7321_p1 = scmp.ne.s32.totalorder %s9064_s18, %s7320_s12  ;;  %p7327_p10 = scmp.lt.u32.totalorder %s7320_s12, %s9064_s18 }
 0x1eb   : > { %p7323_p11 = pnand %p7321_p1, %p9055_p8 }
 0x1ed   : > { %p7324_p4 = pneg %p7323_p11 }
 0x1ef   : > { %p7329_p13 = pnand %p7327_p10, %p7324_p4 }
 0x1f1   : > { %7332 = shalt.err (!%p7329_p13)
}
 0x1f2   : > { %s7333_s17 = scalar_lea.vmem %s717_s5, 16  ;;  %s7340_s0 = scalar_lea.vmem %s717_s5, 32 }
 0x1f3   : > { %p7334_p7 = scmp.ne.s32.totalorder %s717_s5, %s7333_s17  ;;  %p7341_p12 = scmp.lt.s32.totalorder %s717_s5, %s717_s5 }
 0x1f4   : > { %p7342_p0 = scmp.lt.s32.totalorder %s7340_s0, %s7333_s17 }
 0x1f5   : > { %p7336_p9 = pnand %p7334_p7, %p9055_p8 }
 0x1f6   : > { %p7343_p5 = por %p7342_p0, %p7341_p12 }
 0x1f7   : > { %p7337_p3 = pneg %p7336_p9 }
 0x1f9   : > { %p7344_p2 = pnand %p7343_p5, %p7337_p3 }
 0x1fb   : > { %7347 = shalt.err (!%p7344_p2)
}
 0x1fc   : > { %6596 = dma.hbm_to_vmem [thread:$0]  (!%p9056_p6), %s9064_s18, 16, %s717_s5, [#allocation30]  }
 0x1fd   : > { %s9065_s16 = sld [smem:[#allocation69_spill]] }
 0x203   : > { %s7348_s6 = scalar_lea.hbm %s9065_s16, 16 }
 0x204   : > { %p7349_p1 = scmp.ne.s32.totalorder %s9065_s16, %s7348_s6  ;;  %p7355_p10 = scmp.lt.u32.totalorder %s7348_s6, %s9065_s16 }
 0x206   : > { %p7351_p11 = pnand %p7349_p1, %p9055_p8 }
 0x208   : > { %p7352_p4 = pneg %p7351_p11 }
 0x20a   : > { %p7357_p13 = pnand %p7355_p10, %p7352_p4 }
 0x20c   : > { %7360 = shalt.err (!%p7357_p13)
}
 0x20d   : > { %s7361_s5 = scalar_lea.vmem %s8182_s9, 16  ;;  %s7368_s17 = scalar_lea.vmem %s8182_s9, 32 }
 0x20e   : > { %p7362_p7 = scmp.ne.s32.totalorder %s8182_s9, %s7361_s5  ;;  %p7369_p12 = scmp.lt.s32.totalorder %s8182_s9, %s8182_s9 }
 0x20f   : > { %p7370_p0 = scmp.lt.s32.totalorder %s7368_s17, %s7361_s5 }
 0x210   : > { %p7364_p9 = pnand %p7362_p7, %p9055_p8 }
 0x211   : > { %p7371_p5 = por %p7370_p0, %p7369_p12 }
 0x212   : > { %p7365_p3 = pneg %p7364_p9 }
 0x214   : > { %p7372_p2 = pnand %p7371_p5, %p7365_p3 }
 0x216   : > { %7375 = shalt.err (!%p7372_p2)
}
 0x217   : > { %6599 = dma.hbm_to_vmem [thread:$0]  (!%p9056_p6), %s9065_s16, 16, %s8182_s9, [#allocation33]  }
 0x218   : > { %s8227_s27 = sshll.u32 %s7979_s14, 3  ;;  %s8230_s29 = sshll.u32 %s7576_s24, 7 }
 0x219   : > { %s9066_s6 = sld [smem:[#allocation50_spill]]  ;;  %s742_s4 = scalar_lea.vmem [#allocation2], %s8227_s27 }
 0x21a   : > { %s749_s12 = sshll.u32 %s742_s4, 4  ;;  %s739_s8 = scalar_lea.sflag [#allocation3], %s7979_s14  ;;  %s750_s12 = int_to_ptr.vmem [resolvable:$true] %s749_s12 }
 0x21b   : > { %p9067_p6 = scmp.ne.s32.totalorder %s9053_s28, 0 }
 0x21f   : > { %s8236_s26 = scalar_lea.hbm %s9066_s6, %s8230_s29  ;;  %s7381_s17 = scalar_lea.hbm %s9066_s6, 256 }
 0x220   : > { %s7376_s9 = scalar_lea.hbm %s8236_s26, 128  ;;  %p7382_p4 = scmp.lt.u32.totalorder %s8236_s26, %s9066_s6 }
 0x221   : > { %p7377_p8 = scmp.ne.s32.totalorder %s8236_s26, %s7376_s9  ;;  %p7383_p10 = scmp.lt.u32.totalorder %s7381_s17, %s7376_s9 }
 0x222   : > { %p7385_p7 = scmp.lt.u32.totalorder %s7376_s9, %s8236_s26 }
 0x223   : > { %p7379_p1 = pnand %p7377_p8, %p9067_p6  ;;  %p7384_p13 = por %p7383_p10, %p7382_p4 }
 0x225   : > { %p7380_p11 = pneg %p7379_p1  ;;  %p7386_p9 = por %p7385_p7, %p7384_p13 }
 0x227   : > { %p7387_p3 = pnand %p7386_p9, %p7380_p11 }
 0x229   : > { %7390 = shalt.err (!%p7387_p3)
}
 0x22a   : > { %s7391_s14 = scalar_lea.vmem %s750_s12, 128  ;;  %s7601_s11 = smov [#allocation2]  }
 0x22b   : > { %p7392_p12 = scmp.ne.s32.totalorder %s750_s12, %s7391_s14  ;;  %s7396_s21 = sshll.u32 %s7601_s11, 4  ;;  %s7397_s21 = int_to_ptr.vmem [resolvable:$false] %s7396_s21 }
 0x22c   : > { %s7398_s4 = scalar_lea.vmem %s7397_s21, 256  ;;  %p7399_p2 = scmp.lt.s32.totalorder %s750_s12, %s7397_s21 }
 0x22d   : > { %p7394_p0 = pnand %p7392_p12, %p9067_p6  ;;  %p7400_p8 = scmp.lt.s32.totalorder %s7398_s4, %s7391_s14 }
 0x22f   : > { %p7395_p5 = pneg %p7394_p0  ;;  %p7401_p1 = por %p7400_p8, %p7399_p2 }
 0x231   : > { %p7402_p4 = pnand %p7401_p1, %p7395_p5 }
 0x233   : > { %7405 = shalt.err (!%p7402_p4)
}
 0x234   : > { %p9068_p10 = scmp.ne.s32.totalorder %s9051_s25, 0  ;;  %s9069_s5 = sld [smem:[#allocation52_spill]] }
 0x235   : > { %s781_s0 = scalar_lea.vmem [#allocation7], %s8227_s27 }
 0x236   : > { %6603 = dma.hbm_to_vmem [thread:$0]  (!%p9068_p10), %s8236_s26, 128, %s750_s12, %s739_s8  }
 0x237   : > { %s788_s20 = sshll.u32 %s781_s0, 4  ;;  %s789_s20 = int_to_ptr.vmem [resolvable:$true] %s788_s20 }
 0x23a   : > { %s8261_s17 = scalar_lea.hbm %s9069_s5, %s8230_s29  ;;  %s7411_s26 = scalar_lea.hbm %s9069_s5, 256 }
 0x23b   : > { %s7406_s14 = scalar_lea.hbm %s8261_s17, 128  ;;  %p7412_p9 = scmp.lt.u32.totalorder %s8261_s17, %s9069_s5 }
 0x23c   : > { %p7407_p11 = scmp.ne.s32.totalorder %s8261_s17, %s7406_s14  ;;  %p7413_p3 = scmp.lt.u32.totalorder %s7411_s26, %s7406_s14 }
 0x23d   : > { %p7415_p0 = scmp.lt.u32.totalorder %s7406_s14, %s8261_s17 }
 0x23e   : > { %p7409_p13 = pnand %p7407_p11, %p9067_p6  ;;  %p7414_p12 = por %p7413_p3, %p7412_p9 }
 0x240   : > { %p7410_p7 = pneg %p7409_p13  ;;  %p7416_p5 = por %p7415_p0, %p7414_p12 }
 0x242   : > { %p7417_p2 = pnand %p7416_p5, %p7410_p7 }
 0x244   : > { %7420 = shalt.err (!%p7417_p2)
}
 0x245   : > { %s7421_s4 = scalar_lea.vmem %s789_s20, 128  ;;  %s7602_s9 = smov [#allocation7]  }
 0x246   : > { %p7422_p8 = scmp.ne.s32.totalorder %s789_s20, %s7421_s4  ;;  %s7426_s15 = sshll.u32 %s7602_s9, 4  ;;  %s7427_s15 = int_to_ptr.vmem [resolvable:$false] %s7426_s15 }
 0x247   : > { %s7428_s0 = scalar_lea.vmem %s7427_s15, 256  ;;  %p7429_p11 = scmp.lt.s32.totalorder %s789_s20, %s7427_s15 }
 0x248   : > { %p7424_p1 = pnand %p7422_p8, %p9067_p6  ;;  %p7430_p13 = scmp.lt.s32.totalorder %s7428_s0, %s7421_s4 }
 0x24a   : > { %p7425_p4 = pneg %p7424_p1  ;;  %p7431_p10 = por %p7430_p13, %p7429_p11 }
 0x24c   : > { %p7432_p3 = pnand %p7431_p10, %p7425_p4 }
 0x24e   : > { %7435 = shalt.err (!%p7432_p3)
}
 0x24f   : > { %p9070_p9 = scmp.ne.s32.totalorder %s9051_s25, 0  ;;  %s9071_s21 = sld [smem:[#allocation53_spill]] }
 0x250   : > { %s799_s12 = scalar_lea.vmem [#allocation8], %s8227_s27  ;;  %s9072_s4 = sand.u32 1, %s7576_s24  }
 0x251   : > { %6609 = dma.hbm_to_vmem [thread:$0]  (!%p9070_p9), %s8261_s17, 128, %s789_s20, %s8005_s7  }
 0x252   : > { %s806_s8 = sshll.u32 %s799_s12, 4  ;;  %s796_s9 = scalar_lea.sflag [#allocation9], %s9072_s4  ;;  %s807_s8 = int_to_ptr.vmem [resolvable:$true] %s806_s8 }
 0x255   : > { %s8286_s26 = scalar_lea.hbm %s9071_s21, %s8230_s29  ;;  %s7441_s20 = scalar_lea.hbm %s9071_s21, 256 }
 0x256   : > { %s7436_s15 = scalar_lea.hbm %s8286_s26, 128  ;;  %p7442_p0 = scmp.lt.u32.totalorder %s8286_s26, %s9071_s21 }
 0x257   : > { %p7437_p10 = scmp.ne.s32.totalorder %s8286_s26, %s7436_s15  ;;  %p7443_p5 = scmp.lt.u32.totalorder %s7441_s20, %s7436_s15 }
 0x258   : > { %p7445_p8 = scmp.lt.u32.totalorder %s7436_s15, %s8286_s26 }
 0x259   : > { %p7439_p7 = pnand %p7437_p10, %p9067_p6  ;;  %p7444_p2 = por %p7443_p5, %p7442_p0 }
 0x25b   : > { %p7440_p12 = pneg %p7439_p7  ;;  %p7446_p1 = por %p7445_p8, %p7444_p2 }
 0x25d   : > { %p7447_p4 = pnand %p7446_p1, %p7440_p12 }
 0x25f   : > { %7450 = shalt.err (!%p7447_p4)
}
 0x260   : > { %s7451_s27 = scalar_lea.vmem %s807_s8, 128  ;;  %s7603_s14 = smov [#allocation8]  }
 0x261   : > { %p7452_p11 = scmp.ne.s32.totalorder %s807_s8, %s7451_s27  ;;  %s7456_s11 = sshll.u32 %s7603_s14, 4  ;;  %s7457_s11 = int_to_ptr.vmem [resolvable:$false] %s7456_s11 }
 0x262   : > { %s7458_s12 = scalar_lea.vmem %s7457_s11, 256  ;;  %p7459_p10 = scmp.lt.s32.totalorder %s807_s8, %s7457_s11 }
 0x263   : > { %p7454_p13 = pnand %p7452_p11, %p9067_p6  ;;  %p7460_p7 = scmp.lt.s32.totalorder %s7458_s12, %s7451_s27 }
 0x265   : > { %p7455_p3 = pneg %p7454_p13  ;;  %p7461_p9 = por %p7460_p7, %p7459_p10 }
 0x267   : > { %p7462_p0 = pnand %p7461_p9, %p7455_p3 }
 0x269   : > { %7465 = shalt.err (!%p7462_p0)
}
 0x26a   : > { %p9073_p5 = scmp.ne.s32.totalorder %s9051_s25, 0  ;;  %s9074_s4 = sld [smem:[#allocation48_spill]] }
 0x26c   : > { %6612 = dma.hbm_to_vmem [thread:$0]  (!%p9073_p5), %s8286_s26, 128, %s807_s8, %s796_s9  }
 0x270   : > { %p9075_p12 = scmp.ne.s32.totalorder %s9074_s4, 0 }
 0x271   : > { %s8311_s28 = sand.u32 (!%p9075_p12), 1, %s7568_s22   ;;  %p9076_p6 = scmp.ne.s32.totalorder (!%p9075_p12), %s9048_s19, 0 }
 0x272   : > { %815 = sbr.rel (%p9075_p12) target bundleno = 14609 (0x3911), region = 100  ;;  %s8314_s15 = sshll.u32 (!%p9075_p12), %s8311_s28, 3 }
 0x273   : > { %s818_s7 = scalar_lea.sflag (!%p9075_p12), [#allocation3], %s8311_s28  ;;  %s821_s17 = scalar_lea.vmem (!%p9075_p12), [#allocation2], %s8314_s15 }
 0x279   : > { %7511 = dma.done.wait (%p9076_p6), %s818_s7, 128  }
 0x27a   : > { %7513 = vsyncadd (%p9076_p6), %s818_s7, 4294967168  ;;  %s826_s25 = sand.u32 1, %s7746_s3   ;;  %s5736_s26 = sshll.u32 %s8311_s28, 4 }
 0x27b   : > { %s827_s8 = scalar_lea.sflag [#allocation6], %s826_s25  ;;  %s8324_s9 = scalar_lea.vmem [#allocation5], %s5736_s26 }
 0x27c   : > { %7515 = dma.done.wait (%p9076_p6), %s827_s8, 384  }
 0x27d   : > { %7517 = vsyncadd (%p9076_p6), %s827_s8, 4294966912  ;;  %s839_s20 = scalar_lea.vmem [#allocation7], %s8314_s15  ;;  %s845_s29 = scalar_lea.sflag [#allocation9], %s826_s25 }
 0x27e   : > { %s848_s0 = scalar_lea.vmem [#allocation8], %s8314_s15 }
 0x27f   : > { %7519 = dma.done.wait (%p9076_p6), %s845_s29, 128  }
 0x280   : > { %7521 = vsyncadd (%p9076_p6), %s845_s29, 4294967168  ;;  %p9077_p9 = scmp.eq.s32.totalorder %s7746_s3, 0 }
 0x282   : > { %7523 = dma.done.wait (%p9077_p9), [#allocation9], 512   ;;  %p9078_p2 = pmov %p9077_p9 }
 0x284   : > { %7525 = vsyncadd (%p9078_p2), [#allocation9], 4294966784  ;;  %p9079_p8 = pmov %p9078_p2 }
 0x285   : > { %p9080_p1 = pmov %p9078_p2 }
 0x286   : > { %7527 = dma.done.wait (%p9079_p8), [#allocation12], 544  }
 0x287   : > { %7529 = vsyncadd (%p9080_p1), [#allocation12], 4294966752  ;;  %p9081_p4 = pmov %p9080_p1 }
 0x288   : > { %p9082_p11 = pmov %p9080_p1 }
 0x289   : > { %7531 = dma.done.wait (%p9081_p4), [#allocation15], 544  }
 0x28a   : > { %7533 = vsyncadd (%p9082_p11), [#allocation15], 4294966752  ;;  %p9083_p13 = pmov %p9080_p1 }
 0x28b   : > { %p9084_p3 = pmov %p9080_p1 }
 0x28c   : > { %7535 = dma.done.wait (%p9083_p13), [#allocation18], 544  }
 0x28d   : > { %7537 = vsyncadd (%p9084_p3), [#allocation18], 4294966752  ;;  %p9085_p10 = pmov %p9080_p1 }
 0x28e   : > { %p9086_p7 = pmov %p9080_p1 }
 0x28f   : > { %7539 = dma.done.wait (%p9085_p10), [#allocation21], 544  }
 0x290   : > { %7541 = vsyncadd (%p9086_p7), [#allocation21], 4294966752  ;;  %p9087_p0 = pmov %p9080_p1 }
 0x292   : > { %7543 = dma.done.wait (%p9087_p0), [#allocation24], 544   ;;  %p9088_p5 = pmov %p9087_p0 }
 0x293   : > { %p9089_p12 = pmov %p9087_p0 }
 0x294   : > { %7545 = vsyncadd (%p9088_p5), [#allocation24], 4294966752 }
 0x295   : > { %7547 = dma.done.wait (%p9089_p12), [#allocation27], 1056   ;;  %p9090_p6 = pmov %p9087_p0 }
 0x296   : > { %p9091_p9 = pmov %p9087_p0 }
 0x297   : > { %7549 = vsyncadd (%p9090_p6), [#allocation27], 4294966240 }
 0x298   : > { %7551 = dma.done.wait (%p9091_p9), [#allocation30], 48   ;;  %p9092_p2 = pmov %p9087_p0 }
 0x299   : > { %p9093_p8 = pmov %p9087_p0 }
 0x29a   : > { %7553 = vsyncadd (%p9092_p2), [#allocation30], 4294967248 }
 0x29b   : > { %7555 = dma.done.wait (%p9093_p8), [#allocation33], 16   ;;  %p9094_p1 = pmov %p9087_p0 }
 0x29c   : > { %v7604_v0 = vmov 0.0   ;;  %vm7605_vm0 = vmmov 0   ;;  %v6790_v1 = vld [vmem:[#allocation10] sm:$0xff]   ;;  %v6791_v2 = vld [vmem:[#allocation10 + $0x8] sm:$0xff]   ;;  %v8380_v3 = vld [vmem:[%s821_s17] sm:$0xff]  ;;  %vm1014_vm1 = vcmask 261120  }
 0x29d   : > { %7557 = vsyncadd (%p9094_p1), [#allocation33], 4294967280  ;;  %6037 = vmatprep.subr.bf16.mxu0 %v7604_v0  ;;  %6041 = vmatprep.mubr.msk.bf16.mxu0 %vm7605_vm0, %v7604_v0  ;;  %v990_v4 = vpack.c.bf16 %v8380_v3, %v8380_v3  ;;  %v5756_v5 = vld [vmem:[#allocation11] ss:$0 sm:$0xff]  ;;  %s7606_s19 = smov 64   ;;  %s7607_s27 = smov 96  }
 0x29e   : > { %6045 = vmatprep.subr.mxu1 %v7604_v0  ;;  %6047 = vmatprep.mubr.msk.f32.mxu1 %vm7605_vm0, %v7604_v0  ;;  %s7608_s14 = smov 88   ;;  %vm1066_vm2 = vcmask 64512   ;;  %s7609_s11 = smov 120   ;;  %vm1399_vm3 = vcmask 1043456   ;;  %v1060_v37 = vld [vmem:[#allocation13 + $0x4] sm:$0xf] }
 0x29f   : > { %6038 = vmatpush3.bf16.msra.mxu0 %v6790_v1  ;;  %s7610_s12 = smov 56   ;;  %s7611_s4 = smov 80   ;;  %v1401_v38 = vsel %vm1399_vm3, %v1060_v37, 0  ;;  %v1059_v41 = vld [vmem:[#allocation13] sm:$0xf]  ;;  %vm8518_vm4 = vmpackc.low %vm1066_vm2, %vm1066_vm2  ;;  %vm2167_vm5 = vcmask 97280  }
 0x2a0   : > { %6039 = vmatprep.subr.bf16.mxu0 %v7604_v0  ;;  %s7612_s7 = smov 112   ;;  %v1447_v44 = vsel %vm1399_vm3, %v1059_v41, 0  ;;  %s7613_s17 = smov 48   ;;  %vm7618_vm6 = vmmov 1   ;;  %vm3112_vm8 = vcmask 523264  }
 0x2a1   : > { %s7614_s25 = smov 72   ;;  %s7615_s26 = smov 104   ;;  %vm8551_vm7 = vmpackc.low %vm1399_vm3, %vm7618_vm6 }
 0x2a2   : > { %s7616_s8 = smov 40   ;;  %p9100_p11 = scmp.ne.s32.totalorder %s9049_s10, 0 }
 0x2a3   : > { %6040 = vmatpush3.bf16.msra.mxu0 %v6791_v2 }
 0x2a4   : > { %6060 = vmatprep.subr.mxu0 %v7604_v0 }
 0x2a6   : > { %6042 = vmatmul.mubr.msk.bf16.vlgmr.msra.gmra.mrb[0].mxu0 %vm1014_vm1, %v990_v4 }
 0x2a7   : > { %6062 = vmatprep.mubr.msk.f32.mxu0 %vm7605_vm0, %v7604_v0 }
 0x379   : > { %v1052_v6 = vpop.f32.mrb[0].mxu0 }
 0x37a   : > { %v8389_v7 = vadd.f32 %v5756_v5, %v1052_v6  ;;  %v6043_v8 = vpop.f32.mrb[1].mxu0 }
 0x37b   : > { %v1055_v9 = vpop.f32.mrb[2].mxu0 }
 0x37c   : > { %1153 = vrot.lane.b32.xlu1 %v8389_v7, %s7606_s19  ;;  %1064 = vrot.lane.b32.xlu0 %v8389_v7, %s7607_s27  ;;  %v6044_v10 = vpop.f32.mrb[3].mxu0  ;;  %v8399_v12 = vmul.f32 0.35355338, %v8389_v7 }
 0x380   : > { %1232 = vrot.lane.b32.xlu1 %v8389_v7, %s7608_s14 }
 0x3ee   : > { %v1065_v11 = vpop.permute.xlu0 %1064  ;;  %v1154_v13 = vpop.permute.xlu1 %1153 }
 0x3ef   : > { %6046 = vmatpush3.xpose.msk.msra.mxu1 %vm1066_vm2, %v1065_v11 }
 0x3f0   : > { %6050 = vmatprep.subr.mxu1 %v7604_v0 }
 0x3f2   : > { %6048 = vmatmul.mubr.msk.f32.vlgmr.msra.gmra.mrb[0].mxu1 %vm1066_vm2, %v8399_v12  ;;  %v1233_v22 = vpop.permute.xlu1 %1232 }
 0x3f3   : > { %6051 = vmatpush3.msra.mxu1 %v1154_v13  ;;  %6052 = vmatprep.mubr.msk.f32.mxu1 %vm7605_vm0, %v7604_v0  ;;  %v1061_v13 = vld [vmem:[#allocation13 + $0x8] sm:$0xf] }
 0x3f4   : > { %6055 = vmatprep.subr.mxu1 %v7604_v0 }
 0x4c5   : > { %v1138_v14 = vpop.f32.mrb[0].mxu1 }
 0x4c6   : > { %v6049_v15 = vpop.f32.mrb[1].mxu1  ;;  %v1142_v16 = vsel %vm1066_vm2, %v1138_v14, -inf }
 0x4c7   : > { %1143 = vmax.xlane.f32.xlu0 %v1142_v16 }
 0x554   : > { %v1144_v17 = vpop.xlane.xlu0 %1143 }
 0x555   : > { %v1145_v18 = vsub.f32 %v1138_v14, %v1144_v17  ;;  %v1659_v14 = vsel %vm1399_vm3, %v1061_v13, 0 }
 0x557   : > { %v1146_v19 = vmul.f32 1.442695, %v1145_v18 }
 0x559   : > { %6814 = vpow2.f32 %v1146_v19 }
 0x563   : > { %v6815_v20 = vpop.eup %6814 }
 0x564   : > { %v1148_v21 = vsel %vm1066_vm2, %v6815_v20, 0.0 }
 0x565   : > { %1149 = vadd.xlane.f32.xlu1 %v1148_v21 }
 0x576   : > { %1230 = vrot.lane.b32.xlu1 %v8399_v12, %s7609_s11 }
 0x5f2   : > { %v1150_v23 = vpop.xlane.xlu1 %1149 }
 0x5f3   : > { %6816 = vrcp.f32 %v1150_v23 }
 0x5f6   : > { %v1231_v26 = vpop.permute.xlu1 %1230 }
 0x5fd   : > { %v6817_v24 = vpop.eup %6816 }
 0x5fe   : > { %v1152_v25 = vmul.f32 %v6817_v24, %v6815_v20 }
 0x600   : > { %6053 = vmatmul.mubr.msk.f32.vlgmr.msra.gmra.mrb[2].mxu1 %vm1066_vm2, %v1152_v25 }
 0x601   : > { %6056 = vmatpush3.xpose.msk.msra.mxu1 %vm1066_vm2, %v1233_v22  ;;  %6057 = vmatprep.mubr.msk.f32.mxu1 %vm7605_vm0, %v7604_v0 }
 0x602   : > { %6065 = vmatprep.subr.bf16.mxu1 %v7604_v0 }
 0x604   : > { %6058 = vmatmul.mubr.msk.f32.vlgmr.msra.gmra.mrb[4].mxu1 %vm1066_vm2, %v1231_v26 }
 0x605   : > { %6067 = vmatprep.mubr.msk.bf16.mxu1 %vm7605_vm0, %v7604_v0  ;;  %6066 = vmatpush3.bf16.msra.mxu1 %v1401_v38 }
 0x606   : > { %6077 = vmatprep.subr.mxu1 %v7604_v0 }
 0x6d3   : > { %v1225_v27 = vpop.f32.mrb[2].mxu1 }
 0x6d4   : > { %v6054_v28 = vpop.f32.mrb[3].mxu1  ;;  %v1229_v45 = vpack.c.bf16 %v1225_v27, %v1225_v27 }
 0x6d7   : > { %v1304_v29 = vpop.f32.mrb[4].mxu1 }
 0x6d8   : > { %v6059_v30 = vpop.f32.mrb[5].mxu1  ;;  %v1308_v31 = vsel %vm1066_vm2, %v1304_v29, -inf }
 0x6d9   : > { %1309 = vmax.xlane.f32.xlu1 %v1308_v31 }
 0x766   : > { %v1310_v32 = vpop.xlane.xlu1 %1309 }
 0x767   : > { %v1311_v33 = vsub.f32 %v1304_v29, %v1310_v32 }
 0x769   : > { %v1312_v34 = vmul.f32 1.442695, %v1311_v33 }
 0x76b   : > { %6818 = vpow2.f32 %v1312_v34 }
 0x775   : > { %v6819_v35 = vpop.eup %6818 }
 0x776   : > { %v1314_v36 = vsel %vm1066_vm2, %v6819_v35, 0.0 }
 0x777   : > { %1315 = vadd.xlane.f32.xlu0 %v1314_v36 }
 0x78d   : > { %1319 = vrot.lane.b32.xlu0 %v8389_v7, %s7610_s12 }
 0x791   : > { %1491 = vrot.lane.b32.xlu0 %v8389_v7, %s7611_s4 }
 0x795   : > { %1489 = vrot.lane.b32.xlu0 %v8399_v12, %s7612_s7 }
 0x804   : > { %v1316_v39 = vpop.xlane.xlu0 %1315 }
 0x805   : > { %6820 = vrcp.f32 %v1316_v39 }
 0x808   : > { %v1320_v40 = vpop.permute.xlu0 %1319 }
 0x809   : > { %6061 = vmatpush3.msra.mxu0 %v1320_v40 }
 0x80a   : > { %6071 = vmatprep.subr.bf16.mxu0 %v7604_v0 }
 0x80c   : > { %v1492_v49 = vpop.permute.xlu0 %1491 }
 0x80f   : > { %v6821_v42 = vpop.eup %6820 }
 0x810   : > { %v1318_v43 = vmul.f32 %v6821_v42, %v6819_v35  ;;  %v1490_v54 = vpop.permute.xlu0 %1489  ;;  %v1062_v35 = vld [vmem:[#allocation13 + $0xc] sm:$0xf] }
 0x812   : > { %6063 = vmatmul.mubr.msk.f32.vlgmr.msra.gmra.mrb[4].mxu0 %vm1066_vm2, %v1318_v43  ;;  %v5776_v43 = vld [vmem:[#allocation14] ss:$0 sm:$0xff] }
 0x813   : > { %6072 = vmatpush3.bf16.msra.mxu0 %v1447_v44  ;;  %6073 = vmatprep.mubr.msk.bf16.mxu0 %vm7605_vm0, %v7604_v0 }
 0x814   : > { %6082 = vmatprep.subr.mxu0 %v7604_v0 }
 0x816   : > { %6074 = vmatmul.mubr.msk.bf16.vlgmr.msra.gmra.mrb[8].mxu0 %vm1066_vm2, %v1229_v45 }
 0x817   : > { %6084 = vmatprep.mubr.msk.f32.mxu0 %vm7605_vm0, %v7604_v0 }
 0x8e5   : > { %v1391_v46 = vpop.f32.mrb[4].mxu0 }
 0x8e6   : > { %v1395_v47 = vpack.c.bf16 %v1391_v46, %v1391_v46  ;;  %v6064_v48 = vpop.f32.mrb[5].mxu0 }
 0x8e8   : > { %6068 = vmatmul.mubr.msk.bf16.vlgmr.msra.gmra.mrb[8].mxu1 %vm1066_vm2, %v1395_v47 }
 0x8e9   : > { %6078 = vmatpush3.xpose.msk.msra.mxu1 %vm1066_vm2, %v1492_v49  ;;  %v1483_v50 = vpop.f32.mrb[8].mxu0  ;;  %6079 = vmatprep.mubr.msk.f32.mxu1 %vm7605_vm0, %v7604_v0 }
 0x8ea   : > { %v6075_v51 = vpop.f32.mrb[9].mxu0  ;;  %6087 = vmatprep.subr.bf16.mxu1 %v7604_v0 }
 0x8eb   : > { %v1486_v52 = vpop.f32.mrb[10].mxu0 }
 0x8ec   : > { %v6076_v53 = vpop.f32.mrb[11].mxu0 }
 0x8ed   : > { %v6792_v53 = vld [vmem:[#allocation19] sm:$0xff]  }
 0x8f0   : > { %6080 = vmatmul.mubr.msk.f32.vlgmr.msra.gmra.mrb[6].mxu1 %vm1066_vm2, %v1490_v54  ;;  %v6793_v54 = vld [vmem:[#allocation19 + $0x8] sm:$0xff]  }
 0x8f1   : > { %6089 = vmatprep.mubr.msk.bf16.mxu1 %vm7605_vm0, %v7604_v0  ;;  %6088 = vmatpush3.bf16.msra.mxu1 %v1659_v14  ;;  %v5777_v14 = vld [vmem:[#allocation20] ss:$0 sm:$0xff] }
 0x8f2   : > { %6103 = vmatprep.subr.bf16.mxu1 %v7604_v0 }
 0x9bb   : > { %v1437_v55 = vpop.f32.mrb[8].mxu1 }
 0x9bc   : > { %v1484_v56 = vadd.f32 %v1483_v50, %v1437_v55  ;;  %v6069_v57 = vpop.f32.mrb[9].mxu1  ;;  %v987_v55 = vld [vmem:[%s8324_s9 + $0x8] sm:$0xf] }
 0x9bd   : > { %v1440_v58 = vpop.f32.mrb[10].mxu1  ;;  %v6794_v57 = vld [vmem:[#allocation16] sm:$0xff]  }
 0x9be   : > { %v6070_v59 = vpop.f32.mrb[11].mxu1  ;;  %v6795_v58 = vld [vmem:[#allocation16 + $0x8] sm:$0xff]  }
 0x9bf   : > { %v7617_v59 = vmov 0.0|0.0  }
 0x9c3   : > { %v1563_v60 = vpop.f32.mrb[6].mxu1 }
 0x9c4   : > { %v6081_v61 = vpop.f32.mrb[7].mxu1  ;;  %v1567_v62 = vsel %vm1066_vm2, %v1563_v60, -inf }
 0x9c5   : > { %1568 = vmax.xlane.f32.xlu1 %v1567_v62  ;;  %v1938_v62 = vlaneseq }
 0x9d6   : > { %1578 = vrot.lane.b32.xlu1 %v8389_v7, %s7613_s17 }
 0x9da   : > { %1704 = vrot.lane.b32.xlu1 %v8389_v7, %s7614_s25 }
 0x9de   : > { %1702 = vrot.lane.b32.xlu1 %v8399_v12, %s7615_s26 }
 0xa52   : > { %v1569_v63 = vpop.xlane.xlu1 %1568 }
 0xa53   : > { %v1570_v1 = vsub.f32 %v1563_v60, %v1569_v63 }
 0xa55   : > { %v1571_v2 = vmul.f32 1.442695, %v1570_v1  ;;  %v8496_v1 = vshrl.u32 %v1938_v62, 7 }
 0xa56   : > { %v1579_v4 = vpop.permute.xlu1 %1578 }
 0xa57   : > { %6822 = vpow2.f32 %v1571_v2  ;;  %6083 = vmatpush3.msra.mxu0 %v1579_v4  ;;  %v1940_v2 = vsub.s32 0, %v8496_v1  ;;  %v8501_v4 = vld [vmem:[%s839_s20] sm:$0x3f] }
 0xa58   : > { %6093 = vmatprep.subr.mxu0 %v7604_v0 }
 0xa5a   : > { %v1705_v10 = vpop.permute.xlu1 %1704 }
 0xa5e   : > { %v1703_v12 = vpop.permute.xlu1 %1702 }
 0xa61   : > { %v6823_v5 = vpop.eup %6822 }
 0xa62   : > { %v1573_v6 = vsel %vm1066_vm2, %v6823_v5, 0.0 }
 0xa63   : > { %1574 = vadd.xlane.f32.xlu0 %v1573_v6  ;;  %v1941_v6 = vrot.slane %v8501_v4, %v1940_v2 }
 0xaf0   : > { %v1575_v8 = vpop.xlane.xlu0 %1574 }
 0xaf1   : > { %6824 = vrcp.f32 %v1575_v8 }
 0xafb   : > { %v6825_v9 = vpop.eup %6824 }
 0xafc   : > { %v1577_v11 = vmul.f32 %v6825_v9, %v6823_v5  ;;  %v8505_v5 = vld [vmem:[%s848_s0] sm:$0x3f] }
 0xafe   : > { %6085 = vmatmul.mubr.msk.f32.vlgmr.msra.gmra.mrb[6].mxu0 %vm1066_vm2, %v1577_v11 }
 0xaff   : > { %6094 = vmatpush3.xpose.msk.msra.mxu0 %vm1066_vm2, %v1705_v10  ;;  %6095 = vmatprep.mubr.msk.f32.mxu0 %vm7605_vm0, %v7604_v0  ;;  %v1946_v10 = vrot.slane %v8505_v5, %v1940_v2 }
 0xb00   : > { %6098 = vmatprep.subr.mxu0 %v7604_v0 }
 0xb02   : > { %6096 = vmatmul.mubr.msk.f32.vlgmr.msra.gmra.mrb[12].mxu0 %vm1066_vm2, %v1703_v12 }
 0xb03   : > { %6100 = vmatprep.mubr.msk.f32.mxu0 %vm7605_vm0, %v7604_v0 }
 0xbd1   : > { %v1650_v15 = vpop.f32.mrb[6].mxu0 }
 0xbd2   : > { %v1654_v16 = vpack.c.bf16 %v1650_v15, %v1650_v15  ;;  %v6086_v17 = vpop.f32.mrb[7].mxu0 }
 0xbd4   : > { %6090 = vmatmul.mubr.msk.bf16.vlgmr.msra.gmra.mrb[12].mxu1 %vm1066_vm2, %v1654_v16 }
 0xbd5   : > { %v1776_v18 = vpop.f32.mrb[12].mxu0  ;;  %6105 = vmatprep.mubr.msk.bf16.mxu1 %vm7605_vm0, %v7604_v0 }
 0xbd6   : > { %v6097_v19 = vpop.f32.mrb[13].mxu0  ;;  %v1780_v20 = vsel %vm1066_vm2, %v1776_v18, -inf }
 0xbd7   : > { %1781 = vmax.xlane.f32.xlu1 %v1780_v20 }
 0xc64   : > { %v1782_v21 = vpop.xlane.xlu1 %1781 }
 0xc65   : > { %v1783_v22 = vsub.f32 %v1776_v18, %v1782_v21 }
 0xc67   : > { %v1784_v23 = vmul.f32 1.442695, %v1783_v22 }
 0xc69   : > { %6826 = vpow2.f32 %v1784_v23 }
 0xc73   : > { %v6827_v24 = vpop.eup %6826 }
 0xc74   : > { %v1786_v25 = vsel %vm1066_vm2, %v6827_v24, 0.0 }
 0xc75   : > { %1787 = vadd.xlane.f32.xlu0 %v1786_v25 }
 0xc8b   : > { %1791 = vrot.lane.b32.xlu0 %v8389_v7, %s7616_s8  ;;  %v1872_v7 = vsel %vm1399_vm3, %v1062_v35, 0 }
 0xc8c   : > { %6104 = vmatpush3.bf16.msra.mxu1 %v1872_v7 }
 0xc8d   : > { %6117 = vmatprep.subr.bf16.mxu1 %v7604_v0 }
 0xca7   : > { %v1695_v26 = vpop.f32.mrb[12].mxu1 }
 0xca8   : > { %v1701_v27 = vadd.f32 %v1695_v26, %v1484_v56  ;;  %v6091_v28 = vpop.f32.mrb[13].mxu1 }
 0xca9   : > { %v1698_v29 = vpop.f32.mrb[14].mxu1  ;;  %v5781_v28 = vld [vmem:[#allocation17] ss:$0 sm:$0xff] }
 0xcaa   : > { %v6092_v30 = vpop.f32.mrb[15].mxu1 }
 0xd02   : > { %v1788_v31 = vpop.xlane.xlu0 %1787 }
 0xd03   : > { %6828 = vrcp.f32 %v1788_v31 }
 0xd06   : > { %v1792_v32 = vpop.permute.xlu0 %1791 }
 0xd07   : > { %6099 = vmatpush3.msra.mxu0 %v1792_v32 }
 0xd08   : > { %6109 = vmatprep.subr.bf16.mxu0 %v7604_v0 }
 0xd0d   : > { %v6829_v33 = vpop.eup %6828 }
 0xd0e   : > { %v1790_v34 = vmul.f32 %v6829_v33, %v6827_v24 }
 0xd10   : > { %6101 = vmatmul.mubr.msk.f32.vlgmr.msra.gmra.mrb[14].mxu0 %vm1066_vm2, %v1790_v34 }
 0xd11   : > { %6113 = vmatprep.mubr.msk.bf16.mxu0 %vm7605_vm0, %v7604_v0  ;;  %6110 = vmatpush3.bf16.msra.mxu0 %v6792_v53 }
 0xd12   : > { %6111 = vmatprep.subr.bf16.mxu0 %v7604_v0 }
 0xd15   : > { %6112 = vmatpush3.bf16.msra.mxu0 %v6793_v54 }
 0xd16   : > { %6421 = vmatprep.subr.bf16.mxu0 %v7617_v59 }
 0xde3   : > { %v1863_v36 = vpop.f32.mrb[14].mxu0 }
 0xde4   : > { %v1867_v37 = vpack.c.bf16 %v1863_v36, %v1863_v36  ;;  %v6102_v38 = vpop.f32.mrb[15].mxu0 }
 0xde6   : > { %6106 = vmatmul.mubr.msk.bf16.vlgmr.msra.gmra.mrb[16].mxu1 %vm1066_vm2, %v1867_v37 }
 0xde7   : > { %6121 = vmatprep.mubr.msk.bf16.mxu1 %vm7605_vm0, %v7604_v0  ;;  %6118 = vmatpush3.bf16.msra.mxu1 %v6794_v57 }
 0xde8   : > { %6119 = vmatprep.subr.bf16.mxu1 %v7604_v0 }
 0xdeb   : > { %6120 = vmatpush3.bf16.msra.mxu1 %v6795_v58 }
 0xdec   : > { %6413 = vmatprep.subr.bf16.mxu1 %v7617_v59 }
 0xeb9   : > { %v1908_v39 = vpop.f32.mrb[16].mxu1 }
 0xeba   : > { %v1914_v40 = vadd.f32 %v1908_v39, %v1701_v27  ;;  %v6107_v41 = vpop.f32.mrb[17].mxu1 }
 0xebb   : > { %v1911_v42 = vpop.f32.mrb[18].mxu1 }
 0xebc   : > { %v1915_v44 = vadd.f32 %v1914_v40, %v8380_v3  ;;  %v6108_v45 = vpop.f32.mrb[19].mxu1  ;;  %v986_v3 = vld [vmem:[%s8324_s9] sm:$0xff]  ;;  %s5887_s9 = sshll.u32 %s7746_s3, 7  ;;  %s7619_s3 = smov [#allocation34]  }
 0xebd   : > { %v8487_v56 = vpack.c.bf16 %v987_v55, %v986_v3 }
 0xebe   : > { %v1923_v46 = vadd.f32 %v5776_v43, %v1915_v44 }
 0xebf   : > { %6114 = vmatmul.mubr.msk.bf16.vlgmr.msra.gmra.mrb[16].mxu0 %vm1014_vm1, %v8487_v56 }
 0xec0   : > { %v1924_v47 = vsel %vm1014_vm1, %v1923_v46, 0.0  ;;  %6143 = vmatprep.mubr.msk.f32.mxu0 %vm7605_vm0, %v7604_v0 }
 0xec1   : > { %1925 = vadd.xlane.f32.xlu0 %v1924_v47 }
 0xf4e   : > { %v1926_v48 = vpop.xlane.xlu0 %1925 }
 0xf4f   : > { %v1928_v49 = vmul.f32 0.03125, %v1926_v48 }
 0xf51   : > { %v1929_v50 = vsub.f32 %v1923_v46, %v1928_v49 }
 0xf53   : > { %v1930_v51 = vmul.f32 %v1929_v50, %v1929_v50 }
 0xf55   : > { %v1931_v52 = vsel %vm1014_vm1, %v1930_v51, 0.0 }
 0xf56   : > { %1932 = vadd.xlane.f32.xlu1 %v1931_v52  ;;  %v4278_v52 = vld [vmem:[#allocation22 + $0x1c] sm:$0xf] }
 0xf92   : > { %v2009_v15 = vpop.f32.mrb[16].mxu0 }
 0xf93   : > { %v2010_v16 = vadd.f32 %v5777_v14, %v2009_v15  ;;  %v6115_v17 = vpop.f32.mrb[17].mxu0 }
 0xf94   : > { %v2012_v18 = vpop.f32.mrb[18].mxu0 }
 0xf95   : > { %v2013_v19 = vadd.f32 %v5777_v14, %v2012_v18  ;;  %v6116_v20 = vpop.f32.mrb[19].mxu0 }
 0xf97   : > { %v8522_v22 = vpack.i.bf16 %v2013_v19, %v2010_v16  ;;  %v6414_v23 = vpack.c.bf16 %v2013_v19, %v2010_v16 }
 0xf99   : > { %6721 = vrot.lane.b32.xlu1 %v8522_v22, %s7609_s11 }
 0xfe3   : > { %v1933_v60 = vpop.xlane.xlu1 %1932 }
 0xfe4   : > { %v1934_v61 = vmul.f32 0.03125, %v1933_v60  ;;  %v2084_v60 = vld [vmem:[#allocation22] sm:$0xf] }
 0xfe6   : > { %v1935_v63 = vadd.f32 1e-05, %v1934_v61  ;;  %v2484_v61 = vsel %vm1399_vm3, %v2084_v60, 0 }
 0xfe8   : > { %6830 = vrsqrt.f32 %v1935_v63 }
 0xff2   : > { %v6831_v8 = vpop.eup %6830 }
 0xff3   : > { %v1937_v9 = vmul.f32 %v6831_v8, %v1929_v50 }
 0xff5   : > { %v1942_v11 = vmul.f32 %v1941_v6, %v1937_v9  ;;  %v2085_v9 = vld [vmem:[#allocation22 + $0x4] sm:$0xf] }
 0xff7   : > { %v8509_v12 = vadd.f32 %v1946_v10, %v1942_v11 }
 0xff9   : > { %v2016_v13 = vpack.c.bf16 %v8509_v12, %v8509_v12 }
 0xffb   : > { %6122 = vmatmul.mubr.msk.bf16.vlgmr.msra.gmra.mrb[20].mxu1 %vm1014_vm1, %v2016_v13  ;;  %v2438_v13 = vsel %vm1399_vm3, %v2085_v9, 0 }
 0xffc   : > { %6129 = vmatprep.mubr.msk.f32.mxu1 %vm7605_vm0, %v7604_v0  ;;  %6416 = vmatpush3.bf16.xpose.msk.msra.mxu1 %vm8518_vm4, %v6414_v23 }
 0xffd   : > { %6417 = vmatprep.subr.bf16.mxu1 %v7617_v59 }
0x100b   : > { %v6722_v24 = vpop.permute.xlu1 %6721 }
0x100c   : > { %v6724_v25 = vunpack.i.h.bf16 %v6722_v24  ;;  %v6723_v26 = vunpack.i.l.bf16 %v6722_v24 }
0x100e   : > { %v6422_v27 = vpack.c.bf16 %v6724_v25, %v6723_v26 }
0x1010   : > { %6424 = vmatpush3.bf16.xpose.msk.msra.mxu0 %vm8518_vm4, %v6422_v27 }
0x1011   : > { %6159 = vmatprep.subr.bf16.mxu0 %v7604_v0 }
0x10ce   : > { %v2077_v29 = vpop.f32.mrb[20].mxu1 }
0x10cf   : > { %v2078_v30 = vadd.f32 %v5781_v28, %v2077_v29  ;;  %v6123_v31 = vpop.f32.mrb[21].mxu1 }
0x10d0   : > { %v2080_v32 = vpop.f32.mrb[22].mxu1 }
0x10d1   : > { %v8532_v33 = vmul.f32 0.35355338, %v2078_v30  ;;  %v6124_v34 = vpop.f32.mrb[23].mxu1 }
0x10d3   : > { %2260 = vrot.lane.b32.xlu1 %v8532_v33, %s7609_s11  ;;  %6130 = vmatmul.mubr.msk.f32.vlgmr.msra.gmra.mrb[24].mxu1 %vm1066_vm2, %v8532_v33 }
0x10d4   : > { %6136 = vmatprep.mubr.msk.f32.mxu1 %vm7605_vm0, %v7604_v0 }
0x1145   : > { %v2261_v35 = vpop.permute.xlu1 %2260 }
0x1146   : > { %6144 = vmatmul.mubr.msk.f32.vlgmr.msra.gmra.mrb[20].mxu0 %vm1066_vm2, %v2261_v35 }
0x1147   : > { %6161 = vmatprep.mubr.msk.bf16.mxu0 %vm7605_vm0, %v7604_v0  ;;  %6160 = vmatpush3.bf16.msra.mxu0 %v2484_v61 }
0x1148   : > { %6433 = vmatprep.subr.bf16.mxu0 %v7617_v59 }
0x11a6   : > { %v2163_v7 = vpop.f32.mrb[24].mxu1 }
0x11a7   : > { %v6131_v36 = vpop.f32.mrb[25].mxu1  ;;  %v2168_v37 = vsel %vm2167_vm5, %v2163_v7, -inf }
0x11a8   : > { %2169 = vmax.xlane.f32.xlu1 %v2168_v37 }
0x11b9   : > { %6736 = vrot.lane.b32.xlu1 %v8522_v22, %s7612_s7 }
0x1219   : > { %v2338_v38 = vpop.f32.mrb[20].mxu0 }
0x121a   : > { %v6145_v39 = vpop.f32.mrb[21].mxu0  ;;  %v2342_v40 = vsel %vm2167_vm5, %v2338_v38, -inf }
0x121b   : > { %2343 = vmax.xlane.f32.xlu0 %v2342_v40 }
0x1231   : > { %6726 = vrot.lane.b32.xlu0 %v8522_v22, %s7607_s27 }
0x1235   : > { %v2170_v41 = vpop.xlane.xlu1 %2169 }
0x1236   : > { %v2171_v42 = vsub.f32 %v2163_v7, %v2170_v41 }
0x1238   : > { %v2172_v43 = vmul.f32 1.442695, %v2171_v42 }
0x1239   : > { %v6737_v17 = vpop.permute.xlu1 %6736 }
0x123a   : > { %6832 = vpow2.f32 %v2172_v43  ;;  %v6739_v18 = vunpack.i.h.bf16 %v6737_v17  ;;  %v6738_v19 = vunpack.i.l.bf16 %v6737_v17 }
0x123c   : > { %v6430_v25 = vpack.c.bf16 %v6739_v18, %v6738_v19 }
0x1244   : > { %v6833_v44 = vpop.eup %6832 }
0x1245   : > { %v2174_v45 = vsel %vm2167_vm5, %v6833_v44, 0.0 }
0x1250   : > { %2175 = vadd.xlane.f32.xlu0 %v2174_v45 }
0x12a8   : > { %v2344_v46 = vpop.xlane.xlu0 %2343 }
0x12a9   : > { %v2345_v47 = vsub.f32 %v2338_v38, %v2344_v46 }
0x12ab   : > { %v2346_v48 = vmul.f32 1.442695, %v2345_v47 }
0x12ac   : > { %v6727_v49 = vpop.permute.xlu0 %6726 }
0x12ad   : > { %6834 = vpow2.f32 %v2346_v48  ;;  %v6729_v50 = vunpack.i.h.bf16 %v6727_v49  ;;  %v6728_v51 = vunpack.i.l.bf16 %v6727_v49 }
0x12af   : > { %v6418_v53 = vpack.c.bf16 %v6729_v50, %v6728_v51 }
0x12b1   : > { %6420 = vmatpush3.bf16.msk.msra.mxu1 %vm8551_vm7, %v6418_v53 }
0x12b2   : > { %6425 = vmatprep.subr.bf16.mxu1 %v7617_v59 }
0x12b7   : > { %v6835_v54 = vpop.eup %6834 }
0x12b8   : > { %v2348_v3 = vsel %vm2167_vm5, %v6835_v54, 0.0 }
0x12b9   : > { %2349 = vadd.xlane.f32.xlu0 %v2348_v3 }
0x12cf   : > { %6731 = vrot.lane.b32.xlu0 %v8522_v22, %s7608_s14 }
0x12d3   : > { %2526 = vrot.lane.b32.xlu0 %v8532_v33, %s7612_s7 }
0x12dd   : > { %v2176_v55 = vpop.xlane.xlu0 %2175 }
0x12de   : > { %6836 = vrcp.f32 %v2176_v55  ;;  %v2086_v55 = vld [vmem:[#allocation22 + $0x8] sm:$0xf] }
0x12e8   : > { %v6837_v57 = vpop.eup %6836 }
0x12e9   : > { %v2178_v58 = vmul.f32 %v6837_v57, %v6833_v44  ;;  %v2704_v57 = vsel %vm1399_vm3, %v2086_v55, 0 }
0x12eb   : > { %6137 = vmatmul.mubr.msk.f32.vlgmr.msra.gmra.mrb[26].mxu1 %vm2167_vm5, %v2178_v58 }
0x12ec   : > { %6150 = vmatprep.mubr.msk.f32.mxu1 %vm7605_vm0, %v7604_v0 }
0x1346   : > { %v2350_v62 = vpop.xlane.xlu0 %2349 }
0x1347   : > { %6838 = vrcp.f32 %v2350_v62 }
0x134a   : > { %v6732_v63 = vpop.permute.xlu0 %6731 }
0x134b   : > { %v6734_v2 = vunpack.i.h.bf16 %v6732_v63  ;;  %v6733_v6 = vunpack.i.l.bf16 %v6732_v63 }
0x134d   : > { %v6426_v8 = vpack.c.bf16 %v6734_v2, %v6733_v6 }
0x134e   : > { %v2527_v26 = vpop.permute.xlu0 %2526 }
0x134f   : > { %6428 = vmatpush3.bf16.msk.msra.mxu1 %vm8551_vm7, %v6426_v8 }
0x1350   : > { %6153 = vmatprep.subr.bf16.mxu1 %v7604_v0 }
0x1351   : > { %v6839_v10 = vpop.eup %6838 }
0x1352   : > { %v2352_v11 = vmul.f32 %v6839_v10, %v6835_v54 }
0x1354   : > { %6151 = vmatmul.mubr.msk.f32.vlgmr.msra.gmra.mrb[28].mxu1 %vm2167_vm5, %v2352_v11 }
0x1355   : > { %6154 = vmatpush3.bf16.msra.mxu1 %v2438_v13  ;;  %6155 = vmatprep.mubr.msk.bf16.mxu1 %vm7605_vm0, %v7604_v0 }
0x1356   : > { %6429 = vmatprep.subr.bf16.mxu1 %v7617_v59 }
0x13be   : > { %v2255_v14 = vpop.f32.mrb[26].mxu1 }
0x13bf   : > { %v2259_v15 = vpack.c.bf16 %v2255_v14, %v2255_v14  ;;  %v6138_v16 = vpop.f32.mrb[27].mxu1 }
0x13c1   : > { %6162 = vmatmul.mubr.msk.bf16.vlgmr.msra.gmra.mrb[24].mxu0 %vm1066_vm2, %v2259_v15 }
0x13c2   : > { %6176 = vmatprep.mubr.msk.f32.mxu0 %vm7605_vm0, %v7604_v0 }
0x1427   : > { %v2429_v20 = vpop.f32.mrb[28].mxu1 }
0x1428   : > { %v2433_v23 = vpack.c.bf16 %v2429_v20, %v2429_v20  ;;  %v6152_v24 = vpop.f32.mrb[29].mxu1 }
0x142a   : > { %6156 = vmatmul.mubr.msk.bf16.vlgmr.msra.gmra.mrb[32].mxu1 %vm1066_vm2, %v2433_v23 }
0x142b   : > { %6432 = vmatpush3.bf16.xpose.msk.msra.mxu1 %vm8518_vm4, %v6430_v25  ;;  %6169 = vmatprep.mubr.msk.f32.mxu1 %vm7605_vm0, %v7604_v0 }
0x142c   : > { %6179 = vmatprep.subr.bf16.mxu1 %v7604_v0 }
0x1432   : > { %6170 = vmatmul.mubr.msk.f32.vlgmr.msra.gmra.mrb[30].mxu1 %vm1066_vm2, %v2527_v26  ;;  %v2087_v26 = vld [vmem:[#allocation22 + $0xc] sm:$0xf] }
0x1433   : > { %6181 = vmatprep.mubr.msk.bf16.mxu1 %vm7605_vm0, %v7604_v0  ;;  %6180 = vmatpush3.bf16.msra.mxu1 %v2704_v57  ;;  %v6798_v57 = vld [vmem:[#allocation28] sm:$0xff]  }
0x1434   : > { %6441 = vmatprep.subr.bf16.mxu1 %v7617_v59 }
0x1494   : > { %v2520_v27 = vpop.f32.mrb[24].mxu0 }
0x1495   : > { %v6163_v28 = vpop.f32.mrb[25].mxu0 }
0x1496   : > { %v2523_v29 = vpop.f32.mrb[26].mxu0 }
0x1497   : > { %v6164_v30 = vpop.f32.mrb[27].mxu0 }
0x14fd   : > { %v2474_v31 = vpop.f32.mrb[32].mxu1 }
0x14fe   : > { %v8588_v32 = vadd.f32 %v2520_v27, %v2474_v31  ;;  %v6157_v34 = vpop.f32.mrb[33].mxu1  ;;  %v2925_v27 = vsel %vm1399_vm3, %v2087_v26, 0 }
0x14ff   : > { %v2477_v35 = vpop.f32.mrb[34].mxu1 }
0x1500   : > { %v6158_v7 = vpop.f32.mrb[35].mxu1 }
0x1501   : > { %v5809_v7 = vld [vmem:[#allocation23] ss:$0 sm:$0xff] }
0x1505   : > { %v2604_v36 = vpop.f32.mrb[30].mxu1 }
0x1506   : > { %v6171_v37 = vpop.f32.mrb[31].mxu1  ;;  %v2608_v38 = vsel %vm2167_vm5, %v2604_v36, -inf }
0x1507   : > { %2609 = vmax.xlane.f32.xlu0 %v2608_v38 }
0x151d   : > { %6741 = vrot.lane.b32.xlu0 %v8522_v22, %s7611_s4 }
0x1521   : > { %2747 = vrot.lane.b32.xlu0 %v8532_v33, %s7615_s26 }
0x1594   : > { %v2610_v39 = vpop.xlane.xlu0 %2609 }
0x1595   : > { %v2611_v40 = vsub.f32 %v2604_v36, %v2610_v39 }
0x1597   : > { %v2612_v41 = vmul.f32 1.442695, %v2611_v40 }
0x1598   : > { %v6742_v42 = vpop.permute.xlu0 %6741 }
0x1599   : > { %6840 = vpow2.f32 %v2612_v41  ;;  %v6744_v43 = vunpack.i.h.bf16 %v6742_v42  ;;  %v6743_v44 = vunpack.i.l.bf16 %v6742_v42 }
0x159b   : > { %v6434_v45 = vpack.c.bf16 %v6744_v43, %v6743_v44 }
0x159c   : > { %v2748_v3 = vpop.permute.xlu0 %2747 }
0x159d   : > { %6436 = vmatpush3.bf16.msk.msra.mxu0 %vm8551_vm7, %v6434_v45  ;;  %v6796_v45 = vld [vmem:[#allocation25] sm:$0xff]  }
0x159e   : > { %6437 = vmatprep.subr.bf16.mxu0 %v7617_v59 }
0x15a3   : > { %v6841_v46 = vpop.eup %6840 }
0x15a4   : > { %v2614_v47 = vsel %vm2167_vm5, %v6841_v46, 0.0 }
0x15a5   : > { %2615 = vadd.xlane.f32.xlu1 %v2614_v47 }
0x15b6   : > { %6746 = vrot.lane.b32.xlu1 %v8522_v22, %s7615_s26 }
0x1632   : > { %v2616_v33 = vpop.xlane.xlu1 %2615 }
0x1633   : > { %6842 = vrcp.f32 %v2616_v33 }
0x1636   : > { %v6747_v48 = vpop.permute.xlu1 %6746 }
0x1637   : > { %v6749_v49 = vunpack.i.h.bf16 %v6747_v48  ;;  %v6748_v50 = vunpack.i.l.bf16 %v6747_v48  ;;  %v2992_v48 = vsub.s32 1, %v8496_v1 }
0x1639   : > { %v6438_v54 = vpack.c.bf16 %v6749_v49, %v6748_v50  ;;  %v2993_v49 = vrot.slane %v8501_v4, %v2992_v48 }
0x163d   : > { %v6843_v51 = vpop.eup %6842 }
0x163e   : > { %v2618_v53 = vmul.f32 %v6843_v51, %v6841_v46  ;;  %v6797_v46 = vld [vmem:[#allocation25 + $0x8] sm:$0xff]  }
0x1640   : > { %6177 = vmatmul.mubr.msk.f32.vlgmr.msra.gmra.mrb[22].mxu0 %vm2167_vm5, %v2618_v53  ;;  %v2998_v53 = vrot.slane %v8505_v5, %v2992_v48 }
0x1641   : > { %6440 = vmatpush3.bf16.xpose.msk.msra.mxu0 %vm8518_vm4, %v6438_v54  ;;  %6189 = vmatprep.mubr.msk.f32.mxu0 %vm7605_vm0, %v7604_v0 }
0x1642   : > { %6199 = vmatprep.subr.bf16.mxu0 %v7604_v0 }
0x1648   : > { %6190 = vmatmul.mubr.msk.f32.vlgmr.msra.gmra.mrb[28].mxu0 %vm1066_vm2, %v2748_v3 }
0x1649   : > { %6201 = vmatprep.mubr.msk.bf16.mxu0 %vm7605_vm0, %v7604_v0  ;;  %6200 = vmatpush3.bf16.msra.mxu0 %v2925_v27 }
0x164a   : > { %6213 = vmatprep.subr.bf16.mxu0 %v7604_v0 }
0x1713   : > { %v2695_v58 = vpop.f32.mrb[22].mxu0 }
0x1714   : > { %v2699_v60 = vpack.c.bf16 %v2695_v58, %v2695_v58  ;;  %v6178_v61 = vpop.f32.mrb[23].mxu0  ;;  %v6799_v58 = vld [vmem:[#allocation28 + $0x8] sm:$0xff]  }
0x1715   : > { %v6801_v61 = vld [vmem:[#allocation28 + $0x18] sm:$0xff]  }
0x1716   : > { %6182 = vmatmul.mubr.msk.bf16.vlgmr.msra.gmra.mrb[36].mxu1 %vm1066_vm2, %v2699_v60  ;;  %v6800_v60 = vld [vmem:[#allocation28 + $0x10] sm:$0xff]  }
0x1717   : > { %6196 = vmatprep.mubr.msk.f32.mxu1 %vm7605_vm0, %v7604_v0 }
0x171b   : > { %v2825_v62 = vpop.f32.mrb[28].mxu0 }
0x171c   : > { %v6191_v63 = vpop.f32.mrb[29].mxu0  ;;  %v2829_v2 = vsel %vm2167_vm5, %v2825_v62, -inf }
0x171d   : > { %2830 = vmax.xlane.f32.xlu0 %v2829_v2 }
0x1733   : > { %6751 = vrot.lane.b32.xlu0 %v8522_v22, %s7614_s25 }
0x17aa   : > { %v2831_v6 = vpop.xlane.xlu0 %2830 }
0x17ab   : > { %v2832_v8 = vsub.f32 %v2825_v62, %v2831_v6  ;;  %v5810_v62 = vld [vmem:[#allocation26] ss:$0 sm:$0xff] }
0x17ad   : > { %v2833_v9 = vmul.f32 1.442695, %v2832_v8 }
0x17ae   : > { %v6752_v10 = vpop.permute.xlu0 %6751 }
0x17af   : > { %6844 = vpow2.f32 %v2833_v9  ;;  %v6754_v11 = vunpack.i.h.bf16 %v6752_v10  ;;  %v6753_v13 = vunpack.i.l.bf16 %v6752_v10 }
0x17b1   : > { %v6442_v14 = vpack.c.bf16 %v6754_v11, %v6753_v13 }
0x17b3   : > { %6444 = vmatpush3.bf16.msk.msra.mxu1 %vm8551_vm7, %v6442_v14 }
0x17b4   : > { %6205 = vmatprep.subr.bf16.mxu1 %v7604_v0 }
0x17b9   : > { %v6845_v15 = vpop.eup %6844 }
0x17ba   : > { %v2835_v16 = vsel %vm2167_vm5, %v6845_v15, 0.0 }
0x17bb   : > { %2836 = vadd.xlane.f32.xlu1 %v2835_v16 }
0x17e9   : > { %v2740_v17 = vpop.f32.mrb[36].mxu1 }
0x17ea   : > { %v2746_v22 = vadd.f32 %v2740_v17, %v8588_v32  ;;  %v6183_v18 = vpop.f32.mrb[37].mxu1  ;;  %v5814_v17 = vld [vmem:[#allocation29] ss:$0 sm:$0xff] }
0x17eb   : > { %v2743_v19 = vpop.f32.mrb[38].mxu1 }
0x17ec   : > { %v6184_v20 = vpop.f32.mrb[39].mxu1 }
0x1848   : > { %v2837_v23 = vpop.xlane.xlu1 %2836 }
0x1849   : > { %6846 = vrcp.f32 %v2837_v23 }
0x1853   : > { %v6847_v24 = vpop.eup %6846 }
0x1854   : > { %v2839_v25 = vmul.f32 %v6847_v24, %v6845_v15 }
0x1856   : > { %6197 = vmatmul.mubr.msk.f32.vlgmr.msra.gmra.mrb[40].mxu1 %vm2167_vm5, %v2839_v25 }
0x1857   : > { %6209 = vmatprep.mubr.msk.bf16.mxu1 %vm7605_vm0, %v7604_v0  ;;  %6206 = vmatpush3.bf16.msra.mxu1 %v6796_v45 }
0x1858   : > { %6207 = vmatprep.subr.bf16.mxu1 %v7604_v0 }
0x185b   : > { %6208 = vmatpush3.bf16.msra.mxu1 %v6797_v46 }
0x185c   : > { %6225 = vmatprep.subr.bf16.mxu1 %v7604_v0 }
0x1929   : > { %v2916_v28 = vpop.f32.mrb[40].mxu1 }
0x192a   : > { %v2920_v29 = vpack.c.bf16 %v2916_v28, %v2916_v28  ;;  %v6198_v30 = vpop.f32.mrb[41].mxu1 }
0x192c   : > { %6202 = vmatmul.mubr.msk.bf16.vlgmr.msra.gmra.mrb[32].mxu0 %vm1066_vm2, %v2920_v29 }
0x192d   : > { %6221 = vmatprep.mubr.msk.bf16.mxu0 %vm7605_vm0, %v7604_v0  ;;  %6214 = vmatpush3.bf16.msra.mxu0 %v6798_v57 }
0x192e   : > { %6215 = vmatprep.subr.bf16.mxu0 %v7604_v0 }
0x1931   : > { %6216 = vmatpush3.bf16.msra.mxu0 %v6799_v58 }
0x1932   : > { %6217 = vmatprep.subr.bf16.mxu0 %v7604_v0 }
0x1935   : > { %6218 = vmatpush3.bf16.msra.mxu0 %v6800_v60 }
0x1936   : > { %6219 = vmatprep.subr.bf16.mxu0 %v7604_v0 }
0x1939   : > { %6220 = vmatpush3.bf16.msra.mxu0 %v6801_v61 }
0x193a   : > { %6238 = vmatprep.subr.mxu0 %v7604_v0 }
0x19ff   : > { %v2961_v31 = vpop.f32.mrb[32].mxu0 }
0x1a00   : > { %v2967_v32 = vadd.f32 %v2961_v31, %v2746_v22  ;;  %v6203_v34 = vpop.f32.mrb[33].mxu0  ;;  %v6802_v31 = vld [vmem:[#allocation10 + $0x10] sm:$0xff]  }
0x1a01   : > { %v2964_v35 = vpop.f32.mrb[34].mxu0 }
0x1a02   : > { %v2968_v36 = vadd.f32 %v2967_v32, %v8509_v12  ;;  %v6204_v37 = vpop.f32.mrb[35].mxu0  ;;  %v6803_v32 = vld [vmem:[#allocation10 + $0x18] sm:$0xff]  }
0x1a04   : > { %v2976_v38 = vadd.f32 %v5809_v7, %v2968_v36  ;;  %v3172_v36 = vsub.s32 2, %v8496_v1 }
0x1a06   : > { %v2977_v39 = vsel %vm1014_vm1, %v2976_v38, 0.0  ;;  %v3173_v37 = vrot.slane %v8501_v4, %v3172_v36 }
0x1a07   : > { %2978 = vadd.xlane.f32.xlu1 %v2977_v39 }
0x1a94   : > { %v2979_v40 = vpop.xlane.xlu1 %2978 }
0x1a95   : > { %v2980_v41 = vmul.f32 0.03125, %v2979_v40  ;;  %v3178_v40 = vrot.slane %v8505_v5, %v3172_v36 }
0x1a97   : > { %v2981_v42 = vsub.f32 %v2976_v38, %v2980_v41 }
0x1a99   : > { %v2982_v43 = vmul.f32 %v2981_v42, %v2981_v42 }
0x1a9b   : > { %v2983_v44 = vsel %vm1014_vm1, %v2982_v43, 0.0 }
0x1a9c   : > { %2984 = vadd.xlane.f32.xlu1 %v2983_v44  ;;  %v5820_v44 = vld [vmem:[#allocation11 + $0x1] ss:$0 sm:$0xff] }
0x1b29   : > { %v2985_v12 = vpop.xlane.xlu1 %2984 }
0x1b2a   : > { %v2986_v47 = vmul.f32 0.03125, %v2985_v12 }
0x1b2c   : > { %v2987_v33 = vadd.f32 1e-05, %v2986_v47 }
0x1b2e   : > { %6848 = vrsqrt.f32 %v2987_v33 }
0x1b38   : > { %v6849_v50 = vpop.eup %6848 }
0x1b39   : > { %v2989_v51 = vmul.f32 %v6849_v50, %v2981_v42 }
0x1b3b   : > { %v2994_v54 = vmul.f32 %v2993_v49, %v2989_v51 }
0x1b3d   : > { %v2999_v3 = vadd.f32 %v2998_v53, %v2994_v54 }
0x1b3f   : > { %v3000_v55 = vpack.c.bf16 %v2999_v3, %v2999_v3 }
0x1b41   : > { %6210 = vmatmul.mubr.msk.bf16.vlgmr.msra.gmra.mrb[44].mxu1 %vm1014_vm1, %v3000_v55 }
0x1b42   : > { %6229 = vmatprep.mubr.msk.bf16.mxu1 %vm7605_vm0, %v7604_v0  ;;  %6226 = vmatpush3.bf16.msra.mxu1 %v6802_v31 }
0x1b43   : > { %6227 = vmatprep.subr.bf16.mxu1 %v7604_v0 }
0x1b46   : > { %6228 = vmatpush3.bf16.msra.mxu1 %v6803_v32 }
0x1b47   : > { %6233 = vmatprep.subr.mxu1 %v7604_v0 }
0x1c14   : > { %v3061_v63 = vpop.f32.mrb[44].mxu1 }
0x1c15   : > { %v3062_v2 = vadd.f32 %v5810_v62, %v3061_v63  ;;  %v6211_v6 = vpop.f32.mrb[45].mxu1 }
0x1c16   : > { %v3064_v8 = vpop.f32.mrb[46].mxu1 }
0x1c17   : > { %v3068_v9 = vmul.f32 0.70710677, %v3062_v2  ;;  %v6212_v10 = vpop.f32.mrb[47].mxu1  ;;  %v3067_v13 = vmul.f32 0.5, %v3062_v2 }
0x1c18   : > { %v3252_v10 = vld [vmem:[#allocation13 + $0x14] sm:$0xf] }
0x1c19   : > { %6850 = verf.f32 %v3068_v9 }
0x1c23   : > { %v6851_v11 = vpop.eup %6850 }
0x1c24   : > { %v3070_v14 = vadd.f32 1.0, %v6851_v11  ;;  %v3591_v11 = vsel %vm1399_vm3, %v3252_v10, 0 }
0x1c26   : > { %v3071_v15 = vmul.f32 %v3070_v14, %v3067_v13 }
0x1c28   : > { %v3072_v16 = vpack.c.bf16 %v3071_v15, %v3071_v15 }
0x1c2a   : > { %6222 = vmatmul.mubr.msk.bf16.vlgmr.msra.gmra.mrb[36].mxu0 %vm3112_vm8, %v3072_v16 }
0x1c2b   : > { %6240 = vmatprep.mubr.msk.f32.mxu0 %vm7605_vm0, %v7604_v0 }
0x1cfd   : > { %v3150_v22 = vpop.f32.mrb[36].mxu0 }
0x1cfe   : > { %v3151_v18 = vadd.f32 %v5814_v17, %v3150_v22  ;;  %v6223_v19 = vpop.f32.mrb[37].mxu0 }
0x1cff   : > { %v3153_v20 = vpop.f32.mrb[38].mxu0 }
0x1d00   : > { %v6224_v23 = vpop.f32.mrb[39].mxu0  ;;  %v3156_v24 = vadd.f32 %v3151_v18, %v2999_v3  ;;  %v3251_v20 = vld [vmem:[#allocation13 + $0x10] sm:$0xf] }
0x1d01   : > { %v3637_v23 = vsel %vm1399_vm3, %v3251_v20, 0 }
0x1d02   : > { %v3157_v25 = vsel %vm1014_vm1, %v3156_v24, 0.0 }
0x1d03   : > { %3158 = vadd.xlane.f32.xlu1 %v3157_v25 }
0x1d90   : > { %v3159_v26 = vpop.xlane.xlu1 %3158 }
0x1d91   : > { %v3160_v27 = vmul.f32 0.03125, %v3159_v26 }
0x1d93   : > { %v3161_v28 = vsub.f32 %v3156_v24, %v3160_v27 }
0x1d95   : > { %v3162_v29 = vmul.f32 %v3161_v28, %v3161_v28 }
0x1d97   : > { %v3163_v30 = vsel %vm1014_vm1, %v3162_v29, 0.0 }
0x1d98   : > { %3164 = vadd.xlane.f32.xlu0 %v3163_v30 }
0x1e25   : > { %v3165_v34 = vpop.xlane.xlu0 %3164 }
0x1e26   : > { %v3166_v35 = vmul.f32 0.03125, %v3165_v34 }
0x1e28   : > { %v3167_v7 = vadd.f32 1e-05, %v3166_v35 }
0x1e2a   : > { %6852 = vrsqrt.f32 %v3167_v7 }
0x1e34   : > { %v6853_v38 = vpop.eup %6852 }
0x1e35   : > { %v3169_v39 = vmul.f32 %v6853_v38, %v3161_v28 }
0x1e37   : > { %v3174_v41 = vmul.f32 %v3173_v37, %v3169_v39 }
0x1e39   : > { %v8656_v42 = vadd.f32 %v3178_v40, %v3174_v41 }
0x1e3b   : > { %v3180_v43 = vpack.c.bf16 %v8656_v42, %v8656_v42 }
0x1e3d   : > { %6230 = vmatmul.mubr.msk.bf16.vlgmr.msra.gmra.mrb[48].mxu1 %vm1014_vm1, %v3180_v43 }
0x1e3e   : > { %6235 = vmatprep.mubr.msk.f32.mxu1 %vm7605_vm0, %v7604_v0 }
0x1f10   : > { %v3243_v45 = vpop.f32.mrb[48].mxu1 }
0x1f11   : > { %v8663_v46 = vadd.f32 %v5820_v44, %v3243_v45  ;;  %v6231_v4 = vpop.f32.mrb[49].mxu1 }
0x1f12   : > { %v3246_v12 = vpop.f32.mrb[50].mxu1 }
0x1f13   : > { %3256 = vrot.lane.b32.xlu1 %v8663_v46, %s7607_s27  ;;  %v6232_v5 = vpop.f32.mrb[51].mxu1  ;;  %v8670_v47 = vmul.f32 0.35355338, %v8663_v46 }
0x1f17   : > { %3423 = vrot.lane.b32.xlu1 %v8663_v46, %s7608_s14 }
0x1f1b   : > { %3421 = vrot.lane.b32.xlu1 %v8670_v47, %s7609_s11 }
0x1f85   : > { %v3257_v33 = vpop.permute.xlu1 %3256 }
0x1f86   : > { %6234 = vmatpush3.xpose.msk.msra.mxu1 %vm1066_vm2, %v3257_v33 }
0x1f87   : > { %6243 = vmatprep.subr.mxu1 %v7604_v0 }
0x1f89   : > { %v3424_v48 = vpop.permute.xlu1 %3423  ;;  %6236 = vmatmul.mubr.msk.f32.vlgmr.msra.gmra.mrb[42].mxu1 %vm1066_vm2, %v8670_v47 }
0x1f8a   : > { %6244 = vmatpush3.xpose.msk.msra.mxu1 %vm1066_vm2, %v3424_v48  ;;  %6245 = vmatprep.mubr.msk.f32.mxu1 %vm7605_vm0, %v7604_v0 }
0x1f8b   : > { %6253 = vmatprep.subr.bf16.mxu1 %v7604_v0 }
0x1f8d   : > { %v3422_v49 = vpop.permute.xlu1 %3421 }
0x1f8e   : > { %6246 = vmatmul.mubr.msk.f32.vlgmr.msra.gmra.mrb[52].mxu1 %vm1066_vm2, %v3422_v49 }
0x1f8f   : > { %6255 = vmatprep.mubr.msk.bf16.mxu1 %vm7605_vm0, %v7604_v0  ;;  %6254 = vmatpush3.bf16.msra.mxu1 %v3591_v11 }
0x1f90   : > { %6265 = vmatprep.subr.mxu1 %v7604_v0 }
0x205c   : > { %v3329_v50 = vpop.f32.mrb[42].mxu1 }
0x205d   : > { %v6237_v51 = vpop.f32.mrb[43].mxu1  ;;  %v3333_v53 = vsel %vm1066_vm2, %v3329_v50, -inf }
0x205e   : > { %3334 = vmax.xlane.f32.xlu1 %v3333_v53 }
0x2061   : > { %v3495_v54 = vpop.f32.mrb[52].mxu1 }
0x2062   : > { %v6247_v3 = vpop.f32.mrb[53].mxu1  ;;  %v3499_v55 = vsel %vm1066_vm2, %v3495_v54, -inf }
0x2063   : > { %3500 = vmax.xlane.f32.xlu0 %v3499_v55 }
0x206f   : > { %3510 = vrot.lane.b32.xlu1 %v8663_v46, %s7610_s12 }
0x20eb   : > { %v3335_v57 = vpop.xlane.xlu1 %3334 }
0x20ec   : > { %v3336_v58 = vsub.f32 %v3329_v50, %v3335_v57 }
0x20ee   : > { %v3337_v60 = vmul.f32 1.442695, %v3336_v58 }
0x20ef   : > { %v3511_v22 = vpop.permute.xlu1 %3510 }
0x20f0   : > { %6854 = vpow2.f32 %v3337_v60  ;;  %v3501_v61 = vpop.xlane.xlu0 %3500 }
0x20f1   : > { %v3502_v62 = vsub.f32 %v3495_v54, %v3501_v61  ;;  %v3253_v54 = vld [vmem:[#allocation13 + $0x18] sm:$0xf] }
0x20f2   : > { %v3849_v3 = vsel %vm1399_vm3, %v3253_v54, 0 }
0x20f3   : > { %v3503_v63 = vmul.f32 1.442695, %v3502_v62 }
0x20f5   : > { %6856 = vpow2.f32 %v3503_v63 }
0x20fa   : > { %v6855_v2 = vpop.eup %6854 }
0x20fb   : > { %v3339_v6 = vsel %vm1066_vm2, %v6855_v2, 0.0 }
0x20fc   : > { %3340 = vadd.xlane.f32.xlu0 %v3339_v6 }
0x20ff   : > { %v6857_v8 = vpop.eup %6856 }
0x2100   : > { %v3505_v9 = vsel %vm1066_vm2, %v6857_v8, 0.0 }
0x2101   : > { %3506 = vadd.xlane.f32.xlu0 %v3505_v9 }
0x2117   : > { %3344 = vrot.lane.b32.xlu0 %v8663_v46, %s7606_s19 }
0x211b   : > { %3681 = vrot.lane.b32.xlu0 %v8663_v46, %s7611_s4 }
0x211f   : > { %3679 = vrot.lane.b32.xlu0 %v8670_v47, %s7612_s7 }
0x2189   : > { %v3341_v13 = vpop.xlane.xlu0 %3340 }
0x218a   : > { %6858 = vrcp.f32 %v3341_v13 }
0x218e   : > { %v3507_v14 = vpop.xlane.xlu0 %3506 }
0x218f   : > { %6860 = vrcp.f32 %v3507_v14 }
0x2192   : > { %v3345_v15 = vpop.permute.xlu0 %3344 }
0x2193   : > { %6239 = vmatpush3.msra.mxu0 %v3345_v15 }
0x2194   : > { %v6859_v16 = vpop.eup %6858  ;;  %6248 = vmatprep.subr.mxu0 %v7604_v0 }
0x2195   : > { %v3343_v17 = vmul.f32 %v6859_v16, %v6855_v2 }
0x2196   : > { %v3682_v30 = vpop.permute.xlu0 %3681 }
0x2197   : > { %6241 = vmatmul.mubr.msk.f32.vlgmr.msra.gmra.mrb[30].mxu0 %vm1066_vm2, %v3343_v17 }
0x2198   : > { %6249 = vmatpush3.msra.mxu0 %v3511_v22  ;;  %6250 = vmatprep.mubr.msk.f32.mxu0 %vm7605_vm0, %v7604_v0 }
0x2199   : > { %v6861_v18 = vpop.eup %6860  ;;  %6259 = vmatprep.subr.bf16.mxu0 %v7604_v0 }
0x219a   : > { %v3509_v19 = vmul.f32 %v6861_v18, %v6857_v8  ;;  %v3680_v31 = vpop.permute.xlu0 %3679  ;;  %v3254_v18 = vld [vmem:[#allocation13 + $0x1c] sm:$0xf] }
0x219c   : > { %6251 = vmatmul.mubr.msk.f32.vlgmr.msra.gmra.mrb[40].mxu0 %vm1066_vm2, %v3509_v19  ;;  %v4062_v19 = vsel %vm1399_vm3, %v3254_v18, 0 }
0x219d   : > { %6261 = vmatprep.mubr.msk.bf16.mxu0 %vm7605_vm0, %v7604_v0  ;;  %6260 = vmatpush3.bf16.msra.mxu0 %v3637_v23 }
0x219e   : > { %6270 = vmatprep.subr.mxu0 %v7604_v0 }
0x226a   : > { %v3416_v24 = vpop.f32.mrb[30].mxu0 }
0x226b   : > { %v3420_v25 = vpack.c.bf16 %v3416_v24, %v3416_v24  ;;  %v6242_v26 = vpop.f32.mrb[31].mxu0 }
0x226d   : > { %6262 = vmatmul.mubr.msk.bf16.vlgmr.msra.gmra.mrb[44].mxu0 %vm1066_vm2, %v3420_v25 }
0x226e   : > { %6272 = vmatprep.mubr.msk.f32.mxu0 %vm7605_vm0, %v7604_v0 }
0x226f   : > { %v3582_v27 = vpop.f32.mrb[40].mxu0 }
0x2270   : > { %v3586_v28 = vpack.c.bf16 %v3582_v27, %v3582_v27  ;;  %v6252_v29 = vpop.f32.mrb[41].mxu0 }
0x2271   : > { %v5840_v29 = vld [vmem:[#allocation14 + $0x1] ss:$0 sm:$0xff] }
0x2272   : > { %6256 = vmatmul.mubr.msk.bf16.vlgmr.msra.gmra.mrb[56].mxu1 %vm1066_vm2, %v3586_v28 }
0x2273   : > { %6266 = vmatpush3.xpose.msk.msra.mxu1 %vm1066_vm2, %v3682_v30  ;;  %6267 = vmatprep.mubr.msk.f32.mxu1 %vm7605_vm0, %v7604_v0 }
0x2274   : > { %6275 = vmatprep.subr.bf16.mxu1 %v7604_v0 }
0x227a   : > { %6268 = vmatmul.mubr.msk.f32.vlgmr.msra.gmra.mrb[54].mxu1 %vm1066_vm2, %v3680_v31 }
0x227b   : > { %6277 = vmatprep.mubr.msk.bf16.mxu1 %vm7605_vm0, %v7604_v0  ;;  %6276 = vmatpush3.bf16.msra.mxu1 %v3849_v3 }
0x227c   : > { %6291 = vmatprep.subr.bf16.mxu1 %v7604_v0 }
0x2340   : > { %v3673_v32 = vpop.f32.mrb[44].mxu0 }
0x2341   : > { %v6263_v34 = vpop.f32.mrb[45].mxu0 }
0x2342   : > { %v3676_v35 = vpop.f32.mrb[46].mxu0 }
0x2343   : > { %v6264_v7 = vpop.f32.mrb[47].mxu0 }
0x2345   : > { %v3627_v36 = vpop.f32.mrb[56].mxu1 }
0x2346   : > { %v3674_v37 = vadd.f32 %v3673_v32, %v3627_v36  ;;  %v6257_v38 = vpop.f32.mrb[57].mxu1 }
0x2347   : > { %v3630_v39 = vpop.f32.mrb[58].mxu1 }
0x2348   : > { %v6258_v40 = vpop.f32.mrb[59].mxu1  ;;  %v6804_v39 = vld [vmem:[#allocation19 + $0x10] sm:$0xff]  }
0x2349   : > { %v6805_v40 = vld [vmem:[#allocation19 + $0x18] sm:$0xff]  }
0x234d   : > { %v3753_v41 = vpop.f32.mrb[54].mxu1 }
0x234e   : > { %v6269_v43 = vpop.f32.mrb[55].mxu1  ;;  %v3757_v44 = vsel %vm1066_vm2, %v3753_v41, -inf }
0x234f   : > { %3758 = vmax.xlane.f32.xlu0 %v3757_v44 }
0x2365   : > { %3768 = vrot.lane.b32.xlu0 %v8663_v46, %s7613_s17 }
0x2369   : > { %3892 = vrot.lane.b32.xlu0 %v8670_v47, %s7615_s26 }
0x23dc   : > { %v3759_v45 = vpop.xlane.xlu0 %3758 }
0x23dd   : > { %v3760_v4 = vsub.f32 %v3753_v41, %v3759_v45  ;;  %v6807_v41 = vld [vmem:[#allocation16 + $0x18] sm:$0xff]  }
0x23df   : > { %v3761_v12 = vmul.f32 1.442695, %v3760_v4  ;;  %v4130_v4 = vsub.s32 3, %v8496_v1 }
0x23e0   : > { %v3769_v5 = vpop.permute.xlu0 %3768 }
0x23e1   : > { %6862 = vpow2.f32 %v3761_v12  ;;  %6271 = vmatpush3.msra.mxu0 %v3769_v5 }
0x23e2   : > { %6281 = vmatprep.subr.mxu0 %v7604_v0 }
0x23e4   : > { %v3893_v53 = vpop.permute.xlu0 %3892 }
0x23eb   : > { %v6863_v33 = vpop.eup %6862 }
0x23ec   : > { %v3763_v48 = vsel %vm1066_vm2, %v6863_v33, 0.0 }
0x23ed   : > { %3764 = vadd.xlane.f32.xlu1 %v3763_v48  ;;  %v8774_v48 = vld [vmem:[%s848_s0] sm:$0x3f] }
0x23fe   : > { %3894 = vrot.lane.b32.xlu1 %v8663_v46, %s7614_s25 }
0x247a   : > { %v3765_v49 = vpop.xlane.xlu1 %3764 }
0x247b   : > { %6864 = vrcp.f32 %v3765_v49  ;;  %v4136_v49 = vrot.slane %v8774_v48, %v4130_v4 }
0x247e   : > { %v3895_v47 = vpop.permute.xlu1 %3894 }
0x2485   : > { %v6865_v50 = vpop.eup %6864 }
0x2486   : > { %v3767_v51 = vmul.f32 %v6865_v50, %v6863_v33 }
0x2488   : > { %6273 = vmatmul.mubr.msk.f32.vlgmr.msra.gmra.mrb[42].mxu0 %vm1066_vm2, %v3767_v51 }
0x2489   : > { %6282 = vmatpush3.xpose.msk.msra.mxu0 %vm1066_vm2, %v3895_v47  ;;  %6283 = vmatprep.mubr.msk.f32.mxu0 %vm7605_vm0, %v7604_v0 }
0x248a   : > { %6286 = vmatprep.subr.mxu0 %v7604_v0 }
0x248c   : > { %6284 = vmatmul.mubr.msk.f32.vlgmr.msra.gmra.mrb[48].mxu0 %vm1066_vm2, %v3893_v53  ;;  %v5841_v53 = vld [vmem:[#allocation20 + $0x1] ss:$0 sm:$0xff] }
0x248d   : > { %6288 = vmatprep.mubr.msk.f32.mxu0 %vm7605_vm0, %v7604_v0 }
0x255b   : > { %v3840_v55 = vpop.f32.mrb[42].mxu0 }
0x255c   : > { %v3844_v57 = vpack.c.bf16 %v3840_v55, %v3840_v55  ;;  %v6274_v58 = vpop.f32.mrb[43].mxu0 }
0x255e   : > { %6278 = vmatmul.mubr.msk.bf16.vlgmr.msra.gmra.mrb[60].mxu1 %vm1066_vm2, %v3844_v57 }
0x255f   : > { %v3966_v60 = vpop.f32.mrb[48].mxu0  ;;  %6293 = vmatprep.mubr.msk.bf16.mxu1 %vm7605_vm0, %v7604_v0  ;;  %6292 = vmatpush3.bf16.msra.mxu1 %v4062_v19 }
0x2560   : > { %v6285_v61 = vpop.f32.mrb[49].mxu0  ;;  %v3970_v62 = vsel %vm1066_vm2, %v3966_v60, -inf  ;;  %6305 = vmatprep.subr.bf16.mxu1 %v7604_v0 }
0x2561   : > { %3971 = vmax.xlane.f32.xlu0 %v3970_v62 }
0x2577   : > { %3981 = vrot.lane.b32.xlu0 %v8663_v46, %s7616_s8 }
0x25ee   : > { %v3972_v63 = vpop.xlane.xlu0 %3971 }
0x25ef   : > { %v3973_v2 = vsub.f32 %v3966_v60, %v3972_v63 }
0x25f1   : > { %v3974_v6 = vmul.f32 1.442695, %v3973_v2  ;;  %v5845_v2 = vld [vmem:[#allocation17 + $0x1] ss:$0 sm:$0xff] }
0x25f2   : > { %v3982_v8 = vpop.permute.xlu0 %3981 }
0x25f3   : > { %6866 = vpow2.f32 %v3974_v6  ;;  %6287 = vmatpush3.msra.mxu0 %v3982_v8 }
0x25f4   : > { %6297 = vmatprep.subr.bf16.mxu0 %v7604_v0 }
0x25fd   : > { %v6867_v9 = vpop.eup %6866 }
0x25fe   : > { %v3976_v10 = vsel %vm1066_vm2, %v6867_v9, 0.0 }
0x25ff   : > { %3977 = vadd.xlane.f32.xlu1 %v3976_v10 }
0x2631   : > { %v3885_v11 = vpop.f32.mrb[60].mxu1 }
0x2632   : > { %v3891_v13 = vadd.f32 %v3885_v11, %v3674_v37  ;;  %v6279_v14 = vpop.f32.mrb[61].mxu1 }
0x2633   : > { %v3888_v15 = vpop.f32.mrb[62].mxu1 }
0x2634   : > { %v6280_v16 = vpop.f32.mrb[63].mxu1 }
0x268c   : > { %v3978_v17 = vpop.xlane.xlu1 %3977 }
0x268d   : > { %6868 = vrcp.f32 %v3978_v17 }
0x2697   : > { %v6869_v46 = vpop.eup %6868 }
0x2698   : > { %v3980_v22 = vmul.f32 %v6869_v46, %v6867_v9 }
0x269a   : > { %6289 = vmatmul.mubr.msk.f32.vlgmr.msra.gmra.mrb[50].mxu0 %vm1066_vm2, %v3980_v22 }
0x269b   : > { %6301 = vmatprep.mubr.msk.bf16.mxu0 %vm7605_vm0, %v7604_v0  ;;  %6298 = vmatpush3.bf16.msra.mxu0 %v6804_v39 }
0x269c   : > { %6299 = vmatprep.subr.bf16.mxu0 %v7604_v0 }
0x269f   : > { %6300 = vmatpush3.bf16.msra.mxu0 %v6805_v40 }
0x26a0   : > { %6445 = vmatprep.subr.bf16.mxu0 %v7617_v59 }
0x26a2   : > { %6302 = vmatmul.mubr.msk.bf16.vlgmr.msra.gmra.mrb[52].mxu0 %vm1014_vm1, %v8487_v56  ;;  %v8769_v56 = vld [vmem:[%s839_s20] sm:$0x3f]  ;;  %s983_s20 = scalar_lea.vmem [#allocation34], %s8314_s15  ;;  %s7470_s15 = sshll.u32 %s7619_s3, 4  ;;  %s7471_s15 = int_to_ptr.vmem [resolvable:$false] %s7470_s15 }
0x26a3   : > { %6317 = vmatprep.mubr.msk.f32.mxu0 %vm7605_vm0, %v7604_v0  ;;  %v4131_v12 = vrot.slane %v8769_v56, %v4130_v4  ;;  %s5418_s29 = sshll.u32 %s983_s20, 4  ;;  %s8914_s29 = int_to_ptr.vmem [resolvable:$true] %s5418_s29 }
0x26a4   : > { %s7466_s12 = scalar_lea.vmem %s8914_s29, 128  ;;  %p7473_p10 = scmp.lt.s32.totalorder %s8914_s29, %s7471_s15 }
0x26a5   : > { %p7467_p4 = scmp.ne.s32.totalorder %s8914_s29, %s7466_s12 }
0x26a7   : > { %p7468_p13 = pnand %p7467_p4, %p9100_p11 }
0x26a9   : > { %p7469_p3 = pneg %p7468_p13 }
0x276d   : > { %v4053_v20 = vpop.f32.mrb[50].mxu0 }
0x276e   : > { %v4057_v23 = vpack.c.bf16 %v4053_v20, %v4053_v20  ;;  %v6290_v24 = vpop.f32.mrb[51].mxu0 }
0x2770   : > { %6294 = vmatmul.mubr.msk.bf16.vlgmr.msra.gmra.mrb[64].mxu1 %vm1066_vm2, %v4057_v23 }
0x2771   : > { %6309 = vmatprep.mubr.msk.bf16.mxu1 %vm7605_vm0, %v7604_v0 }
0x2775   : > { %v4197_v54 = vpop.f32.mrb[52].mxu0 }
0x2776   : > { %v4198_v3 = vadd.f32 %v5841_v53, %v4197_v54  ;;  %v6303_v55 = vpop.f32.mrb[53].mxu0 }
0x2777   : > { %v4200_v57 = vpop.f32.mrb[54].mxu0 }
0x2778   : > { %v4201_v58 = vadd.f32 %v5841_v53, %v4200_v57  ;;  %v6304_v60 = vpop.f32.mrb[55].mxu0 }
0x277a   : > { %v8784_v61 = vpack.i.bf16 %v4201_v58, %v4198_v3  ;;  %v6446_v62 = vpack.c.bf16 %v4201_v58, %v4198_v3 }
0x277c   : > { %6448 = vmatpush3.bf16.xpose.msk.msra.mxu0 %vm8518_vm4, %v6446_v62 }
0x277d   : > { %6453 = vmatprep.subr.bf16.mxu0 %v7617_v59 }
0x2843   : > { %v4098_v25 = vpop.f32.mrb[64].mxu1 }
0x2844   : > { %v4104_v26 = vadd.f32 %v4098_v25, %v3891_v13  ;;  %v6295_v27 = vpop.f32.mrb[65].mxu1 }
0x2845   : > { %v4101_v28 = vpop.f32.mrb[66].mxu1 }
0x2846   : > { %v4105_v30 = vadd.f32 %v4104_v26, %v8656_v42  ;;  %v6296_v31 = vpop.f32.mrb[67].mxu1  ;;  %v6806_v42 = vld [vmem:[#allocation16 + $0x10] sm:$0xff]  }
0x2847   : > { %6306 = vmatpush3.bf16.msra.mxu1 %v6806_v42 }
0x2848   : > { %v4114_v32 = vadd.f32 %v5840_v29, %v4105_v30  ;;  %6307 = vmatprep.subr.bf16.mxu1 %v7604_v0 }
0x284a   : > { %v4115_v34 = vsel %vm1014_vm1, %v4114_v32, 0.0 }
0x284b   : > { %4116 = vadd.xlane.f32.xlu1 %v4115_v34  ;;  %6308 = vmatpush3.bf16.msra.mxu1 %v6807_v41 }
0x284c   : > { %6449 = vmatprep.subr.bf16.mxu1 %v7617_v59 }
0x28d8   : > { %v4117_v35 = vpop.xlane.xlu1 %4116 }
0x28d9   : > { %v4118_v7 = vmul.f32 0.03125, %v4117_v35 }
0x28db   : > { %v4119_v36 = vsub.f32 %v4114_v32, %v4118_v7 }
0x28dd   : > { %v4120_v37 = vmul.f32 %v4119_v36, %v4119_v36 }
0x28df   : > { %v4121_v38 = vsel %vm1014_vm1, %v4120_v37, 0.0 }
0x28e0   : > { %4122 = vadd.xlane.f32.xlu1 %v4121_v38 }
0x28f1   : > { %6756 = vrot.lane.b32.xlu1 %v8784_v61, %s7609_s11 }
0x296d   : > { %v4123_v43 = vpop.xlane.xlu1 %4122 }
0x296e   : > { %v4124_v44 = vmul.f32 0.03125, %v4123_v43 }
0x2970   : > { %v4125_v45 = vadd.f32 1e-05, %v4124_v44 }
0x2971   : > { %v6757_v63 = vpop.permute.xlu1 %6756 }
0x2972   : > { %6870 = vrsqrt.f32 %v4125_v45  ;;  %v6759_v6 = vunpack.i.h.bf16 %v6757_v63  ;;  %v6758_v8 = vunpack.i.l.bf16 %v6757_v63 }
0x2974   : > { %v6454_v14 = vpack.c.bf16 %v6759_v6, %v6758_v8 }
0x297c   : > { %v6871_v5 = vpop.eup %6870 }
0x297d   : > { %v4127_v33 = vmul.f32 %v6871_v5, %v4119_v36 }
0x297f   : > { %v4132_v50 = vmul.f32 %v4131_v12, %v4127_v33  ;;  %v4276_v12 = vld [vmem:[#allocation22 + $0x14] sm:$0xf] }
0x2980   : > { %v4628_v33 = vsel %vm1399_vm3, %v4276_v12, 0 }
0x2981   : > { %v8777_v51 = vadd.f32 %v4136_v49, %v4132_v50  ;;  %v4275_v49 = vld [vmem:[#allocation22 + $0x10] sm:$0xf] }
0x2982   : > { %v4674_v50 = vsel %vm1399_vm3, %v4275_v49, 0 }
0x2983   : > { %v4204_v47 = vpack.c.bf16 %v8777_v51, %v8777_v51 }
0x2985   : > { %6310 = vmatmul.mubr.msk.bf16.vlgmr.msra.gmra.mrb[68].mxu1 %vm1014_vm1, %v4204_v47 }
0x2986   : > { %6324 = vmatprep.mubr.msk.f32.mxu1 %vm7605_vm0, %v7604_v0 }
0x2a58   : > { %v4267_v9 = vpop.f32.mrb[68].mxu1 }
0x2a59   : > { %v4268_v10 = vadd.f32 %v5845_v2, %v4267_v9  ;;  %v6311_v11 = vpop.f32.mrb[69].mxu1 }
0x2a5a   : > { %v4270_v13 = vpop.f32.mrb[70].mxu1 }
0x2a5b   : > { %v8791_v15 = vmul.f32 0.35355338, %v4268_v10  ;;  %v6312_v16 = vpop.f32.mrb[71].mxu1 }
0x2a5d   : > { %4450 = vrot.lane.b32.xlu0 %v8791_v15, %s7609_s11  ;;  %6318 = vmatmul.mubr.msk.f32.vlgmr.msra.gmra.mrb[56].mxu0 %vm1066_vm2, %v8791_v15  ;;  %s5405_s11 = scalar_lea.sflag [#allocation4], %s8311_s28 }
0x2a5e   : > { %6456 = vmatpush3.bf16.xpose.msk.msra.mxu0 %vm8518_vm4, %v6454_v14  ;;  %6331 = vmatprep.mubr.msk.f32.mxu0 %vm7605_vm0, %v7604_v0 }
0x2a5f   : > { %6347 = vmatprep.subr.bf16.mxu0 %v7604_v0 }
0x2acf   : > { %v4451_v17 = vpop.permute.xlu0 %4450 }
0x2ad0   : > { %6332 = vmatmul.mubr.msk.f32.vlgmr.msra.gmra.mrb[58].mxu0 %vm1066_vm2, %v4451_v17 }
0x2ad1   : > { %6349 = vmatprep.mubr.msk.bf16.mxu0 %vm7605_vm0, %v7604_v0  ;;  %6348 = vmatpush3.bf16.msra.mxu0 %v4674_v50 }
0x2ad2   : > { %6465 = vmatprep.subr.bf16.mxu0 %v7617_v59 }
0x2b30   : > { %v4354_v46 = vpop.f32.mrb[56].mxu0 }
0x2b31   : > { %v6319_v22 = vpop.f32.mrb[57].mxu0  ;;  %v4358_v18 = vsel %vm2167_vm5, %v4354_v46, -inf }
0x2b32   : > { %4359 = vmax.xlane.f32.xlu0 %v4358_v18 }
0x2ba3   : > { %v4528_v19 = vpop.f32.mrb[58].mxu0 }
0x2ba4   : > { %v6333_v20 = vpop.f32.mrb[59].mxu0  ;;  %v4532_v23 = vsel %vm2167_vm5, %v4528_v19, -inf }
0x2ba5   : > { %4533 = vmax.xlane.f32.xlu1 %v4532_v23 }
0x2bb6   : > { %6766 = vrot.lane.b32.xlu1 %v8784_v61, %s7608_s14 }
0x2bba   : > { %6771 = vrot.lane.b32.xlu1 %v8784_v61, %s7612_s7 }
0x2bbf   : > { %v4360_v24 = vpop.xlane.xlu0 %4359 }
0x2bc0   : > { %v4361_v25 = vsub.f32 %v4354_v46, %v4360_v24 }
0x2bc2   : > { %v4362_v26 = vmul.f32 1.442695, %v4361_v25 }
0x2bc4   : > { %6872 = vpow2.f32 %v4362_v26 }
0x2bce   : > { %v6873_v27 = vpop.eup %6872 }
0x2bcf   : > { %v4364_v28 = vsel %vm2167_vm5, %v6873_v27, 0.0 }
0x2bd0   : > { %4365 = vadd.xlane.f32.xlu0 %v4364_v28 }
0x2c32   : > { %v4534_v29 = vpop.xlane.xlu1 %4533 }
0x2c33   : > { %v4535_v30 = vsub.f32 %v4528_v19, %v4534_v29 }
0x2c35   : > { %v4536_v31 = vmul.f32 1.442695, %v4535_v30 }
0x2c36   : > { %v6767_v36 = vpop.permute.xlu1 %6766 }
0x2c37   : > { %6874 = vpow2.f32 %v4536_v31  ;;  %v6769_v42 = vunpack.i.h.bf16 %v6767_v36  ;;  %v6768_v41 = vunpack.i.l.bf16 %v6767_v36 }
0x2c39   : > { %v6458_v4 = vpack.c.bf16 %v6769_v42, %v6768_v41 }
0x2c3a   : > { %v6772_v47 = vpop.permute.xlu1 %6771 }
0x2c3b   : > { %v6774_v55 = vunpack.i.h.bf16 %v6772_v47  ;;  %v6773_v57 = vunpack.i.l.bf16 %v6772_v47 }
0x2c3d   : > { %v6462_v63 = vpack.c.bf16 %v6774_v55, %v6773_v57 }
0x2c41   : > { %v6875_v32 = vpop.eup %6874 }
0x2c42   : > { %v4538_v34 = vsel %vm2167_vm5, %v6875_v32, 0.0 }
0x2c43   : > { %4539 = vadd.xlane.f32.xlu0 %v4538_v34 }
0x2c59   : > { %6761 = vrot.lane.b32.xlu0 %v8784_v61, %s7607_s27  ;;  %s9099_s27 = sld [smem:[#allocation70_spill]] }
0x2c5d   : > { %4716 = vrot.lane.b32.xlu0 %v8791_v15, %s7612_s7  ;;  %v4366_v35 = vpop.xlane.xlu0 %4365 }
0x2c5e   : > { %6876 = vrcp.f32 %v4366_v35 }
0x2c5f   : > { %s8912_s14 = scalar_lea.hbm %s9099_s27, %s5887_s9 }
0x2c68   : > { %v6877_v40 = vpop.eup %6876 }
0x2c69   : > { %v4368_v44 = vmul.f32 %v6877_v40, %v6873_v27 }
0x2cd0   : > { %v4540_v7 = vpop.xlane.xlu0 %4539 }
0x2cd1   : > { %6878 = vrcp.f32 %v4540_v7 }
0x2cd4   : > { %v6762_v37 = vpop.permute.xlu0 %6761 }
0x2cd5   : > { %v6764_v38 = vunpack.i.h.bf16 %v6762_v37  ;;  %v6763_v39 = vunpack.i.l.bf16 %v6762_v37  ;;  %v4277_v37 = vld [vmem:[#allocation22 + $0x18] sm:$0xf] }
0x2cd7   : > { %v6450_v43 = vpack.c.bf16 %v6764_v38, %v6763_v39  ;;  %v4894_v38 = vsel %vm1399_vm3, %v4277_v37, 0  ;;  %v6813_v37 = vld [vmem:[#allocation28 + $0x38] sm:$0xff]  }
0x2cd8   : > { %v4717_v2 = vpop.permute.xlu0 %4716 }
0x2cd9   : > { %6452 = vmatpush3.bf16.msk.msra.mxu1 %vm8551_vm7, %v6450_v43 }
0x2cda   : > { %6457 = vmatprep.subr.bf16.mxu1 %v7617_v59 }
0x2cdb   : > { %v6879_v45 = vpop.eup %6878 }
0x2cdc   : > { %6325 = vmatmul.mubr.msk.f32.vlgmr.msra.gmra.mrb[72].mxu1 %vm2167_vm5, %v4368_v44  ;;  %v4542_v5 = vmul.f32 %v6879_v45, %v6875_v32 }
0x2cdd   : > { %6460 = vmatpush3.bf16.msk.msra.mxu1 %vm8551_vm7, %v6458_v4  ;;  %6338 = vmatprep.mubr.msk.f32.mxu1 %vm7605_vm0, %v7604_v0 }
0x2cde   : > { %6341 = vmatprep.subr.bf16.mxu1 %v7604_v0 }
0x2ce0   : > { %6339 = vmatmul.mubr.msk.f32.vlgmr.msra.gmra.mrb[74].mxu1 %vm2167_vm5, %v4542_v5 }
0x2ce1   : > { %6342 = vmatpush3.bf16.msra.mxu1 %v4628_v33  ;;  %6343 = vmatprep.mubr.msk.bf16.mxu1 %vm7605_vm0, %v7604_v0 }
0x2ce2   : > { %6461 = vmatprep.subr.bf16.mxu1 %v7617_v59 }
0x2daf   : > { %v4445_v53 = vpop.f32.mrb[72].mxu1 }
0x2db0   : > { %v4449_v54 = vpack.c.bf16 %v4445_v53, %v4445_v53  ;;  %v6326_v3 = vpop.f32.mrb[73].mxu1 }
0x2db2   : > { %6350 = vmatmul.mubr.msk.bf16.vlgmr.msra.gmra.mrb[60].mxu0 %vm1066_vm2, %v4449_v54 }
0x2db3   : > { %v4619_v58 = vpop.f32.mrb[74].mxu1  ;;  %6364 = vmatprep.mubr.msk.f32.mxu0 %vm7605_vm0, %v7604_v0 }
0x2db4   : > { %v4623_v60 = vpack.c.bf16 %v4619_v58, %v4619_v58  ;;  %v6340_v62 = vpop.f32.mrb[75].mxu1 }
0x2db6   : > { %6344 = vmatmul.mubr.msk.bf16.vlgmr.msra.gmra.mrb[76].mxu1 %vm1066_vm2, %v4623_v60  ;;  %v5115_v60 = vsel %vm1399_vm3, %v4278_v52, 0 }
0x2db7   : > { %6464 = vmatpush3.bf16.xpose.msk.msra.mxu1 %vm8518_vm4, %v6462_v63  ;;  %6357 = vmatprep.mubr.msk.f32.mxu1 %vm7605_vm0, %v7604_v0 }
0x2db8   : > { %6367 = vmatprep.subr.bf16.mxu1 %v7604_v0 }
0x2dbe   : > { %6358 = vmatmul.mubr.msk.f32.vlgmr.msra.gmra.mrb[80].mxu1 %vm1066_vm2, %v4717_v2 }
0x2dbf   : > { %6369 = vmatprep.mubr.msk.bf16.mxu1 %vm7605_vm0, %v7604_v0  ;;  %6368 = vmatpush3.bf16.msra.mxu1 %v4894_v38  ;;  %v5874_v38 = vld [vmem:[#allocation26 + $0x1] ss:$0 sm:$0xff] }
0x2dc0   : > { %6473 = vmatprep.subr.bf16.mxu1 %v7617_v59 }
0x2e85   : > { %v4710_v6 = vpop.f32.mrb[60].mxu0 }
0x2e86   : > { %v6351_v8 = vpop.f32.mrb[61].mxu0 }
0x2e87   : > { %v4713_v9 = vpop.f32.mrb[62].mxu0 }
0x2e88   : > { %v6352_v10 = vpop.f32.mrb[63].mxu0 }
0x2e89   : > { %v4664_v11 = vpop.f32.mrb[76].mxu1 }
0x2e8a   : > { %v8845_v13 = vadd.f32 %v4710_v6, %v4664_v11  ;;  %v6345_v14 = vpop.f32.mrb[77].mxu1  ;;  %v5873_v11 = vld [vmem:[#allocation23 + $0x1] ss:$0 sm:$0xff] }
0x2e8b   : > { %v4667_v16 = vpop.f32.mrb[78].mxu1 }
0x2e8c   : > { %v6346_v17 = vpop.f32.mrb[79].mxu1 }
0x2e91   : > { %v4794_v46 = vpop.f32.mrb[80].mxu1 }
0x2e92   : > { %v6359_v22 = vpop.f32.mrb[81].mxu1  ;;  %v4798_v18 = vsel %vm2167_vm5, %v4794_v46, -inf }
0x2e93   : > { %4799 = vmax.xlane.f32.xlu1 %v4798_v18 }
0x2ea4   : > { %6781 = vrot.lane.b32.xlu1 %v8784_v61, %s7615_s26 }
0x2ea8   : > { %4937 = vrot.lane.b32.xlu1 %v8791_v15, %s7615_s26 }
0x2f20   : > { %v4800_v19 = vpop.xlane.xlu1 %4799 }
0x2f21   : > { %v4801_v20 = vsub.f32 %v4794_v46, %v4800_v19 }
0x2f23   : > { %v4802_v23 = vmul.f32 1.442695, %v4801_v20 }
0x2f24   : > { %v6782_v31 = vpop.permute.xlu1 %6781 }
0x2f25   : > { %6880 = vpow2.f32 %v4802_v23  ;;  %v6784_v32 = vunpack.i.h.bf16 %v6782_v31  ;;  %v6783_v34 = vunpack.i.l.bf16 %v6782_v31  ;;  %v6808_v23 = vld [vmem:[#allocation25 + $0x10] sm:$0xff]  }
0x2f27   : > { %v6470_v7 = vpack.c.bf16 %v6784_v32, %v6783_v34 }
0x2f28   : > { %v4938_v36 = vpop.permute.xlu1 %4937 }
0x2f2f   : > { %v6881_v24 = vpop.eup %6880 }
0x2f30   : > { %v4804_v25 = vsel %vm2167_vm5, %v6881_v24, 0.0 }
0x2f31   : > { %4805 = vadd.xlane.f32.xlu0 %v4804_v25 }
0x2f47   : > { %6776 = vrot.lane.b32.xlu0 %v8784_v61, %s7611_s4  ;;  %s7472_s4 = scalar_lea.vmem %s7471_s15, 256 }
0x2f48   : > { %p7474_p7 = scmp.lt.s32.totalorder %s7472_s4, %s7466_s12 }
0x2f4a   : > { %p7475_p0 = por %p7474_p7, %p7473_p10 }
0x2f4c   : > { %p7476_p5 = pnand %p7475_p0, %p7469_p3 }
0x2fbe   : > { %v4806_v26 = vpop.xlane.xlu0 %4805 }
0x2fbf   : > { %6882 = vrcp.f32 %v4806_v26 }
0x2fc2   : > { %v6777_v27 = vpop.permute.xlu0 %6776 }
0x2fc3   : > { %v6779_v28 = vunpack.i.h.bf16 %v6777_v27  ;;  %v6778_v29 = vunpack.i.l.bf16 %v6777_v27  ;;  %v5183_v27 = vsub.s32 4, %v8496_v1 }
0x2fc5   : > { %v6466_v30 = vpack.c.bf16 %v6779_v28, %v6778_v29  ;;  %v5184_v28 = vrot.slane %v8769_v56, %v5183_v27  ;;  %v5189_v31 = vrot.slane %v8774_v48, %v5183_v27 }
0x2fc7   : > { %6468 = vmatpush3.bf16.msk.msra.mxu0 %vm8551_vm7, %v6466_v30 }
0x2fc8   : > { %6469 = vmatprep.subr.bf16.mxu0 %v7617_v59 }
0x2fc9   : > { %v6883_v15 = vpop.eup %6882 }
0x2fca   : > { %v4808_v35 = vmul.f32 %v6883_v15, %v6881_v24  ;;  %v6809_v24 = vld [vmem:[#allocation25 + $0x18] sm:$0xff]  }
0x2fcc   : > { %6365 = vmatmul.mubr.msk.f32.vlgmr.msra.gmra.mrb[64].mxu0 %vm2167_vm5, %v4808_v35  ;;  %v6810_v35 = vld [vmem:[#allocation28 + $0x20] sm:$0xff]  }
0x2fcd   : > { %6377 = vmatprep.mubr.msk.f32.mxu0 %vm7605_vm0, %v7604_v0 }
0x2fd0   : > { %6472 = vmatpush3.bf16.xpose.msk.msra.mxu0 %vm8518_vm4, %v6470_v7  ;;  %v6811_v7 = vld [vmem:[#allocation28 + $0x28] sm:$0xff]  }
0x2fd1   : > { %6387 = vmatprep.subr.bf16.mxu0 %v7604_v0 }
0x2fd7   : > { %6378 = vmatmul.mubr.msk.f32.vlgmr.msra.gmra.mrb[66].mxu0 %vm1066_vm2, %v4938_v36  ;;  %v6812_v36 = vld [vmem:[#allocation28 + $0x30] sm:$0xff]  }
0x2fd8   : > { %6389 = vmatprep.mubr.msk.bf16.mxu0 %vm7605_vm0, %v7604_v0  ;;  %6388 = vmatpush3.bf16.msra.mxu0 %v5115_v60 }
0x2fd9   : > { %6401 = vmatprep.subr.bf16.mxu0 %v7604_v0 }
0x309f   : > { %v4885_v39 = vpop.f32.mrb[64].mxu0 }
0x30a0   : > { %v4889_v40 = vpack.c.bf16 %v4885_v39, %v4885_v39  ;;  %v6366_v42 = vpop.f32.mrb[65].mxu0 }
0x30a2   : > { %6370 = vmatmul.mubr.msk.bf16.vlgmr.msra.gmra.mrb[84].mxu1 %vm1066_vm2, %v4889_v40 }
0x30a3   : > { %6384 = vmatprep.mubr.msk.f32.mxu1 %vm7605_vm0, %v7604_v0 }
0x30aa   : > { %v5015_v21 = vpop.f32.mrb[66].mxu0 }
0x30ab   : > { %v6379_v41 = vpop.f32.mrb[67].mxu0  ;;  %v5019_v43 = vsel %vm2167_vm5, %v5015_v21, -inf }
0x30ac   : > { %5020 = vmax.xlane.f32.xlu0 %v5019_v43 }
0x30c2   : > { %6786 = vrot.lane.b32.xlu0 %v8784_v61, %s7614_s25 }
0x3139   : > { %v5021_v44 = vpop.xlane.xlu0 %5020 }
0x313a   : > { %v5022_v45 = vsub.f32 %v5015_v21, %v5021_v44 }
0x313c   : > { %v5023_v4 = vmul.f32 1.442695, %v5022_v45 }
0x313d   : > { %v6787_v59 = vpop.permute.xlu0 %6786 }
0x313e   : > { %6884 = vpow2.f32 %v5023_v4  ;;  %v6789_v12 = vunpack.i.h.bf16 %v6787_v59  ;;  %v6788_v5 = vunpack.i.l.bf16 %v6787_v59 }
0x3140   : > { %v6474_v33 = vpack.c.bf16 %v6789_v12, %v6788_v5  ;;  %v5878_v5 = vld [vmem:[#allocation29 + $0x1] ss:$0 sm:$0xff] }
0x3142   : > { %6476 = vmatpush3.bf16.msk.msra.mxu1 %vm8551_vm7, %v6474_v33 }
0x3143   : > { %6393 = vmatprep.subr.bf16.mxu1 %v7604_v0 }
0x3148   : > { %v6885_v49 = vpop.eup %6884 }
0x3149   : > { %v5025_v50 = vsel %vm2167_vm5, %v6885_v49, 0.0 }
0x314a   : > { %5026 = vadd.xlane.f32.xlu1 %v5025_v50 }
0x3175   : > { %v4930_v47 = vpop.f32.mrb[84].mxu1 }
0x3176   : > { %v4936_v61 = vadd.f32 %v4930_v47, %v8845_v13  ;;  %v6371_v53 = vpop.f32.mrb[85].mxu1 }
0x3177   : > { %v4933_v54 = vpop.f32.mrb[86].mxu1 }
0x3178   : > { %v6372_v3 = vpop.f32.mrb[87].mxu1 }
0x31d7   : > { %v5027_v55 = vpop.xlane.xlu1 %5026 }
0x31d8   : > { %6886 = vrcp.f32 %v5027_v55 }
0x31e2   : > { %v6887_v57 = vpop.eup %6886 }
0x31e3   : > { %v5029_v58 = vmul.f32 %v6887_v57, %v6885_v49 }
0x31e5   : > { %6385 = vmatmul.mubr.msk.f32.vlgmr.msra.gmra.mrb[82].mxu1 %vm2167_vm5, %v5029_v58 }
0x31e6   : > { %6397 = vmatprep.mubr.msk.bf16.mxu1 %vm7605_vm0, %v7604_v0  ;;  %6394 = vmatpush3.bf16.msra.mxu1 %v6808_v23  ;;  %v5885_v23 = vld [vmem:[#allocation32] ss:$0 sm:$0xff] }
0x31e7   : > { %6395 = vmatprep.subr.bf16.mxu1 %v7604_v0 }
0x31ea   : > { %6396 = vmatpush3.bf16.msra.mxu1 %v6809_v24 }
0x32b8   : > { %v5106_v62 = vpop.f32.mrb[82].mxu1 }
0x32b9   : > { %v5110_v63 = vpack.c.bf16 %v5106_v62, %v5106_v62  ;;  %v6386_v2 = vpop.f32.mrb[83].mxu1 }
0x32bb   : > { %6390 = vmatmul.mubr.msk.bf16.vlgmr.msra.gmra.mrb[68].mxu0 %vm1066_vm2, %v5110_v63  ;;  %v5366_v63 = vsub.s32 5, %v8496_v1 }
0x32bc   : > { %6409 = vmatprep.mubr.msk.bf16.mxu0 %vm7605_vm0, %v7604_v0  ;;  %6402 = vmatpush3.bf16.msra.mxu0 %v6810_v35 }
0x32bd   : > { %6403 = vmatprep.subr.bf16.mxu0 %v7604_v0  ;;  %v5367_v2 = vrot.slane %v8769_v56, %v5366_v63 }
0x32c0   : > { %6404 = vmatpush3.bf16.msra.mxu0 %v6811_v7 }
0x32c1   : > { %6405 = vmatprep.subr.bf16.mxu0 %v7604_v0 }
0x32c4   : > { %6406 = vmatpush3.bf16.msra.mxu0 %v6812_v36 }
0x32c5   : > { %6407 = vmatprep.subr.bf16.mxu0 %v7604_v0 }
0x32c8   : > { %6408 = vmatpush3.bf16.msra.mxu0 %v6813_v37 }
0x338e   : > { %v5151_v6 = vpop.f32.mrb[68].mxu0 }
0x338f   : > { %v5157_v8 = vadd.f32 %v5151_v6, %v4936_v61  ;;  %v6391_v9 = vpop.f32.mrb[69].mxu0 }
0x3390   : > { %v5154_v10 = vpop.f32.mrb[70].mxu0  ;;  %v5372_v9 = vrot.slane %v8774_v48, %v5366_v63 }
0x3391   : > { %v5158_v13 = vadd.f32 %v5157_v8, %v8777_v51  ;;  %v6392_v14 = vpop.f32.mrb[71].mxu0 }
0x3393   : > { %v5167_v16 = vadd.f32 %v5873_v11, %v5158_v13 }
0x3395   : > { %v5168_v17 = vsel %vm1014_vm1, %v5167_v16, 0.0 }
0x3396   : > { %5169 = vadd.xlane.f32.xlu1 %v5168_v17 }
0x3423   : > { %v5170_v46 = vpop.xlane.xlu1 %5169 }
0x3424   : > { %v5171_v22 = vmul.f32 0.03125, %v5170_v46 }
0x3426   : > { %v5172_v18 = vsub.f32 %v5167_v16, %v5171_v22 }
0x3428   : > { %v5173_v19 = vmul.f32 %v5172_v18, %v5172_v18 }
0x342a   : > { %v5174_v20 = vsel %vm1014_vm1, %v5173_v19, 0.0  ;;  %v5884_v19 = vld [vmem:[#allocation31] ss:$0 sm:$0xff] }
0x342b   : > { %5175 = vadd.xlane.f32.xlu1 %v5174_v20 }
0x34b8   : > { %v5176_v25 = vpop.xlane.xlu1 %5175 }
0x34b9   : > { %v5177_v51 = vmul.f32 0.03125, %v5176_v25 }
0x34bb   : > { %v5178_v26 = vadd.f32 1e-05, %v5177_v51 }
0x34bd   : > { %6888 = vrsqrt.f32 %v5178_v26 }
0x34c7   : > { %v6889_v29 = vpop.eup %6888 }
0x34c8   : > { %v5180_v30 = vmul.f32 %v6889_v29, %v5172_v18 }
0x34ca   : > { %v5185_v15 = vmul.f32 %v5184_v28, %v5180_v30 }
0x34cc   : > { %v5190_v32 = vadd.f32 %v5189_v31, %v5185_v15 }
0x34ce   : > { %v5191_v34 = vpack.c.bf16 %v5190_v32, %v5190_v32 }
0x34d0   : > { %6398 = vmatmul.mubr.msk.bf16.vlgmr.msra.gmra.mrb[88].mxu1 %vm1014_vm1, %v5191_v34 }
0x35a3   : > { %v5254_v39 = vpop.f32.mrb[88].mxu1 }
0x35a4   : > { %v5255_v40 = vadd.f32 %v5874_v38, %v5254_v39  ;;  %v6399_v42 = vpop.f32.mrb[89].mxu1 }
0x35a5   : > { %v5257_v21 = vpop.f32.mrb[90].mxu1 }
0x35a6   : > { %v5261_v41 = vmul.f32 0.70710677, %v5255_v40  ;;  %v6400_v43 = vpop.f32.mrb[91].mxu1  ;;  %v5260_v45 = vmul.f32 0.5, %v5255_v40 }
0x35a8   : > { %6890 = verf.f32 %v5261_v41 }
0x35b2   : > { %v6891_v44 = vpop.eup %6890 }
0x35b3   : > { %v5263_v4 = vadd.f32 1.0, %v6891_v44 }
0x35b5   : > { %v5264_v59 = vmul.f32 %v5263_v4, %v5260_v45 }
0x35b7   : > { %v5265_v12 = vpack.c.bf16 %v5264_v59, %v5264_v59 }
0x35b9   : > { %6410 = vmatmul.mubr.msk.bf16.vlgmr.msra.gmra.mrb[72].mxu0 %vm3112_vm8, %v5265_v12 }
0x368c   : > { %v5344_v33 = vpop.f32.mrb[72].mxu0 }
0x368d   : > { %v5345_v0 = vadd.f32 %v5878_v5, %v5344_v33  ;;  %v6411_v49 = vpop.f32.mrb[73].mxu0 }
0x368e   : > { %v5347_v50 = vpop.f32.mrb[74].mxu0 }
0x368f   : > { %v6412_v47 = vpop.f32.mrb[75].mxu0  ;;  %v5350_v61 = vadd.f32 %v5345_v0, %v5190_v32 }
0x3691   : > { %v5351_v53 = vsel %vm1014_vm1, %v5350_v61, 0.0 }
0x3692   : > { %5352 = vadd.xlane.f32.xlu1 %v5351_v53 }
0x371f   : > { %v5353_v54 = vpop.xlane.xlu1 %5352 }
0x3720   : > { %v5354_v3 = vmul.f32 0.03125, %v5353_v54 }
0x3722   : > { %v5355_v55 = vsub.f32 %v5350_v61, %v5354_v3 }
0x3724   : > { %v5356_v57 = vmul.f32 %v5355_v55, %v5355_v55 }
0x3726   : > { %v5357_v58 = vsel %vm1014_vm1, %v5356_v57, 0.0 }
0x3727   : > { %5358 = vadd.xlane.f32.xlu1 %v5357_v58 }
0x37b4   : > { %v5359_v52 = vpop.xlane.xlu1 %5358 }
0x37b5   : > { %v5360_v60 = vmul.f32 0.03125, %v5359_v52 }
0x37b7   : > { %v5361_v62 = vadd.f32 1e-05, %v5360_v60 }
0x37b9   : > { %6892 = vrsqrt.f32 %v5361_v62 }
0x37c3   : > { %v6893_v6 = vpop.eup %6892 }
0x37c4   : > { %v5363_v8 = vmul.f32 %v6893_v6, %v5355_v55 }
0x37c6   : > { %v5368_v10 = vmul.f32 %v5367_v2, %v5363_v8 }
0x37c8   : > { %v5373_v11 = vadd.f32 %v5372_v9, %v5368_v10 }
0x37ca   : > { %v5374_v13 = vsel %vm1014_vm1, %v5373_v11, 0.0 }
0x37cb   : > { %5375 = vadd.xlane.f32.xlu0 %v5374_v13 }
0x3858   : > { %v5376_v14 = vpop.xlane.xlu0 %5375 }
0x3859   : > { %v5377_v16 = vmul.f32 0.03125, %v5376_v14 }
0x385b   : > { %v5378_v17 = vsub.f32 %v5373_v11, %v5377_v16 }
0x385d   : > { %v5379_v46 = vmul.f32 %v5378_v17, %v5378_v17 }
0x385f   : > { %v5380_v22 = vsel %vm1014_vm1, %v5379_v46, 0.0 }
0x3860   : > { %5381 = vadd.xlane.f32.xlu1 %v5380_v22 }
0x38ed   : > { %v5382_v1 = vpop.xlane.xlu1 %5381 }
0x38ee   : > { %v5383_v56 = vmul.f32 0.03125, %v5382_v1 }
0x38f0   : > { %v5384_v18 = vadd.f32 1e-05, %v5383_v56 }
0x38f2   : > { %6894 = vrsqrt.f32 %v5384_v18 }
0x38fc   : > { %v6895_v48 = vpop.eup %6894 }
0x38fd   : > { %v5386_v20 = vmul.f32 %v6895_v48, %v5378_v17 }
0x38ff   : > { %v5394_v24 = vmul.f32 %v5884_v19, %v5386_v20 }
0x3901   : > { %v5402_v25 = vadd.f32 %v5885_v23, %v5394_v24 }
0x3903   : > { %5403 = vst.msk [vmem:[%s983_s20] sm:$0xff] %vm1014_vm1, %v5402_v25 }
0x3904   : > { %7479 = shalt.err (!%p7476_p5)
}
0x3905   : > { %s7480_s28 = scalar_lea.hbm %s8912_s14, 128  ;;  %s7484_s25 = scalar_lea.hbm %s9099_s27, 256 }
0x3906   : > { %p7481_p12 = scmp.ne.s32.totalorder %s8912_s14, %s7480_s28  ;;  %p7485_p2 = scmp.lt.u32.totalorder %s8912_s14, %s9099_s27 }
0x3907   : > { %p7486_p8 = scmp.lt.u32.totalorder %s7484_s25, %s7480_s28  ;;  %p7488_p4 = scmp.lt.u32.totalorder %s7480_s28, %s8912_s14 }
0x3908   : > { %p7482_p6 = pnand %p7481_p12, %p9100_p11 }
0x3909   : > { %p7487_p1 = por %p7486_p8, %p7485_p2 }
0x390a   : > { %p7483_p9 = pneg %p7482_p6 }
0x390b   : > { %p7489_p13 = por %p7488_p4, %p7487_p1 }
0x390d   : > { %p7490_p3 = pnand %p7489_p13, %p7483_p9 }
0x390f   : > { %7493 = shalt.err (!%p7490_p3)
}
0x3910   : > { %6549 = dma.vmem_to_hbm [thread:$0]  (%p9100_p11), %s8914_s29, 128, %s8912_s14, %s5405_s11  }
0x3911 PF: > { %s5430_s9 = sand.u32 1, %s7564_s1   ;;  %p9101_p10 = scmp.ne.s32.totalorder %s9050_s2, 0 }
0x3912   : > { %p9102_p7 = scmp.ge.s32.totalorder %s7576_s24, 2  ;;  %s5431_s20 = scalar_lea.sflag [#allocation4], %s5430_s9 }
0x3914   : > { %p6614_p0 = pnand %p9102_p7, %p9101_p10 }
0x3916   : > { %7559 = dma.done.wait (!%p6614_p0), %s5431_s20, 128  }
0x3917   : > { %7561 = vsyncadd (!%p6614_p0), %s5431_s20, 4294967168  ;;  %s9103_s0 = sld [smem:[#allocation49_spill]]  ;;  %p47_p5 = scmp.ge.s32.totalorder %s7957_s30, 4  }
0x3918   : > { %s9104_s1 = smov %s7568_s22  ;;  %s9105_s22 = smov %s7572_s23 }
0x3919   : > { %s9107_s24 = smov %s7957_s30  ;;  %49 = sbr.rel (!%p47_p5) target bundleno = 39 (0x27), region = 260 }
0x391d   : > { %s9106_s23 = smov %s9103_s0 }
0x3920   :  { %5436 = vsyncpa [#allocation3], 1 }
0x3921   :  { %5438 = vsyncpa [#allocation3 + $0x1], 1 }
0x3922   :  { %5439 = vsyncpa [#allocation6], 1 }
0x3923   :  { %5441 = vsyncpa [#allocation6 + $0x1], 1 }
0x3924   :  { %5442 = vsyncpa [#allocation9], 1 }
0x3925   :  { %5444 = vsyncpa [#allocation9 + $0x1], 1 }
0x3926   :  { %5445 = vsyncpa [#allocation12], 1 }
0x3927   :  { %5446 = vsyncpa [#allocation15], 1 }
0x3928   :  { %5447 = vsyncpa [#allocation18], 1 }
0x3929   :  { %5448 = vsyncpa [#allocation21], 1 }
0x392a   :  { %5449 = vsyncpa [#allocation24], 1 }
0x392b   :  { %5450 = vsyncpa [#allocation27], 1 }
0x392c   :  { %5451 = vsyncpa [#allocation30], 1 }
0x392d   :  { %5452 = vsyncpa [#allocation33], 1 }
0x392e   :  { %5453 = vsyncpa [#allocation4], 1 }
0x392f   :  { %5455 = vsyncpa [#allocation4 + $0x1], 1 }

</bundles_post_ra>
